<compile_context>
chip_gen: v7x
topology: tpu7x:2x2x1
jax: 0.10.0
libtpu: 0.0.40
codegen_flags: <defaults>
</compile_context>

<pallas_src>
import functools

import jax
import jax.numpy as jnp
from jax.experimental import pallas as pl
from jax.experimental.pallas import tpu as pltpu

IN_DIM = 28 * 28          # 784
LATENT = 3
LATENT_PAD = 128          # internal (kernel-only) lane padding of the 3-wide latent
ENC_DIMS = [IN_DIM, 128, 64, 12, LATENT]   # encoder Linear chain
DEC_DIMS = [LATENT, 12, 64, 128, IN_DIM]   # decoder Linear chain


def _ae_kernel(x_ref, *refs):
    """refs = 16 param refs (w0,b0,...,w7,b7) + (enc_out_ref, dec_out_ref).

    x_ref       : (TB, 784)  f32 (streamed straight from HBM, cast to bf16 here)
    weights     : bf16, (in, out) layout; latent dims zero-padded to 128
    biases      : f32,  (1, out)
    enc_out_ref : (TB, 3)    f32
    dec_out_ref : (TB, 784)  f32
    """
    params = refs[:16]
    enc_ref, dec_ref = refs[16], refs[17]

    h = x_ref[...].astype(jnp.bfloat16)                    # (TB, 784) bf16

    # --- encoder: Linear->ReLU x3, then Linear (latent, padded to 128 cols) ---
    for li in range(4):
        w = params[2 * li][...]                            # bf16 (in, out)
        b = params[2 * li + 1][...]                        # f32  (1, out)
        h = jnp.dot(h, w, preferred_element_type=jnp.float32) + b
        if li < 3:
            h = jnp.maximum(h, 0.0).astype(jnp.bfloat16)
    # h: (TB, 128) f32, columns 3..127 are exactly 0 (zero-padded w3/b3).
    enc_ref[...] = h[:, :LATENT]                           # (TB, 3) f32

    h = h.astype(jnp.bfloat16)
    # --- decoder: Linear->ReLU x3, then Linear->Sigmoid ---
    for li in range(4):
        w = params[8 + 2 * li][...]
        b = params[8 + 2 * li + 1][...]
        h32 = jnp.dot(h, w, preferred_element_type=jnp.float32) + b
        if li < 3:
            h = jnp.maximum(h32, 0.0).astype(jnp.bfloat16)
        else:
            # sigmoid(x) = 1 / (1 + exp(-x)); exp + approx reciprocal both hit
            # the EUP slot (no where/select VPU work).  Clip avoids exp overflow.
            z = jnp.exp(-jnp.clip(h32, -30.0, 30.0))
            dec_ref[...] = pl.reciprocal(1.0 + z, approx=True).astype(dec_ref.dtype)


def _prepare_params(flat_params):
    """Cast weights to bf16; zero-pad the latent dim to 128 (exact math)."""
    pp = []
    for li in range(8):
        w = flat_params[2 * li].astype(jnp.float32)
        b = flat_params[2 * li + 1].astype(jnp.float32)
        if li == 3:     # encoder last layer: latent 3 -> 128 output cols (zeros)
            w = jnp.pad(w, ((0, 0), (0, LATENT_PAD - LATENT)))
            b = jnp.pad(b, ((0, 0), (0, LATENT_PAD - LATENT)))
        if li == 4:     # decoder first layer: latent 3 -> 128 input rows (zeros)
            w = jnp.pad(w, ((0, LATENT_PAD - LATENT), (0, 0)))
        pp.append(w.astype(jnp.bfloat16))   # weights: bf16 (native MXU input)
        pp.append(b)                        # biases : f32 (elementwise stays f32)
    return pp


def _round_up(n, m):
    return ((n + m - 1) // m) * m


@functools.partial(jax.jit, static_argnames=("tb",))
def ae_forward(x, flat_params, tb=1024):
    """AEModel forward. x: (B, 784) float. Returns (encoded (B,3), decoded (B,784))."""
    B = x.shape[0]
    # Batch tile: multiple of 8, and capped so there are >=2 grid tiles whenever
    # B allows it (both v7x TensorCores get work via dimension_semantics parallel).
    tb_eff = min(tb, _round_up(pl.cdiv(B, 2), 8))
    grid = (pl.cdiv(B, tb_eff),)   # ragged edge block handled by Pallas masking

    pp = _prepare_params(flat_params)

    in_specs = [pl.BlockSpec((tb_eff, IN_DIM), lambda i: (i, 0))]
    # Weights/biases: full-array blocks with constant index_map -> fetched once,
    # resident in VMEM across all batch tiles.
    in_specs += [pl.BlockSpec(p.shape, lambda i: (0, 0)) for p in pp]
    out_specs = (
        pl.BlockSpec((tb_eff, LATENT), lambda i: (i, 0)),
        pl.BlockSpec((tb_eff, IN_DIM), lambda i: (i, 0)),
    )
    out_shape = (
        jax.ShapeDtypeStruct((B, LATENT), jnp.float32),
        jax.ShapeDtypeStruct((B, IN_DIM), jnp.float32),
    )

    dims = list(zip(ENC_DIMS[:-1], ENC_DIMS[1:])) + list(zip(DEC_DIMS[:-1], DEC_DIMS[1:]))
    flops = 2 * B * sum(fi * fo for fi, fo in dims)
    param_bytes = sum(p.size * p.dtype.itemsize for p in pp)
    bytes_accessed = 4 * B * IN_DIM * 2 + 4 * B * LATENT + param_bytes

    enc, dec = pl.pallas_call(
        _ae_kernel,
        grid=grid,
        in_specs=in_specs,
        out_specs=out_specs,
        out_shape=out_shape,
        compiler_params=pltpu.CompilerParams(
            dimension_semantics=("parallel",),     # batch tiles over TCs
            vmem_limit_bytes=64 * 1024 * 1024),    # tb=1024 f32 in/out + params
        cost_estimate=pl.CostEstimate(
            flops=flops,
            transcendentals=B * IN_DIM,
            bytes_accessed=bytes_accessed),
    )(x, *pp)
    return enc, dec


def init_params(key):
    """Params mimicking PyTorch Linear default init U(-1/sqrt(fan_in), +...).

    Returns flat list [w0, b0, ..., w7, b7]; w stored as (in, out), b as (1, out)."""
    params = []
    dims = list(zip(ENC_DIMS[:-1], ENC_DIMS[1:])) + list(zip(DEC_DIMS[:-1], DEC_DIMS[1:]))
    for (fan_in, fan_out) in dims:
        key, kw, kb = jax.random.split(key, 3)
        bound = 1.0 / (fan_in ** 0.5)
        w = jax.random.uniform(kw, (fan_in, fan_out), jnp.float32, -bound, bound)
        b = jax.random.uniform(kb, (1, fan_out), jnp.float32, -bound, bound)
        params += [w, b]
    return params


def ae_forward_ref(x, flat_params):
    """Pure-JAX f32 reference for correctness checking."""
    h = x
    for li in range(4):
        w, b = flat_params[2 * li], flat_params[2 * li + 1]
        h = h @ w + b
        if li < 3:
            h = jnp.maximum(h, 0.0)
    enc = h
    for li in range(4):
        w, b = flat_params[8 + 2 * li], flat_params[8 + 2 * li + 1]
        h = h @ w + b
        if li < 3:
            h = jnp.maximum(h, 0.0)
        else:
            h = jax.nn.sigmoid(h)
    return enc, h


if __name__ == "__main__":
    key = jax.random.PRNGKey(0)
    key_x, key_p = jax.random.split(key)

    B = 200  # exercises a 2-tile batch grid (tb_eff=104) + a ragged edge block
    x = jax.random.uniform(key_x, (B, IN_DIM), jnp.float32)  # MNIST-like pixels in [0,1)
    flat_params = init_params(key_p)

    enc, dec = ae_forward(x, flat_params, tb=128)
    jax.block_until_ready((enc, dec))

    # sanity check against pure-JAX f32 reference (bf16 weights/acts -> loose tol)
    enc_ref, dec_ref = ae_forward_ref(x, flat_params)
    assert enc.shape == (B, LATENT) and dec.shape == (B, IN_DIM)
    assert enc.dtype == jnp.float32 and dec.dtype == jnp.float32
    assert jnp.allclose(enc, enc_ref, atol=2e-2, rtol=2e-2), \
        float(jnp.max(jnp.abs(enc - enc_ref)))
    assert jnp.allclose(dec, dec_ref, atol=2e-2, rtol=2e-2), \
        float(jnp.max(jnp.abs(dec - dec_ref)))

    print("KERNEL_OK")
</pallas_src>

<mosaic_0001>
module attributes {stable_mosaic.version = 11 : i64} {
  func.func @_ae_kernel(%arg0: i32, %arg1: memref<104x784xf32, #tpu.memory_space<vmem>>, %arg2: memref<784x128xbf16, #tpu.memory_space<vmem>>, %arg3: memref<1x128xf32, #tpu.memory_space<vmem>>, %arg4: memref<128x64xbf16, #tpu.memory_space<vmem>>, %arg5: memref<1x64xf32, #tpu.memory_space<vmem>>, %arg6: memref<64x12xbf16, #tpu.memory_space<vmem>>, %arg7: memref<1x12xf32, #tpu.memory_space<vmem>>, %arg8: memref<12x128xbf16, #tpu.memory_space<vmem>>, %arg9: memref<1x128xf32, #tpu.memory_space<vmem>>, %arg10: memref<128x12xbf16, #tpu.memory_space<vmem>>, %arg11: memref<1x12xf32, #tpu.memory_space<vmem>>, %arg12: memref<12x64xbf16, #tpu.memory_space<vmem>>, %arg13: memref<1x64xf32, #tpu.memory_space<vmem>>, %arg14: memref<64x128xbf16, #tpu.memory_space<vmem>>, %arg15: memref<1x128xf32, #tpu.memory_space<vmem>>, %arg16: memref<128x784xbf16, #tpu.memory_space<vmem>>, %arg17: memref<1x784xf32, #tpu.memory_space<vmem>>, %arg18: memref<104x3xf32, #tpu.memory_space<vmem>>, %arg19: memref<104x784xf32, #tpu.memory_space<vmem>>) attributes {dimension_semantics = [#tpu.dimension_semantics<parallel>], iteration_bounds = array<i64: 2>, scalar_prefetch = 0 : i64, scratch_operands = 0 : i64, tpu.core_type = #tpu.core_type<tc>, window_params = [{transform_indices = @transform_0, window_bounds = array<i64: 104, 784>}, {pipeline_mode = #tpu.pipeline_mode<synchronous>, transform_indices = @transform_1, window_bounds = array<i64: 784, 128>}, {pipeline_mode = #tpu.pipeline_mode<synchronous>, transform_indices = @transform_2, window_bounds = array<i64: 1, 128>}, {pipeline_mode = #tpu.pipeline_mode<synchronous>, transform_indices = @transform_3, window_bounds = array<i64: 128, 64>}, {pipeline_mode = #tpu.pipeline_mode<synchronous>, transform_indices = @transform_4, window_bounds = array<i64: 1, 64>}, {pipeline_mode = #tpu.pipeline_mode<synchronous>, transform_indices = @transform_5, window_bounds = array<i64: 64, 12>}, {pipeline_mode = #tpu.pipeline_mode<synchronous>, transform_indices = @transform_6, window_bounds = array<i64: 1, 12>}, {pipeline_mode = #tpu.pipeline_mode<synchronous>, transform_indices = @transform_7, window_bounds = array<i64: 12, 128>}, {pipeline_mode = #tpu.pipeline_mode<synchronous>, transform_indices = @transform_8, window_bounds = array<i64: 1, 128>}, {pipeline_mode = #tpu.pipeline_mode<synchronous>, transform_indices = @transform_9, window_bounds = array<i64: 128, 12>}, {pipeline_mode = #tpu.pipeline_mode<synchronous>, transform_indices = @transform_10, window_bounds = array<i64: 1, 12>}, {pipeline_mode = #tpu.pipeline_mode<synchronous>, transform_indices = @transform_11, window_bounds = array<i64: 12, 64>}, {pipeline_mode = #tpu.pipeline_mode<synchronous>, transform_indices = @transform_12, window_bounds = array<i64: 1, 64>}, {pipeline_mode = #tpu.pipeline_mode<synchronous>, transform_indices = @transform_13, window_bounds = array<i64: 64, 128>}, {pipeline_mode = #tpu.pipeline_mode<synchronous>, transform_indices = @transform_14, window_bounds = array<i64: 1, 128>}, {pipeline_mode = #tpu.pipeline_mode<synchronous>, transform_indices = @transform_15, window_bounds = array<i64: 128, 784>}, {pipeline_mode = #tpu.pipeline_mode<synchronous>, transform_indices = @transform_16, window_bounds = array<i64: 1, 784>}, {transform_indices = @transform_17, window_bounds = array<i64: 104, 3>}, {transform_indices = @transform_18, window_bounds = array<i64: 104, 784>}]} {
    %c0 = arith.constant 0 : index
    %c0_0 = arith.constant 0 : index
    %0 = vector.load %arg1[%c0, %c0_0] : memref<104x784xf32, #tpu.memory_space<vmem>>, vector<104x784xf32>
    %1 = arith.truncf %0 : vector<104x784xf32> to vector<104x784xbf16>
    %c0_1 = arith.constant 0 : index
    %c0_2 = arith.constant 0 : index
    %2 = vector.load %arg2[%c0_1, %c0_2] : memref<784x128xbf16, #tpu.memory_space<vmem>>, vector<784x128xbf16>
    %c0_3 = arith.constant 0 : index
    %c0_4 = arith.constant 0 : index
    %3 = vector.load %arg3[%c0_3, %c0_4] : memref<1x128xf32, #tpu.memory_space<vmem>>, vector<1x128xf32>
    %cst = arith.constant dense<0.000000e+00> : vector<104x128xf32>
    %4 = tpu.matmul %1, %2, %cst {dimension_numbers = #tpu.dot_dimension_numbers<[1], [0], [0], [1], [0, 0, 1, 1], [], []>} : vector<104x784xbf16>, vector<784x128xbf16>, vector<104x128xf32> -> vector<104x128xf32>
    %5 = vector.broadcast %3 : vector<1x128xf32> to vector<104x128xf32>
    %6 = arith.addf %4, %5 : vector<104x128xf32>
    %cst_5 = arith.constant 0.000000e+00 : f32
    %7 = vector.broadcast %cst_5 : f32 to vector<104x128xf32>
    %8 = arith.maximumf %6, %7 : vector<104x128xf32>
    %9 = arith.truncf %8 : vector<104x128xf32> to vector<104x128xbf16>
    %c0_6 = arith.constant 0 : index
    %c0_7 = arith.constant 0 : index
    %10 = vector.load %arg4[%c0_6, %c0_7] : memref<128x64xbf16, #tpu.memory_space<vmem>>, vector<128x64xbf16>
    %c0_8 = arith.constant 0 : index
    %c0_9 = arith.constant 0 : index
    %11 = vector.load %arg5[%c0_8, %c0_9] : memref<1x64xf32, #tpu.memory_space<vmem>>, vector<1x64xf32>
    %cst_10 = arith.constant dense<0.000000e+00> : vector<104x64xf32>
    %12 = tpu.matmul %9, %10, %cst_10 {dimension_numbers = #tpu.dot_dimension_numbers<[1], [0], [0], [1], [0, 0, 1, 1], [], []>} : vector<104x128xbf16>, vector<128x64xbf16>, vector<104x64xf32> -> vector<104x64xf32>
    %13 = vector.broadcast %11 : vector<1x64xf32> to vector<104x64xf32>
    %14 = arith.addf %12, %13 : vector<104x64xf32>
    %cst_11 = arith.constant 0.000000e+00 : f32
    %15 = vector.broadcast %cst_11 : f32 to vector<104x64xf32>
    %16 = arith.maximumf %14, %15 : vector<104x64xf32>
    %17 = arith.truncf %16 : vector<104x64xf32> to vector<104x64xbf16>
    %c0_12 = arith.constant 0 : index
    %c0_13 = arith.constant 0 : index
    %18 = vector.load %arg6[%c0_12, %c0_13] : memref<64x12xbf16, #tpu.memory_space<vmem>>, vector<64x12xbf16>
    %c0_14 = arith.constant 0 : index
    %c0_15 = arith.constant 0 : index
    %19 = vector.load %arg7[%c0_14, %c0_15] : memref<1x12xf32, #tpu.memory_space<vmem>>, vector<1x12xf32>
    %cst_16 = arith.constant dense<0.000000e+00> : vector<104x12xf32>
    %20 = tpu.matmul %17, %18, %cst_16 {dimension_numbers = #tpu.dot_dimension_numbers<[1], [0], [0], [1], [0, 0, 1, 1], [], []>} : vector<104x64xbf16>, vector<64x12xbf16>, vector<104x12xf32> -> vector<104x12xf32>
    %21 = vector.broadcast %19 : vector<1x12xf32> to vector<104x12xf32>
    %22 = arith.addf %20, %21 : vector<104x12xf32>
    %cst_17 = arith.constant 0.000000e+00 : f32
    %23 = vector.broadcast %cst_17 : f32 to vector<104x12xf32>
    %24 = arith.maximumf %22, %23 : vector<104x12xf32>
    %25 = arith.truncf %24 : vector<104x12xf32> to vector<104x12xbf16>
    %c0_18 = arith.constant 0 : index
    %c0_19 = arith.constant 0 : index
    %26 = vector.load %arg8[%c0_18, %c0_19] : memref<12x128xbf16, #tpu.memory_space<vmem>>, vector<12x128xbf16>
    %c0_20 = arith.constant 0 : index
    %c0_21 = arith.constant 0 : index
    %27 = vector.load %arg9[%c0_20, %c0_21] : memref<1x128xf32, #tpu.memory_space<vmem>>, vector<1x128xf32>
    %cst_22 = arith.constant dense<0.000000e+00> : vector<104x128xf32>
    %28 = tpu.matmul %25, %26, %cst_22 {dimension_numbers = #tpu.dot_dimension_numbers<[1], [0], [0], [1], [0, 0, 1, 1], [], []>} : vector<104x12xbf16>, vector<12x128xbf16>, vector<104x128xf32> -> vector<104x128xf32>
    %29 = vector.broadcast %27 : vector<1x128xf32> to vector<104x128xf32>
    %30 = arith.addf %28, %29 : vector<104x128xf32>
    %31 = vector.extract_strided_slice %30 {offsets = [0, 0], sizes = [104, 3], strides = [1, 1]} : vector<104x128xf32> to vector<104x3xf32>
    %c0_23 = arith.constant 0 : index
    %c0_24 = arith.constant 0 : index
    %32 = vector.load %arg18[%c0_23, %c0_24] : memref<104x3xf32, #tpu.memory_space<vmem>>, vector<104x3xf32>
    tpu.vector_store %arg18[%c0_23, %c0_24], %31 {strides = array<i32>} : memref<104x3xf32, #tpu.memory_space<vmem>>, vector<104x3xf32>,
    %33 = arith.truncf %30 : vector<104x128xf32> to vector<104x128xbf16>
    %c0_25 = arith.constant 0 : index
    %c0_26 = arith.constant 0 : index
    %34 = vector.load %arg10[%c0_25, %c0_26] : memref<128x12xbf16, #tpu.memory_space<vmem>>, vector<128x12xbf16>
    %c0_27 = arith.constant 0 : index
    %c0_28 = arith.constant 0 : index
    %35 = vector.load %arg11[%c0_27, %c0_28] : memref<1x12xf32, #tpu.memory_space<vmem>>, vector<1x12xf32>
    %cst_29 = arith.constant dense<0.000000e+00> : vector<104x12xf32>
    %36 = tpu.matmul %33, %34, %cst_29 {dimension_numbers = #tpu.dot_dimension_numbers<[1], [0], [0], [1], [0, 0, 1, 1], [], []>} : vector<104x128xbf16>, vector<128x12xbf16>, vector<104x12xf32> -> vector<104x12xf32>
    %37 = vector.broadcast %35 : vector<1x12xf32> to vector<104x12xf32>
    %38 = arith.addf %36, %37 : vector<104x12xf32>
    %cst_30 = arith.constant 0.000000e+00 : f32
    %39 = vector.broadcast %cst_30 : f32 to vector<104x12xf32>
    %40 = arith.maximumf %38, %39 : vector<104x12xf32>
    %41 = arith.truncf %40 : vector<104x12xf32> to vector<104x12xbf16>
    %c0_31 = arith.constant 0 : index
    %c0_32 = arith.constant 0 : index
    %42 = vector.load %arg12[%c0_31, %c0_32] : memref<12x64xbf16, #tpu.memory_space<vmem>>, vector<12x64xbf16>
    %c0_33 = arith.constant 0 : index
    %c0_34 = arith.constant 0 : index
    %43 = vector.load %arg13[%c0_33, %c0_34] : memref<1x64xf32, #tpu.memory_space<vmem>>, vector<1x64xf32>
    %cst_35 = arith.constant dense<0.000000e+00> : vector<104x64xf32>
    %44 = tpu.matmul %41, %42, %cst_35 {dimension_numbers = #tpu.dot_dimension_numbers<[1], [0], [0], [1], [0, 0, 1, 1], [], []>} : vector<104x12xbf16>, vector<12x64xbf16>, vector<104x64xf32> -> vector<104x64xf32>
    %45 = vector.broadcast %43 : vector<1x64xf32> to vector<104x64xf32>
    %46 = arith.addf %44, %45 : vector<104x64xf32>
    %cst_36 = arith.constant 0.000000e+00 : f32
    %47 = vector.broadcast %cst_36 : f32 to vector<104x64xf32>
    %48 = arith.maximumf %46, %47 : vector<104x64xf32>
    %49 = arith.truncf %48 : vector<104x64xf32> to vector<104x64xbf16>
    %c0_37 = arith.constant 0 : index
    %c0_38 = arith.constant 0 : index
    %50 = vector.load %arg14[%c0_37, %c0_38] : memref<64x128xbf16, #tpu.memory_space<vmem>>, vector<64x128xbf16>
    %c0_39 = arith.constant 0 : index
    %c0_40 = arith.constant 0 : index
    %51 = vector.load %arg15[%c0_39, %c0_40] : memref<1x128xf32, #tpu.memory_space<vmem>>, vector<1x128xf32>
    %cst_41 = arith.constant dense<0.000000e+00> : vector<104x128xf32>
    %52 = tpu.matmul %49, %50, %cst_41 {dimension_numbers = #tpu.dot_dimension_numbers<[1], [0], [0], [1], [0, 0, 1, 1], [], []>} : vector<104x64xbf16>, vector<64x128xbf16>, vector<104x128xf32> -> vector<104x128xf32>
    %53 = vector.broadcast %51 : vector<1x128xf32> to vector<104x128xf32>
    %54 = arith.addf %52, %53 : vector<104x128xf32>
    %cst_42 = arith.constant 0.000000e+00 : f32
    %55 = vector.broadcast %cst_42 : f32 to vector<104x128xf32>
    %56 = arith.maximumf %54, %55 : vector<104x128xf32>
    %57 = arith.truncf %56 : vector<104x128xf32> to vector<104x128xbf16>
    %c0_43 = arith.constant 0 : index
    %c0_44 = arith.constant 0 : index
    %58 = vector.load %arg16[%c0_43, %c0_44] : memref<128x784xbf16, #tpu.memory_space<vmem>>, vector<128x784xbf16>
    %c0_45 = arith.constant 0 : index
    %c0_46 = arith.constant 0 : index
    %59 = vector.load %arg17[%c0_45, %c0_46] : memref<1x784xf32, #tpu.memory_space<vmem>>, vector<1x784xf32>
    %cst_47 = arith.constant dense<0.000000e+00> : vector<104x784xf32>
    %60 = tpu.matmul %57, %58, %cst_47 {dimension_numbers = #tpu.dot_dimension_numbers<[1], [0], [0], [1], [0, 0, 1, 1], [], []>} : vector<104x128xbf16>, vector<128x784xbf16>, vector<104x784xf32> -> vector<104x784xf32>
    %61 = vector.broadcast %59 : vector<1x784xf32> to vector<104x784xf32>
    %62 = arith.addf %60, %61 : vector<104x784xf32>
    %cst_48 = arith.constant -3.000000e+01 : f32
    %cst_49 = arith.constant 3.000000e+01 : f32
    %63 = vector.broadcast %cst_48 : f32 to vector<104x784xf32>
    %64 = arith.maximumf %63, %62 : vector<104x784xf32>
    %65 = vector.broadcast %cst_49 : f32 to vector<104x784xf32>
    %66 = arith.minimumf %65, %64 : vector<104x784xf32>
    %cst_50 = arith.constant 0.000000e+00 : f32
    %67 = vector.broadcast %cst_50 : f32 to vector<104x784xf32>
    %68 = arith.subf %67, %66 : vector<104x784xf32>
    %69 = math.exp %68 : vector<104x784xf32>
    %cst_51 = arith.constant 1.000000e+00 : f32
    %70 = vector.broadcast %cst_51 : f32 to vector<104x784xf32>
    %71 = arith.addf %70, %69 : vector<104x784xf32>
    %72 = tpu.reciprocal %71 {approx = true} : vector<104x784xf32> -> vector<104x784xf32>
    %c0_52 = arith.constant 0 : index
    %c0_53 = arith.constant 0 : index
    %73 = vector.load %arg19[%c0_52, %c0_53] : memref<104x784xf32, #tpu.memory_space<vmem>>, vector<104x784xf32>
    tpu.vector_store %arg19[%c0_52, %c0_53], %72 {strides = array<i32>} : memref<104x784xf32, #tpu.memory_space<vmem>>, vector<104x784xf32>,
    return
  }
  func.func @transform_0(%arg0: i32) -> (i32, i32) {
    %c0_i32 = arith.constant 0 : i32
    %c0_i32_0 = arith.constant 0 : i32
    return %arg0, %c0_i32 : i32, i32
  }
  func.func @transform_1(%arg0: i32) -> (i32, i32) {
    %c0_i32 = arith.constant 0 : i32
    %c0_i32_0 = arith.constant 0 : i32
    %c0_i32_1 = arith.constant 0 : i32
    return %c0_i32, %c0_i32_0 : i32, i32
  }
  func.func @transform_2(%arg0: i32) -> (i32, i32) {
    %c0_i32 = arith.constant 0 : i32
    %c0_i32_0 = arith.constant 0 : i32
    %c0_i32_1 = arith.constant 0 : i32
    return %c0_i32, %c0_i32_0 : i32, i32
  }
  func.func @transform_3(%arg0: i32) -> (i32, i32) {
    %c0_i32 = arith.constant 0 : i32
    %c0_i32_0 = arith.constant 0 : i32
    %c0_i32_1 = arith.constant 0 : i32
    return %c0_i32, %c0_i32_0 : i32, i32
  }
  func.func @transform_4(%arg0: i32) -> (i32, i32) {
    %c0_i32 = arith.constant 0 : i32
    %c0_i32_0 = arith.constant 0 : i32
    %c0_i32_1 = arith.constant 0 : i32
    return %c0_i32, %c0_i32_0 : i32, i32
  }
  func.func @transform_5(%arg0: i32) -> (i32, i32) {
    %c0_i32 = arith.constant 0 : i32
    %c0_i32_0 = arith.constant 0 : i32
    %c0_i32_1 = arith.constant 0 : i32
    return %c0_i32, %c0_i32_0 : i32, i32
  }
  func.func @transform_6(%arg0: i32) -> (i32, i32) {
    %c0_i32 = arith.constant 0 : i32
    %c0_i32_0 = arith.constant 0 : i32
    %c0_i32_1 = arith.constant 0 : i32
    return %c0_i32, %c0_i32_0 : i32, i32
  }
  func.func @transform_7(%arg0: i32) -> (i32, i32) {
    %c0_i32 = arith.constant 0 : i32
    %c0_i32_0 = arith.constant 0 : i32
    %c0_i32_1 = arith.constant 0 : i32
    return %c0_i32, %c0_i32_0 : i32, i32
  }
  func.func @transform_8(%arg0: i32) -> (i32, i32) {
    %c0_i32 = arith.constant 0 : i32
    %c0_i32_0 = arith.constant 0 : i32
    %c0_i32_1 = arith.constant 0 : i32
    return %c0_i32, %c0_i32_0 : i32, i32
  }
  func.func @transform_9(%arg0: i32) -> (i32, i32) {
    %c0_i32 = arith.constant 0 : i32
    %c0_i32_0 = arith.constant 0 : i32
    %c0_i32_1 = arith.constant 0 : i32
    return %c0_i32, %c0_i32_0 : i32, i32
  }
  func.func @transform_10(%arg0: i32) -> (i32, i32) {
    %c0_i32 = arith.constant 0 : i32
    %c0_i32_0 = arith.constant 0 : i32
    %c0_i32_1 = arith.constant 0 : i32
    return %c0_i32, %c0_i32_0 : i32, i32
  }
  func.func @transform_11(%arg0: i32) -> (i32, i32) {
    %c0_i32 = arith.constant 0 : i32
    %c0_i32_0 = arith.constant 0 : i32
    %c0_i32_1 = arith.constant 0 : i32
    return %c0_i32, %c0_i32_0 : i32, i32
  }
  func.func @transform_12(%arg0: i32) -> (i32, i32) {
    %c0_i32 = arith.constant 0 : i32
    %c0_i32_0 = arith.constant 0 : i32
    %c0_i32_1 = arith.constant 0 : i32
    return %c0_i32, %c0_i32_0 : i32, i32
  }
  func.func @transform_13(%arg0: i32) -> (i32, i32) {
    %c0_i32 = arith.constant 0 : i32
    %c0_i32_0 = arith.constant 0 : i32
    %c0_i32_1 = arith.constant 0 : i32
    return %c0_i32, %c0_i32_0 : i32, i32
  }
  func.func @transform_14(%arg0: i32) -> (i32, i32) {
    %c0_i32 = arith.constant 0 : i32
    %c0_i32_0 = arith.constant 0 : i32
    %c0_i32_1 = arith.constant 0 : i32
    return %c0_i32, %c0_i32_0 : i32, i32
  }
  func.func @transform_15(%arg0: i32) -> (i32, i32) {
    %c0_i32 = arith.constant 0 : i32
    %c0_i32_0 = arith.constant 0 : i32
    %c0_i32_1 = arith.constant 0 : i32
    return %c0_i32, %c0_i32_0 : i32, i32
  }
  func.func @transform_16(%arg0: i32) -> (i32, i32) {
    %c0_i32 = arith.constant 0 : i32
    %c0_i32_0 = arith.constant 0 : i32
    %c0_i32_1 = arith.constant 0 : i32
    return %c0_i32, %c0_i32_0 : i32, i32
  }
  func.func @transform_17(%arg0: i32) -> (i32, i32) {
    %c0_i32 = arith.constant 0 : i32
    %c0_i32_0 = arith.constant 0 : i32
    return %arg0, %c0_i32 : i32, i32
  }
  func.func @transform_18(%arg0: i32) -> (i32, i32) {
    %c0_i32 = arith.constant 0 : i32
    %c0_i32_0 = arith.constant 0 : i32
    return %arg0, %c0_i32 : i32, i32
  }
}

</mosaic_0001>

<bundles_post_ra>
// kernel: ae_forward.1
= control target key start
LH: loop header
LB: loop body
LE: loop exit
PB: predicated region body
PF: predicated region fallthrough
CT: control target
= control target key end

     0   :  { %s8477_s0 = inlined_call_operand.hbm [shape: f32[200,784], index: 0, kind: input, shape index: {}]   ;;  %s8478_s1 = inlined_call_operand.hbm [shape: bf16[784,128], index: 1, kind: input, shape index: {}]   ;;  %s8479_s2 = inlined_call_operand.hbm [shape: f32[1,128], index: 2, kind: input, shape index: {}]   ;;  %s8480_s3 = inlined_call_operand.hbm [shape: bf16[128,64], index: 3, kind: input, shape index: {}]   ;;  %s8481_s4 = inlined_call_operand.hbm [shape: f32[1,64], index: 4, kind: input, shape index: {}]   ;;  %s8482_s5 = inlined_call_operand.hbm [shape: bf16[64,12], index: 5, kind: input, shape index: {}]   ;;  %s8483_s6 = inlined_call_operand.hbm [shape: f32[1,12], index: 6, kind: input, shape index: {}]   ;;  %s8484_s7 = inlined_call_operand.hbm [shape: bf16[12,128], index: 7, kind: input, shape index: {}]   ;;  %s8485_s8 = inlined_call_operand.hbm [shape: f32[1,128], index: 8, kind: input, shape index: {}]   ;;  %s8486_s9 = inlined_call_operand.hbm [shape: bf16[128,12], index: 9, kind: input, shape index: {}]   ;;  %s8487_s10 = inlined_call_operand.hbm [shape: f32[1,12], index: 10, kind: input, shape index: {}]   ;;  %s8488_s11 = inlined_call_operand.hbm [shape: bf16[12,64], index: 11, kind: input, shape index: {}]   ;;  %s8489_s12 = inlined_call_operand.hbm [shape: f32[1,64], index: 12, kind: input, shape index: {}]   ;;  %s8490_s13 = inlined_call_operand.hbm [shape: bf16[64,128], index: 13, kind: input, shape index: {}]   ;;  %s8491_s14 = inlined_call_operand.hbm [shape: f32[1,128], index: 14, kind: input, shape index: {}]   ;;  %s8492_s15 = inlined_call_operand.hbm [shape: bf16[128,784], index: 15, kind: input, shape index: {}]   ;;  %s8493_s16 = inlined_call_operand.hbm [shape: f32[1,784], index: 16, kind: input, shape index: {}]   ;;  %s8494_s17 = inlined_call_operand.hbm [shape: f32[200,3], index: 17, kind: output, shape index: {0}]   ;;  %s8495_s18 = inlined_call_operand.hbm [shape: f32[200,784], index: 18, kind: output, shape index: {1}]  }
   0x1   :  { %8523 = sst [smem:[#allocation55_spill]] %s8477_s0 }
   0x2   :  { %8524 = sst [smem:[#allocation56_spill]] %s8478_s1 }
   0x3   :  { %8525 = sst [smem:[#allocation57_spill]] %s8479_s2 }
   0x4   :  { %8526 = sst [smem:[#allocation58_spill]] %s8480_s3 }
   0x5   :  { %8527 = sst [smem:[#allocation59_spill]] %s8482_s5 }
   0x6   :  { %8528 = sst [smem:[#allocation60_spill]] %s8494_s17 }
   0x7   :  { %8529 = sst [smem:[#allocation61_spill]] %s8495_s18 }
   0x8   :  { %24 = vsyncpa [#allocation3], 0 }
   0x9   :  { %26 = vsyncpa [#allocation3 + $0x1], 0 }
   0xa   :  { %27 = vsyncpa [#allocation6], 0 }
   0xb   :  { %28 = vsyncpa [#allocation9], 0 }
   0xc   :  { %29 = vsyncpa [#allocation12], 0 }
   0xd   :  { %30 = vsyncpa [#allocation15], 0 }
   0xe   :  { %31 = vsyncpa [#allocation18], 0 }
   0xf   :  { %32 = vsyncpa [#allocation21], 0 }
  0x10   :  { %33 = vsyncpa [#allocation24], 0 }
  0x11   :  { %34 = vsyncpa [#allocation27], 0 }
  0x12   :  { %35 = vsyncpa [#allocation4], 0 }
  0x13   :  { %37 = vsyncpa [#allocation4 + $0x1], 0 }
  0x14   :  { %38 = vsyncpa [#allocation31], 0 }
  0x15   :  { %40 = vsyncpa [#allocation31 + $0x1], 0  ;;  %s6940_s27 = smov 0   ;;  %s6942_s28 = smov 0  }
  0x16   :  { %s6944_s29 = smov 0   ;;  %s6946_s30 = smov 0  }
  0x17 LB: > { %8530 = sst [smem:[#allocation43_spill]] %s6799_s27  ;;  %s6961_s0 = sadd.s32 4294967295, %s6811_s30   ;;  %s6811_s30 = sphi %s6946_s30, %s8593_s30   ;;  %s6807_s29 = sphi %s6944_s29, %s8596_s29   ;;  %s6803_s28 = sphi %s6942_s28, %s8595_s28   ;;  %s6799_s27 = sphi %s6940_s27, %s8594_s27  }
  0x18   : > { %8531 = sst [smem:[#allocation44_spill]] %s6803_s28  ;;  %s4584_s19 = sadd.s32 4294967294, %s6811_s30  }
  0x19   : > { %8532 = sst [smem:[#allocation45_spill]] %s6807_s29  ;;  %s6965_s1 = sadd.s32 1, %s6811_s30  }
  0x1a   : > { %8533 = sst [smem:[#allocation46_spill]] %s6811_s30  ;;  %s53_s20 = sadd.s32 1, %s6807_s29 }
  0x1b   : > { %8534 = sst [smem:[#allocation47_spill]] %s6961_s0  ;;  %s50_s21 = ssub.s32 %s6811_s30, %s6965_s1 }
  0x1c   : > { %8535 = sst [smem:[#allocation48_spill]] %s6965_s1  ;;  %p60_p0 = scmp.ne.s32.totalorder %s6807_s29, %s6803_s28 }
  0x1d   : > { %p51_p1 = scmp.eq.s32.totalorder %s50_s21, 0  ;;  %p61_p2 = scmp.eq.s32.totalorder %s6811_s30, 0 }
  0x1e   : > { %p66_p3 = scmp.ne.s32.totalorder %s6803_s28, %s6799_s27  ;;  %p8512_p4 = scmp.eq.s32.totalorder %s6961_s0, 0 }
  0x1f   : > { %s6977_s22 = scalar_select %p51_p1, %s6807_s29, %s53_s20  }
  0x20   : > { %p6979_p5 = por %p61_p2, %p60_p0  ;;  %p6985_p6 = por %p8512_p4, %p66_p3 }
  0x21   : > { %8536 = sst [smem:[#allocation49_spill]] %s6977_s22  ;;  %p426_p7 = scmp.eq.s32.totalorder %s6961_s0, 1 }
  0x22   : > { %s8537_s2 = scalar_select %p6979_p5, 1, 0 }
  0x23   : > { %s8539_s23 = scalar_select %p6985_p6, 1, 0 }
  0x24   : > { %8538 = sst [smem:[#allocation50_spill]] %s8537_s2  ;;  %p432_p8 = scmp.eq.s32.totalorder %s4584_s19, 1 }
  0x25   : > { %8540 = sst [smem:[#allocation51_spill]] %s8539_s23  ;;  %p4585_p9 = scmp.ge.s32.totalorder %s6811_s30, 1 }
  0x26   : > { %p465_p10 = scmp.lt.s32.totalorder %s6811_s30, 3  ;;  %p6992_p11 = por %p426_p7, %p60_p0 }
  0x27   : > { %p6996_p12 = por %p432_p8, %p66_p3  ;;  %s6813_s20 = smov [#allocation5]  }
  0x28   : > { %s8541_s24 = scalar_select %p6992_p11, 1, 0 }
  0x29   : > { %s8543_s25 = scalar_select %p6996_p12, 1, 0 }
  0x2a   : > { %8542 = sst [smem:[#allocation52_spill]] %s8541_s24  ;;  %p7000_p13 = pnand %p4585_p9, %p465_p10 }
  0x2b   : > { %8544 = sst [smem:[#allocation53_spill]] %s8543_s25  ;;  %s477_s21 = sshll.u32 %s6813_s20, 4  ;;  %s478_s21 = int_to_ptr.vmem [resolvable:$true] %s477_s21 }
  0x2c   : > { %s8545_s26 = scalar_select %p7000_p13, 1, 0 }
  0x2d   : > { %p5533_p1 = pneg %p7000_p13  ;;  %s6814_s22 = smov [#allocation8]  }
  0x2e   : > { %8546 = sst [smem:[#allocation54_spill]] %s8545_s26  ;;  %s501_s1 = sshll.u32 %s6814_s22, 4  ;;  %s7012_s1 = int_to_ptr.vmem [resolvable:$true] %s501_s1 }
  0x2f   : > { %p7008_p2 = pnand %p5533_p1, %p8512_p4  ;;  %s8548_s18 = sld [smem:[#allocation56_spill]] }
  0x31   : > { %p7022_p3 = pneg %p7008_p2 }
  0x35   : > { %s6205_s17 = scalar_lea.hbm %s8548_s18, 6272 }
  0x36   : > { %p6206_p0 = scmp.ne.s32.totalorder %s8548_s18, %s6205_s17  ;;  %p6212_p9 = scmp.lt.u32.totalorder %s6205_s17, %s8548_s18 }
  0x38   : > { %p6208_p7 = pnand %p7022_p3, %p6206_p0 }
  0x3a   : > { %p6209_p8 = pneg %p6208_p7 }
  0x3c   : > { %p6214_p10 = pnand %p6212_p9, %p6209_p8 }
  0x3e   : > { %6217 = shalt.err (!%p6214_p10)
}
  0x3f   : > { %s6218_s27 = scalar_lea.vmem %s478_s21, 6272  ;;  %p6226_p11 = scmp.lt.s32.totalorder %s478_s21, %s478_s21 }
  0x40   : > { %p6219_p1 = scmp.ne.s32.totalorder %s478_s21, %s6218_s27  ;;  %p6227_p6 = scmp.lt.s32.totalorder %s6218_s27, %s6218_s27 }
  0x42   : > { %p6221_p4 = pnand %p6219_p1, %p7022_p3  ;;  %p6228_p13 = por %p6227_p6, %p6226_p11 }
  0x44   : > { %p6222_p12 = pneg %p6221_p4 }
  0x46   : > { %p6229_p5 = pnand %p6228_p13, %p6222_p12 }
  0x48   : > { %6232 = shalt.err (!%p6229_p5)
}
  0x49   : > { %s6815_s23 = smov 64   ;;  %s6816_s24 = smov 4  }
  0x4a   : > { %5536 = dma.hbm_to_vmem [thread:$0]  (!%p7008_p2), %s8548_s18, 6272, %s478_s21, [#allocation6], %s6815_s23, %s6815_s23, %s6816_s24  }
  0x4b   : > { %s8550_s3 = sld [smem:[#allocation58_spill]] }
  0x51   : > { %s6233_s28 = scalar_lea.hbm %s8550_s3, 1024 }
  0x52   : > { %p6234_p4 = scmp.ne.s32.totalorder %s8550_s3, %s6233_s28  ;;  %p6240_p11 = scmp.lt.u32.totalorder %s6233_s28, %s8550_s3 }
  0x54   : > { %p6236_p5 = pnand %p6234_p4, %p7022_p3 }
  0x56   : > { %p6237_p6 = pneg %p6236_p5 }
  0x58   : > { %p6242_p12 = pnand %p6240_p11, %p6237_p6 }
  0x5a   : > { %6245 = shalt.err (!%p6242_p12)
}
  0x5b   : > { %s6246_s21 = scalar_lea.vmem %s7012_s1, 1024  ;;  %p6254_p8 = scmp.lt.s32.totalorder %s7012_s1, %s7012_s1 }
  0x5c   : > { %p6247_p13 = scmp.ne.s32.totalorder %s7012_s1, %s6246_s21  ;;  %p6255_p9 = scmp.lt.s32.totalorder %s6246_s21, %s6246_s21 }
  0x5e   : > { %p6249_p0 = pnand %p6247_p13, %p7022_p3  ;;  %p6256_p10 = por %p6255_p9, %p6254_p8 }
  0x60   : > { %p6250_p7 = pneg %p6249_p0 }
  0x62   : > { %p6257_p1 = pnand %p6256_p10, %p6250_p7 }
  0x64   : > { %6260 = shalt.err (!%p6257_p1)
}
  0x65   : > { %5542 = dma.hbm_to_vmem [thread:$0]  (!%p7008_p2), %s8550_s3, 1024, %s7012_s1, [#allocation9], %s6815_s23, %s6815_s23, %s6816_s24  }
  0x66   : > { %s6817_s2 = smov [#allocation11]   ;;  %s6818_s17 = smov [#allocation14]  }
  0x67   : > { %s525_s26 = sshll.u32 %s6817_s2, 4  ;;  %s549_s0 = sshll.u32 %s6818_s17, 4  ;;  %s526_s26 = int_to_ptr.vmem [resolvable:$true] %s525_s26  ;;  %s550_s0 = int_to_ptr.vmem [resolvable:$true] %s549_s0 }
  0x68   : > { %s8551_s5 = sld [smem:[#allocation59_spill]] }
  0x6e   : > { %s6261_s27 = scalar_lea.hbm %s8551_s5, 512 }
  0x6f   : > { %p6262_p4 = scmp.ne.s32.totalorder %s8551_s5, %s6261_s27  ;;  %p6268_p11 = scmp.lt.u32.totalorder %s6261_s27, %s8551_s5 }
  0x71   : > { %p6264_p5 = pnand %p6262_p4, %p7022_p3 }
  0x73   : > { %p6265_p6 = pneg %p6264_p5 }
  0x75   : > { %p6270_p12 = pnand %p6268_p11, %p6265_p6 }
  0x77   : > { %6273 = shalt.err (!%p6270_p12)
}
  0x78   : > { %s6274_s1 = scalar_lea.vmem %s526_s26, 512  ;;  %p6282_p8 = scmp.lt.s32.totalorder %s526_s26, %s526_s26 }
  0x79   : > { %p6275_p13 = scmp.ne.s32.totalorder %s526_s26, %s6274_s1  ;;  %p6283_p9 = scmp.lt.s32.totalorder %s6274_s1, %s6274_s1 }
  0x7b   : > { %p6277_p0 = pnand %p6275_p13, %p7022_p3  ;;  %p6284_p10 = por %p6283_p9, %p6282_p8 }
  0x7d   : > { %p6278_p7 = pneg %p6277_p0 }
  0x7f   : > { %p6285_p1 = pnand %p6284_p10, %p6278_p7 }
  0x81   : > { %6288 = shalt.err (!%p6285_p1)
}
  0x82   : > { %5548 = dma.hbm_to_vmem [thread:$0]  (!%p7008_p2), %s8551_s5, 512, %s526_s26, [#allocation12], %s6815_s23, %s6815_s23, %s6816_s24  }
  0x83   : > { %s6289_s17 = scalar_lea.hbm %s8484_s7, 128 }
  0x84   : > { %p6290_p4 = scmp.ne.s32.totalorder %s8484_s7, %s6289_s17  ;;  %p6296_p11 = scmp.lt.u32.totalorder %s6289_s17, %s8484_s7 }
  0x86   : > { %p6292_p5 = pnand %p6290_p4, %p7022_p3 }
  0x88   : > { %p6293_p6 = pneg %p6292_p5 }
  0x8a   : > { %p6298_p12 = pnand %p6296_p11, %p6293_p6 }
  0x8c   : > { %6301 = shalt.err (!%p6298_p12)
}
  0x8d   : > { %s6302_s28 = scalar_lea.vmem %s550_s0, 128  ;;  %p6310_p8 = scmp.lt.s32.totalorder %s550_s0, %s550_s0 }
  0x8e   : > { %p6303_p13 = scmp.ne.s32.totalorder %s550_s0, %s6302_s28  ;;  %p6311_p9 = scmp.lt.s32.totalorder %s6302_s28, %s6302_s28 }
  0x90   : > { %p6305_p0 = pnand %p6303_p13, %p7022_p3  ;;  %p6312_p10 = por %p6311_p9, %p6310_p8 }
  0x92   : > { %p6306_p7 = pneg %p6305_p0 }
  0x94   : > { %p6313_p1 = pnand %p6312_p10, %p6306_p7 }
  0x96   : > { %6316 = shalt.err (!%p6313_p1)
}
  0x97   : > { %5554 = dma.hbm_to_vmem [thread:$0]  (!%p7008_p2), %s8484_s7, 128, %s550_s0, [#allocation15], %s6815_s23, %s6815_s23, %s6816_s24  }
  0x98   : > { %s6819_s18 = smov [#allocation17]   ;;  %s6820_s29 = smov [#allocation20]  }
  0x99   : > { %s573_s30 = sshll.u32 %s6819_s18, 4  ;;  %s597_s2 = sshll.u32 %s6820_s29, 4  ;;  %s574_s30 = int_to_ptr.vmem [resolvable:$true] %s573_s30  ;;  %s598_s2 = int_to_ptr.vmem [resolvable:$true] %s597_s2 }
  0x9a   : > { %s6317_s22 = scalar_lea.hbm %s8486_s9, 1024 }
  0x9b   : > { %p6318_p4 = scmp.ne.s32.totalorder %s8486_s9, %s6317_s22  ;;  %p6324_p11 = scmp.lt.u32.totalorder %s6317_s22, %s8486_s9 }
  0x9d   : > { %p6320_p5 = pnand %p6318_p4, %p7022_p3 }
  0x9f   : > { %p6321_p6 = pneg %p6320_p5 }
  0xa1   : > { %p6326_p12 = pnand %p6324_p11, %p6321_p6 }
  0xa3   : > { %6329 = shalt.err (!%p6326_p12)
}
  0xa4   : > { %s6330_s0 = scalar_lea.vmem %s574_s30, 1024  ;;  %p6338_p8 = scmp.lt.s32.totalorder %s574_s30, %s574_s30 }
  0xa5   : > { %p6331_p13 = scmp.ne.s32.totalorder %s574_s30, %s6330_s0  ;;  %p6339_p9 = scmp.lt.s32.totalorder %s6330_s0, %s6330_s0 }
  0xa7   : > { %p6333_p0 = pnand %p6331_p13, %p7022_p3  ;;  %p6340_p10 = por %p6339_p9, %p6338_p8 }
  0xa9   : > { %p6334_p7 = pneg %p6333_p0 }
  0xab   : > { %p6341_p1 = pnand %p6340_p10, %p6334_p7 }
  0xad   : > { %6344 = shalt.err (!%p6341_p1)
}
  0xae   : > { %5560 = dma.hbm_to_vmem [thread:$0]  (!%p7008_p2), %s8486_s9, 1024, %s574_s30, [#allocation18], %s6815_s23, %s6815_s23, %s6816_s24  }
  0xaf   : > { %s6345_s25 = scalar_lea.hbm %s8488_s11, 128 }
  0xb0   : > { %p6346_p4 = scmp.ne.s32.totalorder %s8488_s11, %s6345_s25  ;;  %p6352_p11 = scmp.lt.u32.totalorder %s6345_s25, %s8488_s11 }
  0xb2   : > { %p6348_p5 = pnand %p6346_p4, %p7022_p3 }
  0xb4   : > { %p6349_p6 = pneg %p6348_p5 }
  0xb6   : > { %p6354_p12 = pnand %p6352_p11, %p6349_p6 }
  0xb8   : > { %6357 = shalt.err (!%p6354_p12)
}
  0xb9   : > { %s6358_s26 = scalar_lea.vmem %s598_s2, 128  ;;  %p6366_p8 = scmp.lt.s32.totalorder %s598_s2, %s598_s2 }
  0xba   : > { %p6359_p13 = scmp.ne.s32.totalorder %s598_s2, %s6358_s26  ;;  %p6367_p9 = scmp.lt.s32.totalorder %s6358_s26, %s6358_s26 }
  0xbc   : > { %p6361_p0 = pnand %p6359_p13, %p7022_p3  ;;  %p6368_p10 = por %p6367_p9, %p6366_p8 }
  0xbe   : > { %p6362_p7 = pneg %p6361_p0 }
  0xc0   : > { %p6369_p1 = pnand %p6368_p10, %p6362_p7 }
  0xc2   : > { %6372 = shalt.err (!%p6369_p1)
}
  0xc3   : > { %5566 = dma.hbm_to_vmem [thread:$0]  (!%p7008_p2), %s8488_s11, 128, %s598_s2, [#allocation21], %s6815_s23, %s6815_s23, %s6816_s24  }
  0xc4   : > { %s6821_s1 = smov [#allocation23]   ;;  %s6822_s29 = smov [#allocation26]  }
  0xc5   : > { %s621_s18 = sshll.u32 %s6821_s1, 4  ;;  %s645_s17 = sshll.u32 %s6822_s29, 4  ;;  %s622_s18 = int_to_ptr.vmem [resolvable:$true] %s621_s18  ;;  %s646_s17 = int_to_ptr.vmem [resolvable:$true] %s645_s17 }
  0xc6   : > { %s6373_s27 = scalar_lea.hbm %s8490_s13, 512 }
  0xc7   : > { %p6374_p4 = scmp.ne.s32.totalorder %s8490_s13, %s6373_s27  ;;  %p6380_p11 = scmp.lt.u32.totalorder %s6373_s27, %s8490_s13 }
  0xc9   : > { %p6376_p5 = pnand %p6374_p4, %p7022_p3 }
  0xcb   : > { %p6377_p6 = pneg %p6376_p5 }
  0xcd   : > { %p6382_p12 = pnand %p6380_p11, %p6377_p6 }
  0xcf   : > { %6385 = shalt.err (!%p6382_p12)
}
  0xd0   : > { %s6386_s2 = scalar_lea.vmem %s622_s18, 512  ;;  %p6394_p8 = scmp.lt.s32.totalorder %s622_s18, %s622_s18 }
  0xd1   : > { %p6387_p13 = scmp.ne.s32.totalorder %s622_s18, %s6386_s2  ;;  %p6395_p9 = scmp.lt.s32.totalorder %s6386_s2, %s6386_s2 }
  0xd3   : > { %p6389_p0 = pnand %p6387_p13, %p7022_p3  ;;  %p6396_p10 = por %p6395_p9, %p6394_p8 }
  0xd5   : > { %p6390_p7 = pneg %p6389_p0 }
  0xd7   : > { %p6397_p1 = pnand %p6396_p10, %p6390_p7 }
  0xd9   : > { %6400 = shalt.err (!%p6397_p1)
}
  0xda   : > { %5572 = dma.hbm_to_vmem [thread:$0]  (!%p7008_p2), %s8490_s13, 512, %s622_s18, [#allocation24], %s6815_s23, %s6815_s23, %s6816_s24  }
  0xdb   : > { %s6401_s22 = scalar_lea.hbm %s8492_s15, 7168 }
  0xdc   : > { %p6402_p4 = scmp.ne.s32.totalorder %s8492_s15, %s6401_s22  ;;  %p6408_p11 = scmp.lt.u32.totalorder %s6401_s22, %s8492_s15 }
  0xde   : > { %p6404_p5 = pnand %p6402_p4, %p7022_p3 }
  0xe0   : > { %p6405_p6 = pneg %p6404_p5 }
  0xe2   : > { %p6410_p12 = pnand %p6408_p11, %p6405_p6 }
  0xe4   : > { %6413 = shalt.err (!%p6410_p12)
}
  0xe5   : > { %s6414_s30 = scalar_lea.vmem %s646_s17, 7168  ;;  %p6422_p8 = scmp.lt.s32.totalorder %s646_s17, %s646_s17 }
  0xe6   : > { %p6415_p13 = scmp.ne.s32.totalorder %s646_s17, %s6414_s30  ;;  %p6423_p9 = scmp.lt.s32.totalorder %s6414_s30, %s6414_s30 }
  0xe8   : > { %p6417_p0 = pnand %p6415_p13, %p7022_p3  ;;  %p6424_p10 = por %p6423_p9, %p6422_p8 }
  0xea   : > { %p6418_p7 = pneg %p6417_p0 }
  0xec   : > { %p6425_p1 = pnand %p6424_p10, %p6418_p7 }
  0xee   : > { %6428 = shalt.err (!%p6425_p1)
}
  0xef   : > { %s6823_s23 = smov 448   ;;  %s6824_s24 = smov 28  }
  0xf0   : > { %5578 = dma.hbm_to_vmem [thread:$0]  (!%p7008_p2), %s8492_s15, 7168, %s646_s17, [#allocation27], %s6823_s23, %s6823_s23, %s6824_s24  }
  0xf1   : > { %s6825_s0 = smov [#allocation7]   ;;  %s6826_s29 = smov [#allocation10]  }
  0xf2   : > { %s491_s1 = sshll.u32 %s6825_s0, 4  ;;  %s515_s25 = sshll.u32 %s6826_s29, 4  ;;  %s492_s1 = int_to_ptr.vmem [resolvable:$true] %s491_s1  ;;  %s516_s25 = int_to_ptr.vmem [resolvable:$true] %s515_s25 }
  0xf3   : > { %s8552_s21 = sld [smem:[#allocation57_spill]] }
  0xf9   : > { %s6429_s28 = scalar_lea.hbm %s8552_s21, 16 }
  0xfa   : > { %p6430_p4 = scmp.ne.s32.totalorder %s8552_s21, %s6429_s28  ;;  %p6436_p11 = scmp.lt.u32.totalorder %s6429_s28, %s8552_s21 }
  0xfc   : > { %p6432_p5 = pnand %p6430_p4, %p7022_p3 }
  0xfe   : > { %p6433_p6 = pneg %p6432_p5 }
 0x100   : > { %p6438_p12 = pnand %p6436_p11, %p6433_p6 }
 0x102   : > { %6441 = shalt.err (!%p6438_p12)
}
 0x103   : > { %s6442_s17 = scalar_lea.vmem %s492_s1, 16  ;;  %s6449_s23 = scalar_lea.vmem %s492_s1, 32 }
 0x104   : > { %p6443_p13 = scmp.ne.s32.totalorder %s492_s1, %s6442_s17  ;;  %p6450_p8 = scmp.lt.s32.totalorder %s492_s1, %s492_s1 }
 0x105   : > { %p6451_p9 = scmp.lt.s32.totalorder %s6449_s23, %s6442_s17 }
 0x106   : > { %p6445_p0 = pnand %p6443_p13, %p7022_p3 }
 0x107   : > { %p6452_p10 = por %p6451_p9, %p6450_p8 }
 0x108   : > { %p6446_p7 = pneg %p6445_p0 }
 0x10a   : > { %p6453_p1 = pnand %p6452_p10, %p6446_p7 }
 0x10c   : > { %6456 = shalt.err (!%p6453_p1)
}
 0x10d   : > { %5539 = dma.hbm_to_vmem [thread:$0]  (!%p7008_p2), %s8552_s21, 16, %s492_s1, [#allocation6]  }
 0x10e   : > { %s6457_s2 = scalar_lea.hbm %s8481_s4, 16 }
 0x10f   : > { %p6458_p4 = scmp.ne.s32.totalorder %s8481_s4, %s6457_s2  ;;  %p6464_p11 = scmp.lt.u32.totalorder %s6457_s2, %s8481_s4 }
 0x111   : > { %p6460_p5 = pnand %p6458_p4, %p7022_p3 }
 0x113   : > { %p6461_p6 = pneg %p6460_p5 }
 0x115   : > { %p6466_p12 = pnand %p6464_p11, %p6461_p6 }
 0x117   : > { %6469 = shalt.err (!%p6466_p12)
}
 0x118   : > { %s6470_s28 = scalar_lea.vmem %s516_s25, 16  ;;  %s6477_s1 = scalar_lea.vmem %s516_s25, 32 }
 0x119   : > { %p6471_p13 = scmp.ne.s32.totalorder %s516_s25, %s6470_s28  ;;  %p6478_p8 = scmp.lt.s32.totalorder %s516_s25, %s516_s25 }
 0x11a   : > { %p6479_p9 = scmp.lt.s32.totalorder %s6477_s1, %s6470_s28 }
 0x11b   : > { %p6473_p0 = pnand %p6471_p13, %p7022_p3 }
 0x11c   : > { %p6480_p10 = por %p6479_p9, %p6478_p8 }
 0x11d   : > { %p6474_p7 = pneg %p6473_p0 }
 0x11f   : > { %p6481_p1 = pnand %p6480_p10, %p6474_p7 }
 0x121   : > { %6484 = shalt.err (!%p6481_p1)
}
 0x122   : > { %5545 = dma.hbm_to_vmem [thread:$0]  (!%p7008_p2), %s8481_s4, 16, %s516_s25, [#allocation9]  }
 0x123   : > { %s6827_s17 = smov [#allocation13]   ;;  %s6828_s24 = smov [#allocation16]  }
 0x124   : > { %s539_s23 = sshll.u32 %s6827_s17, 4  ;;  %s563_s18 = sshll.u32 %s6828_s24, 4  ;;  %s540_s23 = int_to_ptr.vmem [resolvable:$true] %s539_s23  ;;  %s564_s18 = int_to_ptr.vmem [resolvable:$true] %s563_s18 }
 0x125   : > { %s6485_s2 = scalar_lea.hbm %s8483_s6, 16 }
 0x126   : > { %p6486_p4 = scmp.ne.s32.totalorder %s8483_s6, %s6485_s2  ;;  %p6492_p11 = scmp.lt.u32.totalorder %s6485_s2, %s8483_s6 }
 0x128   : > { %p6488_p5 = pnand %p6486_p4, %p7022_p3 }
 0x12a   : > { %p6489_p6 = pneg %p6488_p5 }
 0x12c   : > { %p6494_p12 = pnand %p6492_p11, %p6489_p6 }
 0x12e   : > { %6497 = shalt.err (!%p6494_p12)
}
 0x12f   : > { %s6498_s25 = scalar_lea.vmem %s540_s23, 16  ;;  %s6505_s28 = scalar_lea.vmem %s540_s23, 32 }
 0x130   : > { %p6499_p13 = scmp.ne.s32.totalorder %s540_s23, %s6498_s25  ;;  %p6506_p8 = scmp.lt.s32.totalorder %s540_s23, %s540_s23 }
 0x131   : > { %p6507_p9 = scmp.lt.s32.totalorder %s6505_s28, %s6498_s25 }
 0x132   : > { %p6501_p0 = pnand %p6499_p13, %p7022_p3 }
 0x133   : > { %p6508_p10 = por %p6507_p9, %p6506_p8 }
 0x134   : > { %p6502_p7 = pneg %p6501_p0 }
 0x136   : > { %p6509_p1 = pnand %p6508_p10, %p6502_p7 }
 0x138   : > { %6512 = shalt.err (!%p6509_p1)
}
 0x139   : > { %5551 = dma.hbm_to_vmem [thread:$0]  (!%p7008_p2), %s8483_s6, 16, %s540_s23, [#allocation12]  }
 0x13a   : > { %s6513_s24 = scalar_lea.hbm %s8485_s8, 16 }
 0x13b   : > { %p6514_p4 = scmp.ne.s32.totalorder %s8485_s8, %s6513_s24  ;;  %p6520_p11 = scmp.lt.u32.totalorder %s6513_s24, %s8485_s8 }
 0x13d   : > { %p6516_p5 = pnand %p6514_p4, %p7022_p3 }
 0x13f   : > { %p6517_p6 = pneg %p6516_p5 }
 0x141   : > { %p6522_p12 = pnand %p6520_p11, %p6517_p6 }
 0x143   : > { %6525 = shalt.err (!%p6522_p12)
}
 0x144   : > { %s6526_s29 = scalar_lea.vmem %s564_s18, 16  ;;  %s6533_s23 = scalar_lea.vmem %s564_s18, 32 }
 0x145   : > { %p6527_p13 = scmp.ne.s32.totalorder %s564_s18, %s6526_s29  ;;  %p6534_p8 = scmp.lt.s32.totalorder %s564_s18, %s564_s18 }
 0x146   : > { %p6535_p9 = scmp.lt.s32.totalorder %s6533_s23, %s6526_s29 }
 0x147   : > { %p6529_p0 = pnand %p6527_p13, %p7022_p3 }
 0x148   : > { %p6536_p10 = por %p6535_p9, %p6534_p8 }
 0x149   : > { %p6530_p7 = pneg %p6529_p0 }
 0x14b   : > { %p6537_p1 = pnand %p6536_p10, %p6530_p7 }
 0x14d   : > { %6540 = shalt.err (!%p6537_p1)
}
 0x14e   : > { %5557 = dma.hbm_to_vmem [thread:$0]  (!%p7008_p2), %s8485_s8, 16, %s564_s18, [#allocation15]  }
 0x14f   : > { %s6829_s25 = smov [#allocation19]   ;;  %s6830_s1 = smov [#allocation22]  }
 0x150   : > { %s587_s28 = sshll.u32 %s6829_s25, 4  ;;  %s611_s26 = sshll.u32 %s6830_s1, 4  ;;  %s588_s28 = int_to_ptr.vmem [resolvable:$true] %s587_s28  ;;  %s612_s26 = int_to_ptr.vmem [resolvable:$true] %s611_s26 }
 0x151   : > { %s6541_s24 = scalar_lea.hbm %s8487_s10, 16 }
 0x152   : > { %p6542_p4 = scmp.ne.s32.totalorder %s8487_s10, %s6541_s24  ;;  %p6548_p11 = scmp.lt.u32.totalorder %s6541_s24, %s8487_s10 }
 0x154   : > { %p6544_p5 = pnand %p6542_p4, %p7022_p3 }
 0x156   : > { %p6545_p6 = pneg %p6544_p5 }
 0x158   : > { %p6550_p12 = pnand %p6548_p11, %p6545_p6 }
 0x15a   : > { %6553 = shalt.err (!%p6550_p12)
}
 0x15b   : > { %s6554_s18 = scalar_lea.vmem %s588_s28, 16  ;;  %s6561_s29 = scalar_lea.vmem %s588_s28, 32 }
 0x15c   : > { %p6555_p13 = scmp.ne.s32.totalorder %s588_s28, %s6554_s18  ;;  %p6562_p8 = scmp.lt.s32.totalorder %s588_s28, %s588_s28 }
 0x15d   : > { %p6563_p9 = scmp.lt.s32.totalorder %s6561_s29, %s6554_s18 }
 0x15e   : > { %p6557_p0 = pnand %p6555_p13, %p7022_p3 }
 0x15f   : > { %p6564_p10 = por %p6563_p9, %p6562_p8 }
 0x160   : > { %p6558_p7 = pneg %p6557_p0 }
 0x162   : > { %p6565_p1 = pnand %p6564_p10, %p6558_p7 }
 0x164   : > { %6568 = shalt.err (!%p6565_p1)
}
 0x165   : > { %5563 = dma.hbm_to_vmem [thread:$0]  (!%p7008_p2), %s8487_s10, 16, %s588_s28, [#allocation18]  }
 0x166   : > { %s6569_s1 = scalar_lea.hbm %s8489_s12, 16 }
 0x167   : > { %p6570_p4 = scmp.ne.s32.totalorder %s8489_s12, %s6569_s1  ;;  %p6576_p11 = scmp.lt.u32.totalorder %s6569_s1, %s8489_s12 }
 0x169   : > { %p6572_p5 = pnand %p6570_p4, %p7022_p3 }
 0x16b   : > { %p6573_p6 = pneg %p6572_p5 }
 0x16d   : > { %p6578_p12 = pnand %p6576_p11, %p6573_p6 }
 0x16f   : > { %6581 = shalt.err (!%p6578_p12)
}
 0x170   : > { %s6582_s5 = scalar_lea.vmem %s612_s26, 16  ;;  %s6589_s28 = scalar_lea.vmem %s612_s26, 32 }
 0x171   : > { %p6583_p13 = scmp.ne.s32.totalorder %s612_s26, %s6582_s5  ;;  %p6590_p8 = scmp.lt.s32.totalorder %s612_s26, %s612_s26 }
 0x172   : > { %p6591_p9 = scmp.lt.s32.totalorder %s6589_s28, %s6582_s5 }
 0x173   : > { %p6585_p0 = pnand %p6583_p13, %p7022_p3 }
 0x174   : > { %p6592_p10 = por %p6591_p9, %p6590_p8 }
 0x175   : > { %p6586_p7 = pneg %p6585_p0 }
 0x177   : > { %p6593_p1 = pnand %p6592_p10, %p6586_p7 }
 0x179   : > { %6596 = shalt.err (!%p6593_p1)
}
 0x17a   : > { %5569 = dma.hbm_to_vmem [thread:$0]  (!%p7008_p2), %s8489_s12, 16, %s612_s26, [#allocation21]  }
 0x17b   : > { %s6831_s18 = smov [#allocation25]   ;;  %s6832_s23 = smov [#allocation28]  }
 0x17c   : > { %s635_s29 = sshll.u32 %s6831_s18, 4  ;;  %s659_s22 = sshll.u32 %s6832_s23, 4  ;;  %s636_s29 = int_to_ptr.vmem [resolvable:$true] %s635_s29  ;;  %s660_s22 = int_to_ptr.vmem [resolvable:$true] %s659_s22 }
 0x17d   : > { %s6597_s1 = scalar_lea.hbm %s8491_s14, 16 }
 0x17e   : > { %p6598_p4 = scmp.ne.s32.totalorder %s8491_s14, %s6597_s1  ;;  %p6604_p11 = scmp.lt.u32.totalorder %s6597_s1, %s8491_s14 }
 0x180   : > { %p6600_p5 = pnand %p6598_p4, %p7022_p3 }
 0x182   : > { %p6601_p6 = pneg %p6600_p5 }
 0x184   : > { %p6606_p12 = pnand %p6604_p11, %p6601_p6 }
 0x186   : > { %6609 = shalt.err (!%p6606_p12)
}
 0x187   : > { %s6610_s26 = scalar_lea.vmem %s636_s29, 16  ;;  %s6617_s5 = scalar_lea.vmem %s636_s29, 32 }
 0x188   : > { %p6611_p13 = scmp.ne.s32.totalorder %s636_s29, %s6610_s26  ;;  %p6618_p8 = scmp.lt.s32.totalorder %s636_s29, %s636_s29 }
 0x189   : > { %p6619_p9 = scmp.lt.s32.totalorder %s6617_s5, %s6610_s26 }
 0x18a   : > { %p6613_p0 = pnand %p6611_p13, %p7022_p3 }
 0x18b   : > { %p6620_p10 = por %p6619_p9, %p6618_p8 }
 0x18c   : > { %p6614_p7 = pneg %p6613_p0 }
 0x18e   : > { %p6621_p1 = pnand %p6620_p10, %p6614_p7 }
 0x190   : > { %6624 = shalt.err (!%p6621_p1)
}
 0x191   : > { %5575 = dma.hbm_to_vmem [thread:$0]  (!%p7008_p2), %s8491_s14, 16, %s636_s29, [#allocation24]  }
 0x192   : > { %s6625_s23 = scalar_lea.hbm %s8493_s16, 112 }
 0x193   : > { %p6626_p4 = scmp.ne.s32.totalorder %s8493_s16, %s6625_s23  ;;  %p6632_p11 = scmp.lt.u32.totalorder %s6625_s23, %s8493_s16 }
 0x195   : > { %p6628_p5 = pnand %p6626_p4, %p7022_p3 }
 0x197   : > { %p6629_p6 = pneg %p6628_p5 }
 0x199   : > { %p6634_p12 = pnand %p6632_p11, %p6629_p6 }
 0x19b   : > { %6637 = shalt.err (!%p6634_p12)
}
 0x19c   : > { %s6638_s17 = scalar_lea.vmem %s660_s22, 112  ;;  %s6645_s29 = scalar_lea.vmem %s660_s22, 128 }
 0x19d   : > { %p6639_p13 = scmp.ne.s32.totalorder %s660_s22, %s6638_s17  ;;  %p6646_p8 = scmp.lt.s32.totalorder %s660_s22, %s660_s22 }
 0x19e   : > { %p6647_p9 = scmp.lt.s32.totalorder %s6645_s29, %s6638_s17 }
 0x19f   : > { %p6641_p0 = pnand %p6639_p13, %p7022_p3 }
 0x1a0   : > { %p6648_p10 = por %p6647_p9, %p6646_p8 }
 0x1a1   : > { %p6642_p7 = pneg %p6641_p0 }
 0x1a3   : > { %p6649_p1 = pnand %p6648_p10, %p6642_p7 }
 0x1a5   : > { %6652 = shalt.err (!%p6649_p1)
}
 0x1a6   : > { %5581 = dma.hbm_to_vmem [thread:$0]  (!%p7008_p2), %s8493_s16, 112, %s660_s22, [#allocation27]  }
 0x1a7   : > { %s8553_s26 = sld [smem:[#allocation46_spill]] }
 0x1ad   : > { %p4602_p4 = scmp.ge.s32.totalorder %s8553_s26, 2 }
 0x1ae   : > { %s8554_s20 = sld [smem:[#allocation50_spill]] (!%p4602_p4) }
 0x1af   : > { %666 = sbr.rel (%p4602_p4) target bundleno = 484 (0x1e4), region = 80 }
 0x1b4   : > { %p8555_p3 = scmp.ne.s32.totalorder (!%p4602_p4), %s8554_s20, 0 }
 0x1b6   : > { %669 = sbr.rel (!%p8555_p3) target bundleno = 484 (0x1e4), region = 84  ;;  %s8556_s5 = sld [smem:[#allocation45_spill]] (%p8555_p3) }
 0x1b7   : > { %s8557_s28 = sld [smem:[#allocation46_spill]] (%p8555_p3) }
 0x1bc   : > { %s670_s2 = sand.u32 (%p8555_p3), 1, %s8556_s5  }
 0x1bd   : > { %s675_s0 = smul.u32 13, %s8557_s28  ;;  %s7344_s27 = scalar_lea.sflag [#allocation3], %s670_s2 }
 0x1be   : > { %s5461_s18 = smul.u32 728, %s670_s2 }
 0x1bf   : > { %s676_s23 = ssub.s32 25, %s675_s0 }
 0x1c0   : > { %p677_p5 = scmp.lt.s32.totalorder %s676_s23, 13  ;;  %s674_s25 = scalar_lea.vmem [#allocation2], %s5461_s18 }
 0x1c2   : > { %s8598_s23 = smov (!%p677_p5, %s676_s23), 13 }
 0x1c3   : > { %s7341_s19 = smul.u32 896, %s8598_s23 }
 0x1c5   : > { %s682_s22 = ssub.s32 11648, %s7341_s19 }
 0x1c6   : > { %683 = vsyncadd %s7344_s27, %s682_s22  ;;  %p4605_p2 = scmp.ne.s32.totalorder %s7341_s19, 0  ;;  %s5605_s1 = smul.u32 11648, %s8557_s28 }
 0x1c7   : > { %s689_s30 = sshll.u32 %s674_s25, 4  ;;  %s8558_s24 = sld [smem:[#allocation55_spill]]  ;;  %s7354_s30 = int_to_ptr.vmem [resolvable:$true] %s689_s30 }
 0x1cd   : > { %s7352_s3 = scalar_lea.hbm %s8558_s24, %s5605_s1  ;;  %s6657_s28 = scalar_lea.hbm %s8558_s24, 22400 }
 0x1ce   : > { %s6653_s26 = scalar_lea.hbm %s7352_s3, %s7341_s19  ;;  %p6658_p13 = scmp.lt.u32.totalorder %s7352_s3, %s8558_s24 }
 0x1cf   : > { %p6654_p6 = scmp.ne.s32.totalorder %s7352_s3, %s6653_s26  ;;  %p6659_p0 = scmp.lt.u32.totalorder %s6657_s28, %s6653_s26 }
 0x1d0   : > { %p6661_p8 = scmp.lt.u32.totalorder %s6653_s26, %s7352_s3 }
 0x1d1   : > { %p6655_p11 = pnand %p6654_p6, %p4605_p2  ;;  %p6660_p7 = por %p6659_p0, %p6658_p13 }
 0x1d3   : > { %p6656_p12 = pneg %p6655_p11  ;;  %p6662_p9 = por %p6661_p8, %p6660_p7 }
 0x1d5   : > { %p6663_p10 = pnand %p6662_p9, %p6656_p12 }
 0x1d7   : > { %6666 = shalt.err (!%p6663_p10)
}
 0x1d8   : > { %s6667_s18 = scalar_lea.vmem %s7354_s30, %s7341_s19  ;;  %s6833_s23 = smov [#allocation2]  }
 0x1d9   : > { %p6668_p1 = scmp.ne.s32.totalorder %s7354_s30, %s6667_s18  ;;  %s6671_s22 = sshll.u32 %s6833_s23, 4  ;;  %s6672_s22 = int_to_ptr.vmem [resolvable:$false] %s6671_s22 }
 0x1da   : > { %s6673_s25 = scalar_lea.vmem %s6672_s22, 23296  ;;  %p6674_p6 = scmp.lt.s32.totalorder %s7354_s30, %s6672_s22 }
 0x1db   : > { %p6669_p3 = pnand %p6668_p1, %p4605_p2  ;;  %p6675_p11 = scmp.lt.s32.totalorder %s6673_s25, %s6667_s18 }
 0x1dd   : > { %p6670_p5 = pneg %p6669_p3  ;;  %p6676_p13 = por %p6675_p11, %p6674_p6 }
 0x1df   : > { %p6677_p0 = pnand %p6676_p13, %p6670_p5 }
 0x1e1   : > { %6680 = shalt.err (!%p6677_p0)
}
 0x1e2   : > { %s6834_s1 = smov 896   ;;  %s6835_s17 = smov 56  }
 0x1e3   : > { %695 = dma.hbm_to_vmem [thread:$0]  (%p4605_p2), %s7352_s3, %s7341_s19, %s7354_s30, %s7344_s27, %s6834_s1, %s6834_s1, %s6835_s17  }
 0x1e4 PF: > { %s8559_s29 = sld [smem:[#allocation54_spill]] }
 0x1ea   : > { %p8560_p12 = scmp.ne.s32.totalorder %s8559_s29, 0 }
 0x1eb   : > { %s8561_s26 = sld [smem:[#allocation44_spill]] (!%p8560_p12) }
 0x1ec   : > { %701 = sbr.rel (%p8560_p12) target bundleno = 2666 (0xa6a), region = 88  ;;  %s8562_s20 = sld [smem:[#allocation51_spill]] (!%p8560_p12) }
 0x1f1   : > { %s7384_s5 = sand.u32 (!%p8560_p12), 1, %s8561_s26  }
 0x1f2   : > { %s5463_s28 = smul.u32 (!%p8560_p12), 728, %s7384_s5  ;;  %s704_s2 = scalar_lea.sflag (!%p8560_p12), [#allocation3], %s7384_s5 }
 0x1f3   : > { %p8563_p7 = scmp.ne.s32.totalorder %s8562_s20, 0 }
 0x1f4   : > { %s7390_s0 = scalar_lea.vmem [#allocation2], %s5463_s28 }
 0x1f5   : > { %6754 = dma.done.wait (%p8563_p7), %s704_s2, 11648  }
 0x1f6   : > { %6756 = vsyncadd (%p8563_p7), %s704_s2, 4294955648  ;;  %s8564_s19 = sld [smem:[#allocation47_spill]] }
 0x1fc   : > { %p8565_p2 = scmp.eq.s32.totalorder %s8564_s19, 0 }
 0x1fe   : > { %6758 = dma.done.wait (%p8565_p2), [#allocation6], 6288   ;;  %p8566_p8 = pmov %p8565_p2 }
 0x1ff   : > { %p8567_p9 = pmov %p8565_p2 }
 0x200   : > { %6760 = vsyncadd (%p8566_p8), [#allocation6], 4294961008 }
 0x201   : > { %6762 = dma.done.wait (%p8567_p9), [#allocation9], 1040   ;;  %p8568_p10 = pmov %p8565_p2 }
 0x202   : > { %p8569_p1 = pmov %p8565_p2 }
 0x203   : > { %6764 = vsyncadd (%p8568_p10), [#allocation9], 4294966256 }
 0x204   : > { %6766 = dma.done.wait (%p8569_p1), [#allocation12], 528   ;;  %p8570_p3 = pmov %p8569_p1 }
 0x205   : > { %p8571_p5 = pmov %p8569_p1 }
 0x206   : > { %6768 = vsyncadd (%p8570_p3), [#allocation12], 4294966768 }
 0x207   : > { %6770 = dma.done.wait (%p8571_p5), [#allocation15], 144   ;;  %p8572_p6 = pmov %p8569_p1 }
 0x208   : > { %p8573_p11 = pmov %p8569_p1 }
 0x209   : > { %6772 = vsyncadd (%p8572_p6), [#allocation15], 4294967152 }
 0x20a   : > { %6774 = dma.done.wait (%p8573_p11), [#allocation18], 1040   ;;  %p8574_p13 = pmov %p8569_p1 }
 0x20b   : > { %p8575_p0 = pmov %p8569_p1 }
 0x20c   : > { %6776 = vsyncadd (%p8574_p13), [#allocation18], 4294966256 }
 0x20d   : > { %6778 = dma.done.wait (%p8575_p0), [#allocation21], 144   ;;  %p8576_p12 = pmov %p8575_p0 }
 0x20e   : > { %p8577_p7 = pmov %p8575_p0 }
 0x20f   : > { %6780 = vsyncadd (%p8576_p12), [#allocation21], 4294967152 }
 0x210   : > { %6782 = dma.done.wait (%p8577_p7), [#allocation24], 528   ;;  %p8578_p2 = pmov %p8575_p0 }
 0x211   : > { %p8579_p8 = pmov %p8575_p0 }
 0x212   : > { %6784 = vsyncadd (%p8578_p2), [#allocation24], 4294966768 }
 0x213   : > { %6786 = dma.done.wait (%p8579_p8), [#allocation27], 7280   ;;  %p8580_p9 = pmov %p8575_p0 }
 0x214   : > { %v5685_v0 = vld [vmem:[#allocation5 + $0x40] sm:$0xff]   ;;  %v5689_v4 = vld [vmem:[#allocation5 + $0x48] sm:$0xff]   ;;  %v5693_v8 = vld [vmem:[#allocation5 + $0x50] sm:$0xff]   ;;  %v6836_v43 = vmov 0.0   ;;  %vm1386_vm0 = vcmask 130048   ;;  %vm6837_vm1 = vmmov 0  }
 0x215   : > { %6788 = vsyncadd (%p8580_p9), [#allocation27], 4294960016  ;;  %v5686_v1 = vld [vmem:[#allocation5] sm:$0xff]   ;;  %4902 = vmatprep.subr.bf16.mxu0 %v5685_v0  ;;  %v5690_v5 = vld [vmem:[#allocation5 + $0x8] sm:$0xff]   ;;  %vm2164_vm2 = vcmask 1045504   ;;  %vm1998_vm3 = vcmask 523264  }
 0x216   : > { %v5687_v2 = vld [vmem:[#allocation5 + $0xc0] sm:$0xff]   ;;  %4903 = vmatpush3.bf16.msra.mxu0 %v5686_v1  ;;  %v5691_v6 = vld [vmem:[#allocation5 + $0xc8] sm:$0xff]   ;;  %v5694_v9 = vld [vmem:[#allocation5 + $0x10] sm:$0xff]   ;;  %vm2142_vm4 = vcmask 97280   ;;  %s5464_s27 = smul.u32 104, %s7384_s5  ;;  %vm2256_vm5 = vcmask 23552  }
 0x217   : > { %v5688_v3 = vld [vmem:[#allocation5 + $0x80] sm:$0xff]   ;;  %4960 = vmatprep.subr.bf16.mxu1 %v5687_v2  ;;  %4904 = vmatprep.subr.bf16.mxu0 %v5689_v4  ;;  %v5692_v7 = vld [vmem:[#allocation5 + $0x88] sm:$0xff]   ;;  %v5695_v10 = vld [vmem:[#allocation5 + $0xd0] sm:$0xff]   ;;  %s7988_s3 = scalar_lea.vmem [#allocation30], %s5463_s28  ;;  %s4279_s18 = scalar_lea.sflag [#allocation4], %s7384_s5 }
 0x218   : > { %4961 = vmatpush3.bf16.msra.mxu1 %v5688_v3  ;;  %v5696_v11 = vld [vmem:[#allocation5 + $0x90] sm:$0xff]   ;;  %v5697_v12 = vld [vmem:[#allocation5 + $0x58] sm:$0xff]   ;;  %v5701_v16 = vld [vmem:[#allocation5 + $0x60] sm:$0xff]   ;;  %s7714_s30 = scalar_lea.vmem [#allocation29], %s5464_s27  ;;  %s4284_s23 = scalar_lea.sflag [#allocation31], %s7384_s5 }
 0x219   : > { %4962 = vmatprep.subr.bf16.mxu1 %v5691_v6  ;;  %v5698_v13 = vld [vmem:[#allocation5 + $0x18] sm:$0xff]   ;;  %v5702_v17 = vld [vmem:[#allocation5 + $0x20] sm:$0xff]   ;;  %v5705_v20 = vld [vmem:[#allocation5 + $0x68] sm:$0xff]   ;;  %s8581_s22 = sld [smem:[#allocation52_spill]] }
 0x21a   : > { %4905 = vmatpush3.bf16.msra.mxu0 %v5690_v5  ;;  %v5699_v14 = vld [vmem:[#allocation5 + $0xd8] sm:$0xff]   ;;  %v5703_v18 = vld [vmem:[#allocation5 + $0xe0] sm:$0xff]   ;;  %v5706_v21 = vld [vmem:[#allocation5 + $0x28] sm:$0xff]  }
 0x21b   : > { %4906 = vmatprep.subr.bf16.mxu0 %v5693_v8  ;;  %v5700_v15 = vld [vmem:[#allocation5 + $0x98] sm:$0xff]   ;;  %v5704_v19 = vld [vmem:[#allocation5 + $0xa0] sm:$0xff]   ;;  %v5707_v22 = vld [vmem:[#allocation5 + $0xe8] sm:$0xff]  }
 0x21c   : > { %4963 = vmatpush3.bf16.msra.mxu1 %v5692_v7  ;;  %v5708_v23 = vld [vmem:[#allocation5 + $0xa8] sm:$0xff]   ;;  %v5709_v24 = vld [vmem:[#allocation5 + $0x70] sm:$0xff]   ;;  %v5713_v28 = vld [vmem:[#allocation5 + $0x78] sm:$0xff]  }
 0x21d   : > { %4964 = vmatprep.subr.bf16.mxu1 %v5695_v10  ;;  %v5710_v25 = vld [vmem:[#allocation5 + $0x30] sm:$0xff]   ;;  %v5714_v29 = vld [vmem:[#allocation5 + $0x38] sm:$0xff]   ;;  %v854_v36 = vld [vmem:[%s7390_s0 + $0x38] sm:$0xff] }
 0x21e   : > { %4907 = vmatpush3.bf16.msra.mxu0 %v5694_v9  ;;  %v5711_v26 = vld [vmem:[#allocation5 + $0xf0] sm:$0xff]   ;;  %v5715_v30 = vld [vmem:[#allocation5 + $0xf8] sm:$0xff]   ;;  %v5717_v38 = vld [vmem:[#allocation5 + $0x140] sm:$0xff]  }
 0x21f   : > { %4908 = vmatprep.subr.bf16.mxu0 %v5697_v12  ;;  %v5712_v27 = vld [vmem:[#allocation5 + $0xb0] sm:$0xff]   ;;  %v5716_v34 = vld [vmem:[#allocation5 + $0xb8] sm:$0xff]   ;;  %v850_v39 = vld [vmem:[%s7390_s0 + $0x18] sm:$0xff]  ;;  %p8582_p10 = scmp.ne.s32.totalorder %s8581_s22, 0 }
 0x220   : > { %4965 = vmatpush3.bf16.msra.mxu1 %v5696_v11  ;;  %v848_v31 = vld [vmem:[%s7390_s0 + $0x8] sm:$0xff]  ;;  %v855_v32 = vld [vmem:[%s7390_s0 + $0x40] sm:$0xff]  ;;  %v857_v40 = vld [vmem:[%s7390_s0 + $0x50] sm:$0xff]  ;;  %s8583_s25 = sld [smem:[#allocation47_spill]] (%p8582_p10) }
 0x221   : > { %4966 = vmatprep.subr.bf16.mxu1 %v5699_v14  ;;  %v939_v33 = vpack.c.bf16 %v855_v32, %v848_v31  ;;  %v847_v35 = vld [vmem:[%s7390_s0] sm:$0xff]  ;;  %v941_v41 = vpack.c.bf16 %v857_v40, %v850_v39  ;;  %v5718_v42 = vld [vmem:[#allocation5 + $0x100] sm:$0xff]   ;;  %v856_v45 = vld [vmem:[%s7390_s0 + $0x48] sm:$0xff] }
 0x222   : > { %4909 = vmatpush3.bf16.msra.mxu0 %v5698_v13  ;;  %v938_v37 = vpack.c.bf16 %v854_v36, %v847_v35  ;;  %v849_v44 = vld [vmem:[%s7390_s0 + $0x10] sm:$0xff]  ;;  %v862_v48 = vld [vmem:[%s7390_s0 + $0x78] sm:$0xff]  ;;  %v868_v53 = vld [vmem:[%s7390_s0 + $0xa8] sm:$0xff] }
 0x223   : > { %4910 = vmatprep.subr.bf16.mxu0 %v5701_v16  ;;  %1440 = vmatprep.mubr.bf16.mxu0 %v939_v33  ;;  %v940_v46 = vpack.c.bf16 %v856_v45, %v849_v44  ;;  %v5719_v47 = vld [vmem:[#allocation5 + $0x180] sm:$0xff]   ;;  %v5720_v51 = vld [vmem:[#allocation5 + $0x148] sm:$0xff]   ;;  %v864_v56 = vld [vmem:[%s7390_s0 + $0x88] sm:$0xff] }
 0x224   : > { %4967 = vmatpush3.bf16.msra.mxu1 %v5700_v15  ;;  %1528 = vmatprep.mubr.bf16.mxu1 %v941_v41  ;;  %v869_v49 = vld [vmem:[%s7390_s0 + $0xb0] sm:$0xff]  ;;  %v5721_v55 = vld [vmem:[#allocation5 + $0x108] sm:$0xff]   ;;  %v5722_v62 = vld [vmem:[#allocation5 + $0x150] sm:$0xff]  }
 0x225   : > { %4968 = vmatprep.subr.bf16.mxu1 %v5703_v18  ;;  %v946_v50 = vpack.c.bf16 %v869_v49, %v862_v48  ;;  %v861_v52 = vld [vmem:[%s7390_s0 + $0x70] sm:$0xff]  ;;  %v871_v57 = vld [vmem:[%s7390_s0 + $0xc0] sm:$0xff]  ;;  %v870_v60 = vld [vmem:[%s7390_s0 + $0xb8] sm:$0xff] }
 0x226   : > { %4911 = vmatpush3.bf16.msra.mxu0 %v5702_v17  ;;  %v945_v54 = vpack.c.bf16 %v868_v53, %v861_v52  ;;  %v863_v58 = vld [vmem:[%s7390_s0 + $0x80] sm:$0xff]  ;;  %v948_v59 = vpack.c.bf16 %v871_v57, %v864_v56  ;;  %v876_v63 = vld [vmem:[%s7390_s0 + $0xe8] sm:$0xff]  ;;  %v882_v4 = vld [vmem:[%s7390_s0 + $0x118] sm:$0xff]  ;;  %s4291_s1 = smul.u32 (%p8582_p10), 13, %s8583_s25 }
 0x227   : > { %4912 = vmatprep.subr.bf16.mxu0 %v5705_v20  ;;  %v947_v61 = vpack.c.bf16 %v870_v60, %v863_v58  ;;  %v883_v0 = vld [vmem:[%s7390_s0 + $0x120] sm:$0xff]  ;;  %v878_v5 = vld [vmem:[%s7390_s0 + $0xf8] sm:$0xff]  ;;  %v885_v6 = vld [vmem:[%s7390_s0 + $0x130] sm:$0xff] }
 0x228   : > { %4969 = vmatpush3.bf16.msra.mxu1 %v5704_v19  ;;  %v953_v1 = vpack.c.bf16 %v883_v0, %v876_v63  ;;  %v5723_v2 = vld [vmem:[#allocation5 + $0x110] sm:$0xff]   ;;  %v877_v7 = vld [vmem:[%s7390_s0 + $0xf0] sm:$0xff]  ;;  %v955_v9 = vpack.c.bf16 %v885_v6, %v878_v5  ;;  %v890_v13 = vld [vmem:[%s7390_s0 + $0x158] sm:$0xff]  ;;  %s4292_s17 = ssub.s32 (%p8582_p10), 25, %s4291_s1 }
 0x229   : > { %4970 = vmatprep.subr.bf16.mxu1 %v5707_v22  ;;  %v875_v3 = vld [vmem:[%s7390_s0 + $0xe0] sm:$0xff]  ;;  %v884_v8 = vld [vmem:[%s7390_s0 + $0x128] sm:$0xff]  ;;  %v897_v14 = vld [vmem:[%s7390_s0 + $0x190] sm:$0xff]  ;;  %p4293_p1 = scmp.lt.s32.totalorder (%p8582_p10), %s4292_s17, 13 }
 0x22a   : > { %4913 = vmatpush3.bf16.msra.mxu0 %v5706_v21  ;;  %v5724_v10 = vld [vmem:[#allocation5 + $0x158] sm:$0xff]   ;;  %v952_v11 = vpack.c.bf16 %v882_v4, %v875_v3  ;;  %v960_v15 = vpack.c.bf16 %v897_v14, %v890_v13  ;;  %v899_v17 = vld [vmem:[%s7390_s0 + $0x1a0] sm:$0xff]  ;;  %v954_v18 = vpack.c.bf16 %v884_v8, %v877_v7  ;;  %v5726_v21 = vld [vmem:[#allocation5 + $0x160] sm:$0xff]  }
 0x22b   : > { %4914 = vmatprep.subr.bf16.mxu0 %v5709_v24  ;;  %v5725_v12 = vld [vmem:[#allocation5 + $0x118] sm:$0xff]   ;;  %v5728_v32 = vld [vmem:[#allocation5 + $0x168] sm:$0xff]   ;;  %v5730_v40 = vld [vmem:[#allocation5 + $0x170] sm:$0xff]  }
 0x22c   : > { %4971 = vmatpush3.bf16.msra.mxu1 %v5708_v23  ;;  %v892_v16 = vld [vmem:[%s7390_s0 + $0x168] sm:$0xff]  ;;  %v889_v19 = vld [vmem:[%s7390_s0 + $0x150] sm:$0xff]  ;;  %v5729_v33 = vld [vmem:[#allocation5 + $0x128] sm:$0xff]  }
 0x22d   : > { %4972 = vmatprep.subr.bf16.mxu1 %v5711_v26  ;;  %v962_v20 = vpack.c.bf16 %v899_v17, %v892_v16  ;;  %v896_v22 = vld [vmem:[%s7390_s0 + $0x188] sm:$0xff]  ;;  %v5727_v23 = vld [vmem:[#allocation5 + $0x120] sm:$0xff]   ;;  %v891_v26 = vld [vmem:[%s7390_s0 + $0x160] sm:$0xff] }
 0x22e   : > { %4915 = vmatpush3.bf16.msra.mxu0 %v5710_v25  ;;  %v904_v24 = vld [vmem:[%s7390_s0 + $0x1c8] sm:$0xff]  ;;  %v911_v25 = vld [vmem:[%s7390_s0 + $0x200] sm:$0xff]  ;;  %v910_v36 = vld [vmem:[%s7390_s0 + $0x1f8] sm:$0xff] }
 0x22f   : > { %4916 = vmatprep.subr.bf16.mxu0 %v5713_v28  ;;  %v906_v28 = vld [vmem:[%s7390_s0 + $0x1d8] sm:$0xff]  ;;  %v967_v31 = vpack.c.bf16 %v911_v25, %v904_v24  ;;  %v903_v35 = vld [vmem:[%s7390_s0 + $0x1c0] sm:$0xff]  ;;  %v925_v39 = vld [vmem:[%s7390_s0 + $0x270] sm:$0xff] }
 0x230   : > { %4973 = vmatpush3.bf16.msra.mxu1 %v5712_v27  ;;  %v898_v27 = vld [vmem:[%s7390_s0 + $0x198] sm:$0xff]  ;;  %v5731_v41 = vld [vmem:[#allocation5 + $0x130] sm:$0xff]   ;;  %v917_v53 = vld [vmem:[%s7390_s0 + $0x230] sm:$0xff] }
 0x231   : > { %4974 = vmatprep.subr.bf16.mxu1 %v5715_v30  ;;  %v913_v30 = vld [vmem:[%s7390_s0 + $0x210] sm:$0xff]  ;;  %v912_v44 = vld [vmem:[%s7390_s0 + $0x208] sm:$0xff]  ;;  %v927_v49 = vld [vmem:[%s7390_s0 + $0x280] sm:$0xff] }
 0x232   : > { %4917 = vmatpush3.bf16.msra.mxu0 %v5714_v29  ;;  %v959_v29 = vpack.c.bf16 %v896_v22, %v889_v19  ;;  %v920_v45 = vld [vmem:[%s7390_s0 + $0x248] sm:$0xff]  ;;  %v919_v57 = vld [vmem:[%s7390_s0 + $0x240] sm:$0xff]  ;;  %v926_v58 = vld [vmem:[%s7390_s0 + $0x278] sm:$0xff] }
 0x233   : > { %5018 = vmatprep.subr.bf16.mxu0 %v5717_v38  ;;  %v918_v38 = vld [vmem:[%s7390_s0 + $0x238] sm:$0xff]  ;;  %v976_v52 = vpack.c.bf16 %v927_v49, %v920_v45  ;;  %v931_v63 = vld [vmem:[%s7390_s0 + $0x2a0] sm:$0xff]  ;;  %v852_v0 = vld [vmem:[%s7390_s0 + $0x28] sm:$0xff] }
 0x234   : > { %4975 = vmatpush3.bf16.msra.mxu1 %v5716_v34  ;;  %v961_v34 = vpack.c.bf16 %v898_v27, %v891_v26  ;;  %v974_v48 = vpack.c.bf16 %v925_v39, %v918_v38  ;;  %v934_v60 = vld [vmem:[%s7390_s0 + $0x2b8] sm:$0xff]  ;;  %v980_v3 = vpack.c.bf16 %v931_v63, %v931_v63  ;;  %v851_v6 = vld [vmem:[%s7390_s0 + $0x20] sm:$0xff]  ;;  %v872_v16 = vld [vmem:[%s7390_s0 + $0xc8] sm:$0xff] }
 0x235   : > { %5167 = vmatprep.subr.bf16.mxu1 %v6836_v43  ;;  %1441 = vmatmul.mubr.bf16.vlgmr.msra.gmra.mrb[0].mxu0 %v938_v37  ;;  %v969_v37 = vpack.c.bf16 %v913_v30, %v906_v28  ;;  %v858_v7 = vld [vmem:[%s7390_s0 + $0x58] sm:$0xff]  ;;  %v880_v17 = vld [vmem:[%s7390_s0 + $0x108] sm:$0xff]  ;;  %v867_v19 = vld [vmem:[%s7390_s0 + $0xa0] sm:$0xff] }
 0x236   : > { %5019 = vmatpush3.bf16.msra.mxu0 %v5718_v42  ;;  %1448 = vmatprep.mubr.bf16.mxu0 %v946_v50  ;;  %v905_v42 = vld [vmem:[%s7390_s0 + $0x1d0] sm:$0xff]  ;;  %v866_v8 = vld [vmem:[%s7390_s0 + $0x98] sm:$0xff]  ;;  %v879_v24 = vld [vmem:[%s7390_s0 + $0x100] sm:$0xff] }
 0x237   : > { %1529 = vmatmul.mubr.bf16.vlgmr.msra.gmra.mrb[0].mxu1 %v940_v46  ;;  %5020 = vmatprep.subr.bf16.mxu0 %v5720_v51  ;;  %v966_v46 = vpack.c.bf16 %v910_v36, %v903_v35  ;;  %v5733_v50 = vld [vmem:[#allocation5 + $0x138] sm:$0xff]   ;;  %v968_v51 = vpack.c.bf16 %v912_v44, %v905_v42  ;;  %v886_v25 = vld [vmem:[%s7390_s0 + $0x138] sm:$0xff]  ;;  %v915_v36 = vld [vmem:[%s7390_s0 + $0x220] sm:$0xff] }
 0x238   : > { %5168 = vmatpush3.bf16.msra.mxu1 %v5719_v47  ;;  %1536 = vmatprep.mubr.bf16.mxu1 %v948_v59  ;;  %v5732_v47 = vld [vmem:[#allocation5 + $0x178] sm:$0xff]   ;;  %v894_v26 = vld [vmem:[%s7390_s0 + $0x178] sm:$0xff]  ;;  %v956_v30 = vpack.c.bf16 %v886_v25, %v879_v24  ;;  %v907_v42 = vld [vmem:[%s7390_s0 + $0x1e0] sm:$0xff] }
 0x239   : > { %5241 = vmatprep.subr.bf16.mxu1 %v6836_v43  ;;  %v901_v27 = vld [vmem:[%s7390_s0 + $0x1b0] sm:$0xff]  ;;  %v908_v35 = vld [vmem:[%s7390_s0 + $0x1e8] sm:$0xff]  ;;  %v902_v38 = vld [vmem:[%s7390_s0 + $0x1b8] sm:$0xff] }
 0x23a   : > { %5021 = vmatpush3.bf16.msra.mxu0 %v5721_v55  ;;  %v932_v55 = vld [vmem:[%s7390_s0 + $0x2a8] sm:$0xff]  ;;  %v881_v28 = vld [vmem:[%s7390_s0 + $0x110] sm:$0xff]  ;;  %v914_v44 = vld [vmem:[%s7390_s0 + $0x218] sm:$0xff] }
 0x23b   : > { %5022 = vmatprep.subr.bf16.mxu0 %v5722_v62  ;;  %v981_v59 = vpack.c.bf16 %v932_v55, %v932_v55  ;;  %v983_v62 = vpack.c.bf16 %v934_v60, %v934_v60  ;;  %v922_v45 = vld [vmem:[%s7390_s0 + $0x258] sm:$0xff]  ;;  %v916_v49 = vld [vmem:[%s7390_s0 + $0x228] sm:$0xff]  ;;  %v935_v60 = vld [vmem:[%s7390_s0 + $0x2c0] sm:$0xff] }
 0x23c   : > { %v5734_v63 = vld [vmem:[#allocation8] sm:$0xff]  }
 0x23d   : > { %1449 = vmatmul.mubr.bf16.gmra.mrb[4].mxu0 %v945_v54  ;;  %v924_v54 = vld [vmem:[%s7390_s0 + $0x268] sm:$0xff] }
 0x23e   : > { %1456 = vmatprep.mubr.bf16.mxu0 %v953_v1  ;;  %5023 = vmatpush3.bf16.msra.mxu0 %v5723_v2  ;;  %v973_v56 = vpack.c.bf16 %v924_v54, %v917_v53  ;;  %v859_v1 = vld [vmem:[%s7390_s0 + $0x60] sm:$0xff]  ;;  %v933_v2 = vld [vmem:[%s7390_s0 + $0x2b0] sm:$0xff]  ;;  %v928_v53 = vld [vmem:[%s7390_s0 + $0x288] sm:$0xff] }
 0x23f   : > { %1537 = vmatmul.mubr.bf16.gmra.mrb[4].mxu1 %v947_v61  ;;  %5024 = vmatprep.subr.bf16.mxu0 %v5724_v10  ;;  %v975_v61 = vpack.c.bf16 %v926_v58, %v919_v57  ;;  %v943_v4 = vpack.c.bf16 %v859_v1, %v852_v0  ;;  %v982_v5 = vpack.c.bf16 %v933_v2, %v933_v2  ;;  %v853_v10 = vld [vmem:[%s7390_s0 + $0x30] sm:$0xff]  ;;  %v936_v54 = vld [vmem:[%s7390_s0 + $0x2c8] sm:$0xff]  ;;  %v930_v57 = vld [vmem:[%s7390_s0 + $0x298] sm:$0xff] }
 0x240   : > { %1544 = vmatprep.mubr.bf16.mxu1 %v955_v9  ;;  %v873_v9 = vld [vmem:[%s7390_s0 + $0xd0] sm:$0xff]  ;;  %v985_v58 = vpack.c.bf16 %v936_v54, %v936_v54 }
 0x241   : > { %v950_v13 = vpack.c.bf16 %v873_v9, %v866_v8  ;;  %v5735_v1 = vld [vmem:[#allocation8 + $0x8] sm:$0xff]   ;;  %v5736_v2 = vld [vmem:[#allocation8 + $0x10] sm:$0xff]  }
 0x242   : > { %5025 = vmatpush3.bf16.msra.mxu0 %v5725_v12  ;;  %v942_v12 = vpack.c.bf16 %v858_v7, %v851_v6  ;;  %v5740_v6 = vld [vmem:[#allocation8 + $0x30] sm:$0xff]   ;;  %v5741_v7 = vld [vmem:[#allocation8 + $0x38] sm:$0xff]   ;;  %v5742_v8 = vld [vmem:[#allocation11] sm:$0xff]  }
 0x243   : > { %5026 = vmatprep.subr.bf16.mxu0 %v5726_v21  ;;  %v5743_v9 = vld [vmem:[#allocation11 + $0x8] sm:$0xff]  }
 0x245   : > { %1457 = vmatmul.mubr.bf16.gmra.mrb[8].mxu0 %v952_v11  ;;  %v860_v11 = vld [vmem:[%s7390_s0 + $0x68] sm:$0xff] }
 0x246   : > { %1464 = vmatprep.mubr.bf16.mxu0 %v960_v15  ;;  %5027 = vmatpush3.bf16.msra.mxu0 %v5727_v23  ;;  %v944_v14 = vpack.c.bf16 %v860_v11, %v853_v10  ;;  %v865_v15 = vld [vmem:[%s7390_s0 + $0x90] sm:$0xff] }
 0x247   : > { %1545 = vmatmul.mubr.bf16.gmra.mrb[8].mxu1 %v954_v18  ;;  %5028 = vmatprep.subr.bf16.mxu0 %v5728_v32  ;;  %v887_v18 = vld [vmem:[%s7390_s0 + $0x140] sm:$0xff]  ;;  %v949_v21 = vpack.c.bf16 %v872_v16, %v865_v15  ;;  %v5744_v10 = vld [vmem:[#allocation11 + $0x10] sm:$0xff]  }
 0x248   : > { %1552 = vmatprep.mubr.bf16.mxu1 %v962_v20  ;;  %v874_v20 = vld [vmem:[%s7390_s0 + $0xd8] sm:$0xff]  ;;  %v957_v22 = vpack.c.bf16 %v887_v18, %v880_v17 }
 0x249   : > { %v951_v23 = vpack.c.bf16 %v874_v20, %v867_v19 }
 0x24a   : > { %5029 = vmatpush3.bf16.msra.mxu0 %v5729_v33  ;;  %v893_v33 = vld [vmem:[%s7390_s0 + $0x170] sm:$0xff] }
 0x24b   : > { %5030 = vmatprep.subr.bf16.mxu0 %v5730_v40  ;;  %v971_v40 = vpack.c.bf16 %v915_v36, %v908_v35 }
 0x24d   : > { %1465 = vmatmul.mubr.bf16.gmra.mrb[12].mxu0 %v959_v29  ;;  %v888_v29 = vld [vmem:[%s7390_s0 + $0x148] sm:$0xff] }
 0x24e   : > { %1472 = vmatprep.mubr.bf16.mxu0 %v967_v31  ;;  %5031 = vmatpush3.bf16.msra.mxu0 %v5731_v41  ;;  %v964_v31 = vpack.c.bf16 %v901_v27, %v894_v26  ;;  %v958_v32 = vpack.c.bf16 %v888_v29, %v881_v28 }
 0x24f   : > { %1553 = vmatmul.mubr.bf16.gmra.mrb[12].mxu1 %v961_v34  ;;  %5032 = vmatprep.subr.bf16.mxu0 %v5732_v47  ;;  %v900_v34 = vld [vmem:[%s7390_s0 + $0x1a8] sm:$0xff]  ;;  %v970_v47 = vpack.c.bf16 %v914_v44, %v907_v42 }
 0x250   : > { %1560 = vmatprep.mubr.bf16.mxu1 %v969_v37  ;;  %v895_v37 = vld [vmem:[%s7390_s0 + $0x180] sm:$0xff]  ;;  %v963_v39 = vpack.c.bf16 %v900_v34, %v893_v33 }
 0x251   : > { %v965_v41 = vpack.c.bf16 %v902_v38, %v895_v37 }
 0x252   : > { %5033 = vmatpush3.bf16.msra.mxu0 %v5733_v50 }
 0x253   : > { %5197 = vmatprep.subr.bf16.mxu0 %v6836_v43 }
 0x255   : > { %1473 = vmatmul.mubr.bf16.gmra.mrb[16].mxu0 %v966_v46  ;;  %v929_v46 = vld [vmem:[%s7390_s0 + $0x290] sm:$0xff] }
 0x256   : > { %1480 = vmatprep.mubr.bf16.mxu0 %v974_v48  ;;  %v909_v48 = vld [vmem:[%s7390_s0 + $0x1f0] sm:$0xff]  ;;  %v978_v50 = vpack.c.bf16 %v929_v46, %v922_v45 }
 0x257   : > { %1561 = vmatmul.mubr.bf16.gmra.mrb[16].mxu1 %v968_v51  ;;  %v972_v51 = vpack.c.bf16 %v916_v49, %v909_v48 }
 0x258   : > { %1568 = vmatprep.mubr.bf16.mxu1 %v976_v52  ;;  %v921_v52 = vld [vmem:[%s7390_s0 + $0x250] sm:$0xff] }
 0x259   : > { %v977_v55 = vpack.c.bf16 %v928_v53, %v921_v52 }
 0x25d   : > { %1481 = vmatmul.mubr.bf16.gmra.mrb[20].mxu0 %v973_v56  ;;  %v923_v56 = vld [vmem:[%s7390_s0 + $0x260] sm:$0xff] }
 0x25e   : > { %1488 = vmatprep.mubr.bf16.mxu0 %v981_v59  ;;  %v979_v59 = vpack.c.bf16 %v930_v57, %v923_v56 }
 0x25f   : > { %1569 = vmatmul.mubr.bf16.gmra.mrb[20].mxu1 %v975_v61  ;;  %v984_v61 = vpack.c.bf16 %v935_v60, %v935_v60 }
 0x260   : > { %1576 = vmatprep.mubr.bf16.mxu1 %v983_v62  ;;  %v937_v62 = vld [vmem:[%s7390_s0 + $0x2d0] sm:$0xff] }
 0x261   : > { %v986_v0 = vpack.c.bf16 %v937_v62, %v937_v62 }
 0x265   : > { %1489 = vmatmul.mubr.bf16.gmra.mrb[24].mxu0 %v980_v3  ;;  %v5737_v3 = vld [vmem:[#allocation8 + $0x18] sm:$0xff]  }
 0x266   : > { %1616 = vmatprep.mubr.bf16.mxu0 %v943_v4  ;;  %v5738_v4 = vld [vmem:[#allocation8 + $0x20] sm:$0xff]  }
 0x267   : > { %1577 = vmatmul.mubr.bf16.gmra.mrb[24].mxu1 %v982_v5  ;;  %v5739_v5 = vld [vmem:[#allocation8 + $0x28] sm:$0xff]  }
 0x268   : > { %5169 = vmatprep.mubr.msk.bf16.mxu1 %vm6837_vm1, %v6836_v43 }
 0x26d   : > { %1617 = vmatmul.mubr.bf16.vlgmr.msra.gmra.mrb[28].mxu0 %v942_v12  ;;  %v5745_v12 = vld [vmem:[#allocation11 + $0x18] sm:$0xff]  }
 0x26e   : > { %1624 = vmatprep.mubr.bf16.mxu0 %v950_v13  ;;  %5198 = vmatpush3.bf16.msra.mxu0 %v5734_v63  ;;  %v7557_v13 = vld [vmem:[#allocation7] ss:$0 sm:$0xff] }
 0x26f   : > { %5170 = vmatmul.mubr.msk.bf16.vlgmr.msra.gmra.mrb[28].mxu1 %vm1386_vm0, %v944_v14  ;;  %5199 = vmatprep.subr.bf16.mxu0 %v6836_v43 }
 0x270   : > { %5173 = vmatprep.mubr.msk.bf16.mxu1 %vm6837_vm1, %v6836_v43  ;;  %5242 = vmatpush3.bf16.msra.mxu1 %v5742_v8 }
 0x271   : > { %5243 = vmatprep.subr.bf16.mxu1 %v6836_v43 }
 0x272   : > { %5200 = vmatpush3.bf16.msra.mxu0 %v5735_v1 }
 0x273   : > { %5201 = vmatprep.subr.bf16.mxu0 %v6836_v43 }
 0x274   : > { %5244 = vmatpush3.bf16.msra.mxu1 %v5743_v9 }
 0x275   : > { %1625 = vmatmul.mubr.bf16.gmra.mrb[32].mxu0 %v949_v21  ;;  %5245 = vmatprep.subr.bf16.mxu1 %v6836_v43 }
 0x276   : > { %1632 = vmatprep.mubr.bf16.mxu0 %v957_v22  ;;  %5202 = vmatpush3.bf16.msra.mxu0 %v5736_v2 }
 0x277   : > { %5174 = vmatmul.mubr.msk.bf16.gmra.mrb[32].mxu1 %vm1386_vm0, %v951_v23  ;;  %5203 = vmatprep.subr.bf16.mxu0 %v6836_v43 }
 0x278   : > { %5177 = vmatprep.mubr.msk.bf16.mxu1 %vm6837_vm1, %v6836_v43  ;;  %5246 = vmatpush3.bf16.msra.mxu1 %v5744_v10 }
 0x279   : > { %5247 = vmatprep.subr.bf16.mxu1 %v6836_v43 }
 0x27a   : > { %5204 = vmatpush3.bf16.msra.mxu0 %v5737_v3 }
 0x27b   : > { %5205 = vmatprep.subr.bf16.mxu0 %v6836_v43 }
 0x27c   : > { %5248 = vmatpush3.bf16.msra.mxu1 %v5745_v12 }
 0x27d   : > { %1633 = vmatmul.mubr.bf16.gmra.mrb[36].mxu0 %v956_v30  ;;  %5307 = vmatprep.subr.bf16.mxu1 %v6836_v43 }
 0x27e   : > { %1640 = vmatprep.mubr.bf16.mxu0 %v964_v31  ;;  %5206 = vmatpush3.bf16.msra.mxu0 %v5738_v4 }
 0x27f   : > { %5178 = vmatmul.mubr.msk.bf16.gmra.mrb[36].mxu1 %vm1386_vm0, %v958_v32  ;;  %5207 = vmatprep.subr.bf16.mxu0 %v6836_v43 }
 0x280   : > { %5181 = vmatprep.mubr.msk.bf16.mxu1 %vm6837_vm1, %v6836_v43 }
 0x282   : > { %5208 = vmatpush3.bf16.msra.mxu0 %v5739_v5 }
 0x283   : > { %5209 = vmatprep.subr.bf16.mxu0 %v6836_v43 }
 0x285   : > { %1641 = vmatmul.mubr.bf16.gmra.mrb[40].mxu0 %v963_v39 }
 0x286   : > { %1648 = vmatprep.mubr.bf16.mxu0 %v971_v40  ;;  %5210 = vmatpush3.bf16.msra.mxu0 %v5740_v6 }
 0x287   : > { %5182 = vmatmul.mubr.msk.bf16.gmra.mrb[40].mxu1 %vm1386_vm0, %v965_v41  ;;  %5211 = vmatprep.subr.bf16.mxu0 %v6836_v43 }
 0x288   : > { %5185 = vmatprep.mubr.msk.bf16.mxu1 %vm6837_vm1, %v6836_v43 }
 0x28a   : > { %5212 = vmatpush3.bf16.msra.mxu0 %v5741_v7 }
 0x28b   : > { %5277 = vmatprep.subr.bf16.mxu0 %v6836_v43 }
 0x28d   : > { %1649 = vmatmul.mubr.bf16.gmra.mrb[44].mxu0 %v970_v47 }
 0x28e   : > { %1656 = vmatprep.mubr.bf16.mxu0 %v978_v50 }
 0x28f   : > { %5186 = vmatmul.mubr.msk.bf16.gmra.mrb[44].mxu1 %vm1386_vm0, %v972_v51 }
 0x290   : > { %5189 = vmatprep.mubr.msk.bf16.mxu1 %vm6837_vm1, %v6836_v43 }
 0x295   : > { %1657 = vmatmul.mubr.bf16.gmra.mrb[48].mxu0 %v977_v55 }
 0x296   : > { %1664 = vmatprep.mubr.bf16.mxu0 %v985_v58 }
 0x297   : > { %5190 = vmatmul.mubr.msk.bf16.gmra.mrb[48].mxu1 %vm1386_vm0, %v979_v59 }
 0x298   : > { %5193 = vmatprep.mubr.msk.bf16.mxu1 %vm6837_vm1, %v6836_v43 }
 0x29d   : > { %1665 = vmatmul.mubr.bf16.gmra.mrb[52].mxu0 %v984_v61 }
 0x29e   : > { %5213 = vmatprep.mubr.msk.bf16.mxu0 %vm6837_vm1, %v6836_v43 }
 0x29f   : > { %5194 = vmatmul.mubr.msk.bf16.gmra.mrb[52].mxu1 %vm1386_vm0, %v986_v0 }
 0x2a0   : > { %5249 = vmatprep.mubr.msk.bf16.mxu1 %vm6837_vm1, %v6836_v43 }
 0x308   : > { %v4918_v11 = vpop.f32.mrb[0].mxu0 }
 0x309   : > { %v4919_v14 = vpop.f32.mrb[1].mxu0 }
 0x30a   : > { %v4920_v15 = vadd.f32 %v4919_v14, %v4918_v11  ;;  %v4921_v16 = vpop.f32.mrb[2].mxu0  ;;  %v4976_v17 = vpop.f32.mrb[0].mxu1 }
 0x30b   : > { %v4922_v18 = vpop.f32.mrb[3].mxu0  ;;  %v4977_v21 = vpop.f32.mrb[1].mxu1 }
 0x30c   : > { %v1443_v19 = vadd.f32 %v4920_v15, %v7557_v13  ;;  %v4923_v20 = vadd.f32 %v4922_v18, %v4921_v16  ;;  %v4978_v22 = vadd.f32 %v4977_v21, %v4976_v17  ;;  %v4979_v23 = vpop.f32.mrb[2].mxu1 }
 0x30d   : > { %v4980_v25 = vpop.f32.mrb[3].mxu1 }
 0x30e   : > { %v1446_v24 = vadd.f32 %v4923_v20, %v7557_v13  ;;  %v7563_v26 = vadd.f32 %v4978_v22, %v1443_v19  ;;  %v4981_v27 = vadd.f32 %v4980_v25, %v4979_v23 }
 0x310   : > { %v4924_v28 = vpop.f32.mrb[4].mxu0  ;;  %v7565_v29 = vadd.f32 %v4981_v27, %v1446_v24 }
 0x311   : > { %v4925_v30 = vpop.f32.mrb[5].mxu0 }
 0x312   : > { %v4926_v31 = vadd.f32 %v4925_v30, %v4924_v28  ;;  %v4927_v32 = vpop.f32.mrb[6].mxu0  ;;  %v4982_v33 = vpop.f32.mrb[4].mxu1 }
 0x313   : > { %v4928_v34 = vpop.f32.mrb[7].mxu0  ;;  %v4983_v37 = vpop.f32.mrb[5].mxu1 }
 0x314   : > { %v1451_v35 = vadd.f32 %v4926_v31, %v7557_v13  ;;  %v4929_v36 = vadd.f32 %v4928_v34, %v4927_v32  ;;  %v4984_v38 = vadd.f32 %v4983_v37, %v4982_v33  ;;  %v4985_v39 = vpop.f32.mrb[6].mxu1 }
 0x315   : > { %v4986_v41 = vpop.f32.mrb[7].mxu1 }
 0x316   : > { %v1454_v40 = vadd.f32 %v4929_v36, %v7557_v13  ;;  %v7569_v42 = vadd.f32 %v4984_v38, %v1451_v35  ;;  %v4987_v44 = vadd.f32 %v4986_v41, %v4985_v39 }
 0x318   : > { %v4930_v45 = vpop.f32.mrb[8].mxu0  ;;  %v7571_v46 = vadd.f32 %v4987_v44, %v1454_v40 }
 0x319   : > { %v4931_v47 = vpop.f32.mrb[9].mxu0 }
 0x31a   : > { %v4932_v48 = vadd.f32 %v4931_v47, %v4930_v45  ;;  %v4933_v49 = vpop.f32.mrb[10].mxu0  ;;  %v4988_v50 = vpop.f32.mrb[8].mxu1 }
 0x31b   : > { %v4934_v51 = vpop.f32.mrb[11].mxu0  ;;  %v4989_v54 = vpop.f32.mrb[9].mxu1 }
 0x31c   : > { %v1459_v52 = vadd.f32 %v4932_v48, %v7557_v13  ;;  %v4935_v53 = vadd.f32 %v4934_v51, %v4933_v49  ;;  %v4990_v55 = vadd.f32 %v4989_v54, %v4988_v50  ;;  %v4991_v56 = vpop.f32.mrb[10].mxu1 }
 0x31d   : > { %v4992_v58 = vpop.f32.mrb[11].mxu1 }
 0x31e   : > { %v1462_v57 = vadd.f32 %v4935_v53, %v7557_v13  ;;  %v7575_v59 = vadd.f32 %v4990_v55, %v1459_v52  ;;  %v4993_v60 = vadd.f32 %v4992_v58, %v4991_v56 }
 0x320   : > { %v4936_v61 = vpop.f32.mrb[12].mxu0  ;;  %v7577_v62 = vadd.f32 %v4993_v60, %v1462_v57 }
 0x321   : > { %v4937_v63 = vpop.f32.mrb[13].mxu0 }
 0x322   : > { %v4938_v0 = vadd.f32 %v4937_v63, %v4936_v61  ;;  %v4939_v1 = vpop.f32.mrb[14].mxu0  ;;  %v4994_v2 = vpop.f32.mrb[12].mxu1 }
 0x323   : > { %v4940_v3 = vpop.f32.mrb[15].mxu0  ;;  %v4995_v6 = vpop.f32.mrb[13].mxu1 }
 0x324   : > { %v1467_v4 = vadd.f32 %v4938_v0, %v7557_v13  ;;  %v4941_v5 = vadd.f32 %v4940_v3, %v4939_v1  ;;  %v4996_v7 = vadd.f32 %v4995_v6, %v4994_v2  ;;  %v4997_v8 = vpop.f32.mrb[14].mxu1 }
 0x325   : > { %v4998_v10 = vpop.f32.mrb[15].mxu1 }
 0x326   : > { %v1470_v9 = vadd.f32 %v4941_v5, %v7557_v13  ;;  %v7581_v11 = vadd.f32 %v4996_v7, %v1467_v4  ;;  %v4999_v12 = vadd.f32 %v4998_v10, %v4997_v8 }
 0x328   : > { %v4942_v14 = vpop.f32.mrb[16].mxu0  ;;  %v7583_v15 = vadd.f32 %v4999_v12, %v1470_v9 }
 0x329   : > { %v4943_v16 = vpop.f32.mrb[17].mxu0 }
 0x32a   : > { %v4944_v17 = vadd.f32 %v4943_v16, %v4942_v14  ;;  %v4945_v18 = vpop.f32.mrb[18].mxu0  ;;  %v5000_v19 = vpop.f32.mrb[16].mxu1 }
 0x32b   : > { %v4946_v20 = vpop.f32.mrb[19].mxu0  ;;  %v5001_v23 = vpop.f32.mrb[17].mxu1 }
 0x32c   : > { %v1475_v21 = vadd.f32 %v4944_v17, %v7557_v13  ;;  %v4947_v22 = vadd.f32 %v4946_v20, %v4945_v18  ;;  %v5002_v24 = vadd.f32 %v5001_v23, %v5000_v19  ;;  %v5003_v25 = vpop.f32.mrb[18].mxu1 }
 0x32d   : > { %v5004_v28 = vpop.f32.mrb[19].mxu1 }
 0x32e   : > { %v1478_v27 = vadd.f32 %v4947_v22, %v7557_v13  ;;  %v7587_v30 = vadd.f32 %v5002_v24, %v1475_v21  ;;  %v5005_v31 = vadd.f32 %v5004_v28, %v5003_v25 }
 0x330   : > { %v4948_v32 = vpop.f32.mrb[20].mxu0  ;;  %v7589_v33 = vadd.f32 %v5005_v31, %v1478_v27 }
 0x331   : > { %v4949_v34 = vpop.f32.mrb[21].mxu0 }
 0x332   : > { %v4950_v35 = vadd.f32 %v4949_v34, %v4948_v32  ;;  %v4951_v36 = vpop.f32.mrb[22].mxu0  ;;  %v5006_v37 = vpop.f32.mrb[20].mxu1 }
 0x333   : > { %v4952_v38 = vpop.f32.mrb[23].mxu0  ;;  %v5007_v41 = vpop.f32.mrb[21].mxu1 }
 0x334   : > { %v1483_v39 = vadd.f32 %v4950_v35, %v7557_v13  ;;  %v4953_v40 = vadd.f32 %v4952_v38, %v4951_v36  ;;  %v5008_v44 = vadd.f32 %v5007_v41, %v5006_v37  ;;  %v5009_v45 = vpop.f32.mrb[22].mxu1 }
 0x335   : > { %v5010_v48 = vpop.f32.mrb[23].mxu1 }
 0x336   : > { %v1486_v47 = vadd.f32 %v4953_v40, %v7557_v13  ;;  %v7593_v49 = vadd.f32 %v5008_v44, %v1483_v39  ;;  %v5011_v50 = vadd.f32 %v5010_v48, %v5009_v45 }
 0x338   : > { %v4954_v51 = vpop.f32.mrb[24].mxu0  ;;  %v7595_v52 = vadd.f32 %v5011_v50, %v1486_v47 }
 0x339   : > { %v4955_v53 = vpop.f32.mrb[25].mxu0 }
 0x33a   : > { %v4956_v54 = vadd.f32 %v4955_v53, %v4954_v51  ;;  %v4957_v55 = vpop.f32.mrb[26].mxu0  ;;  %v5012_v56 = vpop.f32.mrb[24].mxu1 }
 0x33b   : > { %v4958_v57 = vpop.f32.mrb[27].mxu0  ;;  %v5013_v60 = vpop.f32.mrb[25].mxu1 }
 0x33c   : > { %v1491_v58 = vadd.f32 %v4956_v54, %v7557_v13  ;;  %v5014_v61 = vadd.f32 %v5013_v60, %v5012_v56  ;;  %v5015_v63 = vpop.f32.mrb[26].mxu1 }
 0x33d   : > { %v5016_v0 = vpop.f32.mrb[27].mxu1 }
 0x33e   : > { %v7598_v1 = vadd.f32 %v5014_v61, %v1491_v58 }
 0x340   : > { %v5034_v2 = vpop.f32.mrb[28].mxu0 }
 0x341   : > { %v5035_v3 = vpop.f32.mrb[29].mxu0 }
 0x342   : > { %v5036_v4 = vadd.f32 %v5035_v3, %v5034_v2  ;;  %v5037_v5 = vpop.f32.mrb[30].mxu0  ;;  %v1706_v7 = vpop.f32.mrb[28].mxu1 }
 0x343   : > { %v5038_v6 = vpop.f32.mrb[31].mxu0  ;;  %v5171_v10 = vpop.f32.mrb[29].mxu1 }
 0x344   : > { %v5039_v8 = vadd.f32 %v5038_v6, %v5037_v5  ;;  %v1619_v9 = vadd.f32 %v5036_v4, %v7563_v26  ;;  %v1709_v12 = vpop.f32.mrb[30].mxu1 }
 0x345   : > { %v5172_v16 = vpop.f32.mrb[31].mxu1 }
 0x346   : > { %v1707_v14 = vadd.f32 %v1706_v7, %v1619_v9  ;;  %v1622_v13 = vadd.f32 %v5039_v8, %v7565_v29 }
 0x348   : > { %v1710_v17 = vadd.f32 %v1709_v12, %v1622_v13  ;;  %v5040_v18 = vpop.f32.mrb[32].mxu0  ;;  %v1760_v20 = vmax.f32 %v1707_v14, 0.0 }
 0x349   : > { %v5041_v19 = vpop.f32.mrb[33].mxu0 }
 0x34a   : > { %v1761_v21 = vmax.f32 %v1710_v17, 0.0  ;;  %v5042_v22 = vadd.f32 %v5041_v19, %v5040_v18  ;;  %v5043_v23 = vpop.f32.mrb[34].mxu0  ;;  %v1714_v25 = vpop.f32.mrb[32].mxu1 }
 0x34b   : > { %v5044_v24 = vpop.f32.mrb[35].mxu0  ;;  %v5175_v26 = vpop.f32.mrb[33].mxu1 }
 0x34c   : > { %v1773_v27 = vpack.c.bf16 %v1761_v21, %v1760_v20  ;;  %v5045_v28 = vadd.f32 %v5044_v24, %v5043_v23  ;;  %v1627_v31 = vadd.f32 %v5042_v22, %v7569_v42  ;;  %v1717_v32 = vpop.f32.mrb[34].mxu1 }
 0x34d   : > { %v5176_v29 = vpop.f32.mrb[35].mxu1 }
 0x34e   : > { %v1715_v34 = vadd.f32 %v1714_v25, %v1627_v31  ;;  %v1630_v35 = vadd.f32 %v5045_v28, %v7571_v46  ;;  %5214 = vmatmul.mubr.bf16.vlgmr.msra.gmra.mrb[56].mxu0 %v1773_v27 }
 0x34f   : > { %5217 = vmatprep.mubr.msk.bf16.mxu0 %vm6837_vm1, %v6836_v43 }
 0x350   : > { %v1718_v36 = vadd.f32 %v1717_v32, %v1630_v35  ;;  %v5046_v37 = vpop.f32.mrb[36].mxu0  ;;  %v1762_v39 = vmax.f32 %v1715_v34, 0.0 }
 0x351   : > { %v5047_v38 = vpop.f32.mrb[37].mxu0 }
 0x352   : > { %v1763_v40 = vmax.f32 %v1718_v36, 0.0  ;;  %v5048_v41 = vadd.f32 %v5047_v38, %v5046_v37  ;;  %v5049_v44 = vpop.f32.mrb[38].mxu0  ;;  %v1722_v47 = vpop.f32.mrb[36].mxu1 }
 0x353   : > { %v5050_v45 = vpop.f32.mrb[39].mxu0  ;;  %v5179_v51 = vpop.f32.mrb[37].mxu1 }
 0x354   : > { %v1774_v42 = vpack.c.bf16 %v1763_v40, %v1762_v39  ;;  %v5051_v48 = vadd.f32 %v5050_v45, %v5049_v44  ;;  %v1635_v50 = vadd.f32 %v5048_v41, %v7575_v59  ;;  %v1725_v46 = vpop.f32.mrb[38].mxu1 }
 0x355   : > { %v5180_v55 = vpop.f32.mrb[39].mxu1 }
 0x356   : > { %v1723_v53 = vadd.f32 %v1722_v47, %v1635_v50  ;;  %v1638_v54 = vadd.f32 %v5051_v48, %v7577_v62  ;;  %5218 = vmatmul.mubr.bf16.gmra.mrb[60].mxu0 %v1774_v42 }
 0x357   : > { %5221 = vmatprep.mubr.msk.bf16.mxu0 %vm6837_vm1, %v6836_v43 }
 0x358   : > { %v1726_v56 = vadd.f32 %v1725_v46, %v1638_v54  ;;  %v5052_v57 = vpop.f32.mrb[40].mxu0  ;;  %v1764_v60 = vmax.f32 %v1723_v53, 0.0 }
 0x359   : > { %v5053_v58 = vpop.f32.mrb[41].mxu0 }
 0x35a   : > { %v1765_v61 = vmax.f32 %v1726_v56, 0.0  ;;  %v5054_v63 = vadd.f32 %v5053_v58, %v5052_v57  ;;  %v5055_v0 = vpop.f32.mrb[42].mxu0  ;;  %v1730_v3 = vpop.f32.mrb[40].mxu1 }
 0x35b   : > { %v5056_v2 = vpop.f32.mrb[43].mxu0  ;;  %v5183_v6 = vpop.f32.mrb[41].mxu1 }
 0x35c   : > { %v1775_v59 = vpack.c.bf16 %v1765_v61, %v1764_v60  ;;  %v5057_v4 = vadd.f32 %v5056_v2, %v5055_v0  ;;  %v1643_v5 = vadd.f32 %v5054_v63, %v7581_v11  ;;  %v1733_v62 = vpop.f32.mrb[42].mxu1  ;;  %v5746_v0 = vld [vmem:[#allocation14] sm:$0x3f]  }
 0x35d   : > { %v5184_v9 = vpop.f32.mrb[43].mxu1  ;;  %v2166_v2 = vsel %vm2164_vm2, %v5746_v0, 0 }
 0x35e   : > { %v1731_v7 = vadd.f32 %v1730_v3, %v1643_v5  ;;  %v1646_v8 = vadd.f32 %v5057_v4, %v7583_v15  ;;  %5222 = vmatmul.mubr.bf16.gmra.mrb[64].mxu0 %v1775_v59 }
 0x35f   : > { %5225 = vmatprep.mubr.msk.bf16.mxu0 %vm6837_vm1, %v6836_v43  ;;  %5278 = vmatpush3.bf16.msra.mxu0 %v2166_v2  ;;  %v5747_v2 = vld [vmem:[#allocation17] sm:$0xff]  }
 0x360   : > { %v1734_v10 = vadd.f32 %v1733_v62, %v1646_v8  ;;  %v5058_v12 = vpop.f32.mrb[44].mxu0  ;;  %v1766_v13 = vmax.f32 %v1731_v7, 0.0  ;;  %5351 = vmatprep.subr.bf16.mxu0 %v6836_v43 }
 0x361   : > { %v5059_v14 = vpop.f32.mrb[45].mxu0 }
 0x362   : > { %v1767_v16 = vmax.f32 %v1734_v10, 0.0  ;;  %v5060_v17 = vadd.f32 %v5059_v14, %v5058_v12  ;;  %v5061_v18 = vpop.f32.mrb[46].mxu0  ;;  %v1738_v20 = vpop.f32.mrb[44].mxu1 }
 0x363   : > { %v5062_v19 = vpop.f32.mrb[47].mxu0  ;;  %v5187_v23 = vpop.f32.mrb[45].mxu1 }
 0x364   : > { %v1776_v11 = vpack.c.bf16 %v1767_v16, %v1766_v13  ;;  %v5063_v21 = vadd.f32 %v5062_v19, %v5061_v18  ;;  %v1651_v22 = vadd.f32 %v5060_v17, %v7587_v30  ;;  %v1741_v15 = vpop.f32.mrb[46].mxu1 }
 0x365   : > { %v5188_v27 = vpop.f32.mrb[47].mxu1 }
 0x366   : > { %v1739_v24 = vadd.f32 %v1738_v20, %v1651_v22  ;;  %v1654_v25 = vadd.f32 %v5063_v21, %v7589_v33  ;;  %5226 = vmatmul.mubr.bf16.gmra.mrb[68].mxu0 %v1776_v11 }
 0x367   : > { %5229 = vmatprep.mubr.msk.bf16.mxu0 %vm6837_vm1, %v6836_v43 }
 0x368   : > { %v1742_v28 = vadd.f32 %v1741_v15, %v1654_v25  ;;  %v5064_v31 = vpop.f32.mrb[48].mxu0  ;;  %v1768_v32 = vmax.f32 %v1739_v24, 0.0 }
 0x369   : > { %v5065_v26 = vpop.f32.mrb[49].mxu0 }
 0x36a   : > { %v1769_v34 = vmax.f32 %v1742_v28, 0.0  ;;  %v5066_v35 = vadd.f32 %v5065_v26, %v5064_v31  ;;  %v5067_v29 = vpop.f32.mrb[50].mxu0  ;;  %v1746_v37 = vpop.f32.mrb[48].mxu1 }
 0x36b   : > { %v5068_v36 = vpop.f32.mrb[51].mxu0  ;;  %v5191_v40 = vpop.f32.mrb[49].mxu1 }
 0x36c   : > { %v1777_v30 = vpack.c.bf16 %v1769_v34, %v1768_v32  ;;  %v5069_v38 = vadd.f32 %v5068_v36, %v5067_v29  ;;  %v1659_v39 = vadd.f32 %v5066_v35, %v7593_v49  ;;  %v1749_v33 = vpop.f32.mrb[50].mxu1 }
 0x36d   : > { %v5192_v45 = vpop.f32.mrb[51].mxu1 }
 0x36e   : > { %v1747_v41 = vadd.f32 %v1746_v37, %v1659_v39  ;;  %v1662_v44 = vadd.f32 %v5069_v38, %v7595_v52  ;;  %5230 = vmatmul.mubr.bf16.gmra.mrb[72].mxu0 %v1777_v30 }
 0x36f   : > { %5233 = vmatprep.mubr.msk.bf16.mxu0 %vm6837_vm1, %v6836_v43 }
 0x370   : > { %v1750_v47 = vadd.f32 %v1749_v33, %v1662_v44  ;;  %v5070_v42 = vpop.f32.mrb[52].mxu0  ;;  %v1770_v50 = vmax.f32 %v1747_v41, 0.0 }
 0x371   : > { %v5071_v48 = vpop.f32.mrb[53].mxu0 }
 0x372   : > { %v1771_v51 = vmax.f32 %v1750_v47, 0.0  ;;  %v5072_v46 = vadd.f32 %v5071_v48, %v5070_v42  ;;  %v5073_v53 = vpop.f32.mrb[54].mxu0  ;;  %v1754_v54 = vpop.f32.mrb[52].mxu1 }
 0x373   : > { %v5074_v55 = vpop.f32.mrb[55].mxu0  ;;  %v5195_v57 = vpop.f32.mrb[53].mxu1 }
 0x374   : > { %v1778_v49 = vpack.c.bf16 %v1771_v51, %v1770_v50  ;;  %v1667_v56 = vadd.f32 %v5072_v46, %v7598_v1  ;;  %v1757_v58 = vpop.f32.mrb[54].mxu1  ;;  %v7629_v1 = vld [vmem:[#allocation10] ss:$0 sm:$0xff] }
 0x375   : > { %v5196_v60 = vpop.f32.mrb[55].mxu1 }
 0x376   : > { %v1755_v52 = vadd.f32 %v1754_v54, %v1667_v56  ;;  %5234 = vmatmul.mubr.bf16.gmra.mrb[76].mxu0 %v1778_v49 }
 0x377   : > { %5237 = vmatprep.mubr.msk.bf16.mxu0 %vm6837_vm1, %v6836_v43 }
 0x378   : > { %v1772_v61 = vmax.f32 %v1755_v52, 0.0 }
 0x37a   : > { %v1779_v63 = vpack.c.bf16 %v1772_v61, %v1772_v61 }
 0x37e   : > { %5238 = vmatmul.mubr.bf16.gmra.mrb[80].mxu0 %v1779_v63 }
 0x37f   : > { %5279 = vmatprep.mubr.msk.bf16.mxu0 %vm6837_vm1, %v6836_v43 }
 0x421   : > { %v1885_v3 = vpop.f32.mrb[56].mxu0 }
 0x422   : > { %v1886_v59 = vadd.f32 %v7629_v1, %v1885_v3  ;;  %v5215_v4 = vpop.f32.mrb[57].mxu0  ;;  %v5748_v3 = vld [vmem:[#allocation17 + $0x8] sm:$0xff]  }
 0x423   : > { %v1888_v5 = vpop.f32.mrb[58].mxu0  ;;  %v5751_v4 = vld [vmem:[#allocation17 + $0x20] sm:$0xff]  }
 0x424   : > { %v1889_v6 = vadd.f32 %v7629_v1, %v1888_v5  ;;  %v5216_v62 = vpop.f32.mrb[59].mxu0  ;;  %v1939_v7 = vmax.f32 %v1886_v59, 0.0  ;;  %v5750_v59 = vld [vmem:[#allocation17 + $0x18] sm:$0xff]   ;;  %v5752_v5 = vld [vmem:[#allocation17 + $0x28] sm:$0xff]  }
 0x425   : > { %v7672_v62 = vld [vmem:[#allocation13] ss:$0 sm:$0xff] }
 0x426   : > { %v1940_v8 = vmax.f32 %v1889_v6, 0.0  ;;  %v5753_v6 = vld [vmem:[#allocation17 + $0x30] sm:$0xff]  }
 0x428   : > { %v1952_v9 = vpack.c.bf16 %v1940_v8, %v1939_v7 }
 0x429   : > { %v1893_v10 = vpop.f32.mrb[60].mxu0 }
 0x42a   : > { %v1894_v12 = vadd.f32 %v7629_v1, %v1893_v10  ;;  %v5219_v14 = vpop.f32.mrb[61].mxu0  ;;  %5250 = vmatmul.mubr.msk.bf16.vlgmr.msra.gmra.mrb[56].mxu1 %vm1998_vm3, %v1952_v9 }
 0x42b   : > { %v1896_v13 = vpop.f32.mrb[62].mxu0  ;;  %5253 = vmatprep.mubr.msk.bf16.mxu1 %vm6837_vm1, %v6836_v43  ;;  %5308 = vmatpush3.bf16.msra.mxu1 %v5747_v2 }
 0x42c   : > { %v1897_v16 = vadd.f32 %v7629_v1, %v1896_v13  ;;  %v5220_v17 = vpop.f32.mrb[63].mxu0  ;;  %v1941_v18 = vmax.f32 %v1894_v12, 0.0  ;;  %5309 = vmatprep.subr.bf16.mxu1 %v6836_v43 }
 0x42e   : > { %v1942_v19 = vmax.f32 %v1897_v16, 0.0 }
 0x42f   : > { %5310 = vmatpush3.bf16.msra.mxu1 %v5748_v3 }
 0x430   : > { %v1953_v20 = vpack.c.bf16 %v1942_v19, %v1941_v18  ;;  %5311 = vmatprep.subr.bf16.mxu1 %v6836_v43 }
 0x431   : > { %v1901_v11 = vpop.f32.mrb[64].mxu0 }
 0x432   : > { %v1902_v21 = vadd.f32 %v7629_v1, %v1901_v11  ;;  %v5223_v22 = vpop.f32.mrb[65].mxu0  ;;  %5254 = vmatmul.mubr.msk.bf16.gmra.mrb[60].mxu1 %vm1998_vm3, %v1953_v20 }
 0x433   : > { %v1904_v23 = vpop.f32.mrb[66].mxu0  ;;  %5257 = vmatprep.mubr.msk.bf16.mxu1 %vm6837_vm1, %v6836_v43 }
 0x434   : > { %v1905_v15 = vadd.f32 %v7629_v1, %v1904_v23  ;;  %v5224_v24 = vpop.f32.mrb[67].mxu0  ;;  %v1943_v25 = vmax.f32 %v1902_v21, 0.0 }
 0x436   : > { %v1944_v27 = vmax.f32 %v1905_v15, 0.0 }
 0x438   : > { %v1954_v28 = vpack.c.bf16 %v1944_v27, %v1943_v25 }
 0x439   : > { %v1909_v31 = vpop.f32.mrb[68].mxu0 }
 0x43a   : > { %v1910_v26 = vadd.f32 %v7629_v1, %v1909_v31  ;;  %v5227_v32 = vpop.f32.mrb[69].mxu0  ;;  %5258 = vmatmul.mubr.msk.bf16.gmra.mrb[64].mxu1 %vm1998_vm3, %v1954_v28 }
 0x43b   : > { %v1912_v34 = vpop.f32.mrb[70].mxu0  ;;  %5261 = vmatprep.mubr.msk.bf16.mxu1 %vm6837_vm1, %v6836_v43 }
 0x43c   : > { %v1913_v35 = vadd.f32 %v7629_v1, %v1912_v34  ;;  %v5228_v29 = vpop.f32.mrb[71].mxu0  ;;  %v1945_v36 = vmax.f32 %v1910_v26, 0.0 }
 0x43e   : > { %v1946_v37 = vmax.f32 %v1913_v35, 0.0 }
 0x440   : > { %v1955_v30 = vpack.c.bf16 %v1946_v37, %v1945_v36 }
 0x441   : > { %v1917_v38 = vpop.f32.mrb[72].mxu0 }
 0x442   : > { %v1918_v39 = vadd.f32 %v7629_v1, %v1917_v38  ;;  %v5231_v40 = vpop.f32.mrb[73].mxu0  ;;  %5262 = vmatmul.mubr.msk.bf16.gmra.mrb[68].mxu1 %vm1998_vm3, %v1955_v30 }
 0x443   : > { %v1920_v33 = vpop.f32.mrb[74].mxu0  ;;  %5265 = vmatprep.mubr.msk.bf16.mxu1 %vm6837_vm1, %v6836_v43 }
 0x444   : > { %v1921_v41 = vadd.f32 %v7629_v1, %v1920_v33  ;;  %v5232_v44 = vpop.f32.mrb[75].mxu0  ;;  %v1947_v45 = vmax.f32 %v1918_v39, 0.0 }
 0x446   : > { %v1948_v47 = vmax.f32 %v1921_v41, 0.0 }
 0x448   : > { %v1956_v42 = vpack.c.bf16 %v1948_v47, %v1947_v45 }
 0x449   : > { %v1925_v48 = vpop.f32.mrb[76].mxu0 }
 0x44a   : > { %v1926_v50 = vadd.f32 %v7629_v1, %v1925_v48  ;;  %v5235_v51 = vpop.f32.mrb[77].mxu0  ;;  %5266 = vmatmul.mubr.msk.bf16.gmra.mrb[72].mxu1 %vm1998_vm3, %v1956_v42 }
 0x44b   : > { %v1928_v46 = vpop.f32.mrb[78].mxu0  ;;  %5269 = vmatprep.mubr.msk.bf16.mxu1 %vm6837_vm1, %v6836_v43 }
 0x44c   : > { %v1929_v53 = vadd.f32 %v7629_v1, %v1928_v46  ;;  %v5236_v54 = vpop.f32.mrb[79].mxu0  ;;  %v1949_v55 = vmax.f32 %v1926_v50, 0.0 }
 0x44e   : > { %v1950_v49 = vmax.f32 %v1929_v53, 0.0 }
 0x450   : > { %v1957_v56 = vpack.c.bf16 %v1950_v49, %v1949_v55 }
 0x451   : > { %v1933_v57 = vpop.f32.mrb[80].mxu0 }
 0x452   : > { %v1934_v58 = vadd.f32 %v7629_v1, %v1933_v57  ;;  %v5239_v52 = vpop.f32.mrb[81].mxu0  ;;  %5270 = vmatmul.mubr.msk.bf16.gmra.mrb[76].mxu1 %vm1998_vm3, %v1957_v56  ;;  %v5749_v1 = vld [vmem:[#allocation17 + $0x10] sm:$0xff]  }
 0x453   : > { %v1936_v60 = vpop.f32.mrb[82].mxu0  ;;  %5273 = vmatprep.mubr.msk.bf16.mxu1 %vm6837_vm1, %v6836_v43  ;;  %5312 = vmatpush3.bf16.msra.mxu1 %v5749_v1 }
 0x454   : > { %v1951_v61 = vmax.f32 %v1934_v58, 0.0  ;;  %v5240_v63 = vpop.f32.mrb[83].mxu0  ;;  %5313 = vmatprep.subr.bf16.mxu1 %v6836_v43 }
 0x456   : > { %v1958_v0 = vpack.c.bf16 %v1951_v61, %v1951_v61 }
 0x457   : > { %5314 = vmatpush3.bf16.msra.mxu1 %v5750_v59 }
 0x458   : > { %5315 = vmatprep.subr.bf16.mxu1 %v6836_v43 }
 0x45a   : > { %5274 = vmatmul.mubr.msk.bf16.gmra.mrb[80].mxu1 %vm1998_vm3, %v1958_v0 }
 0x45b   : > { %5323 = vmatprep.mubr.msk.bf16.mxu1 %vm6837_vm1, %v6836_v43  ;;  %5316 = vmatpush3.bf16.msra.mxu1 %v5751_v4 }
 0x45c   : > { %5317 = vmatprep.subr.bf16.mxu1 %v6836_v43 }
 0x45f   : > { %5318 = vmatpush3.bf16.msra.mxu1 %v5752_v5 }
 0x460   : > { %5319 = vmatprep.subr.bf16.mxu1 %v6836_v43 }
 0x463   : > { %5320 = vmatpush3.bf16.msra.mxu1 %v5753_v6  ;;  %v5754_v6 = vld [vmem:[#allocation17 + $0x38] sm:$0xff]  }
 0x464   : > { %5321 = vmatprep.subr.bf16.mxu1 %v6836_v43 }
 0x467   : > { %5322 = vmatpush3.bf16.msra.mxu1 %v5754_v6 }
 0x468   : > { %5381 = vmatprep.subr.bf16.mxu1 %v6836_v43 }
 0x4fd   : > { %v2054_v7 = vpop.f32.mrb[56].mxu1 }
 0x4fe   : > { %v2055_v8 = vadd.f32 %v7672_v62, %v2054_v7  ;;  %v5251_v9 = vpop.f32.mrb[57].mxu1 }
 0x4ff   : > { %v2057_v10 = vpop.f32.mrb[58].mxu1 }
 0x500   : > { %v2058_v12 = vadd.f32 %v7672_v62, %v2057_v10  ;;  %v5252_v14 = vpop.f32.mrb[59].mxu1  ;;  %v2108_v13 = vmax.f32 %v2055_v8, 0.0  ;;  %v7711_v8 = vld [vmem:[#allocation16] ss:$0 sm:$0xff] }
 0x502   : > { %v2109_v16 = vmax.f32 %v2058_v12, 0.0 }
 0x504   : > { %v2121_v17 = vpack.c.bf16 %v2109_v16, %v2108_v13 }
 0x505   : > { %v2062_v18 = vpop.f32.mrb[60].mxu1 }
 0x506   : > { %v2063_v19 = vadd.f32 %v7672_v62, %v2062_v18  ;;  %v5255_v20 = vpop.f32.mrb[61].mxu1  ;;  %5280 = vmatmul.mubr.msk.bf16.vlgmr.msra.gmra.mrb[84].mxu0 %vm2142_vm4, %v2121_v17 }
 0x507   : > { %v2065_v11 = vpop.f32.mrb[62].mxu1  ;;  %5283 = vmatprep.mubr.msk.bf16.mxu0 %vm6837_vm1, %v6836_v43 }
 0x508   : > { %v2066_v21 = vadd.f32 %v7672_v62, %v2065_v11  ;;  %v5256_v22 = vpop.f32.mrb[63].mxu1  ;;  %v2110_v23 = vmax.f32 %v2063_v19, 0.0 }
 0x50a   : > { %v2111_v15 = vmax.f32 %v2066_v21, 0.0 }
 0x50c   : > { %v2122_v24 = vpack.c.bf16 %v2111_v15, %v2110_v23 }
 0x50d   : > { %v2070_v25 = vpop.f32.mrb[64].mxu1 }
 0x50e   : > { %v2071_v27 = vadd.f32 %v7672_v62, %v2070_v25  ;;  %v5259_v28 = vpop.f32.mrb[65].mxu1  ;;  %5284 = vmatmul.mubr.msk.bf16.gmra.mrb[88].mxu0 %vm2142_vm4, %v2122_v24 }
 0x50f   : > { %v2073_v31 = vpop.f32.mrb[66].mxu1  ;;  %5287 = vmatprep.mubr.msk.bf16.mxu0 %vm6837_vm1, %v6836_v43 }
 0x510   : > { %v2074_v26 = vadd.f32 %v7672_v62, %v2073_v31  ;;  %v5260_v32 = vpop.f32.mrb[67].mxu1  ;;  %v2112_v34 = vmax.f32 %v2071_v27, 0.0 }
 0x512   : > { %v2113_v35 = vmax.f32 %v2074_v26, 0.0 }
 0x514   : > { %v2123_v29 = vpack.c.bf16 %v2113_v35, %v2112_v34 }
 0x515   : > { %v2078_v36 = vpop.f32.mrb[68].mxu1 }
 0x516   : > { %v2079_v37 = vadd.f32 %v7672_v62, %v2078_v36  ;;  %v5263_v30 = vpop.f32.mrb[69].mxu1  ;;  %5288 = vmatmul.mubr.msk.bf16.gmra.mrb[92].mxu0 %vm2142_vm4, %v2123_v29 }
 0x517   : > { %v2081_v38 = vpop.f32.mrb[70].mxu1  ;;  %5291 = vmatprep.mubr.msk.bf16.mxu0 %vm6837_vm1, %v6836_v43 }
 0x518   : > { %v2082_v39 = vadd.f32 %v7672_v62, %v2081_v38  ;;  %v5264_v40 = vpop.f32.mrb[71].mxu1  ;;  %v2114_v33 = vmax.f32 %v2079_v37, 0.0 }
 0x51a   : > { %v2115_v41 = vmax.f32 %v2082_v39, 0.0 }
 0x51c   : > { %v2124_v44 = vpack.c.bf16 %v2115_v41, %v2114_v33 }
 0x51d   : > { %v2086_v45 = vpop.f32.mrb[72].mxu1 }
 0x51e   : > { %v2087_v47 = vadd.f32 %v7672_v62, %v2086_v45  ;;  %v5267_v42 = vpop.f32.mrb[73].mxu1  ;;  %5292 = vmatmul.mubr.msk.bf16.gmra.mrb[96].mxu0 %vm2142_vm4, %v2124_v44 }
 0x51f   : > { %v2089_v48 = vpop.f32.mrb[74].mxu1  ;;  %5295 = vmatprep.mubr.msk.bf16.mxu0 %vm6837_vm1, %v6836_v43 }
 0x520   : > { %v2090_v50 = vadd.f32 %v7672_v62, %v2089_v48  ;;  %v5268_v51 = vpop.f32.mrb[75].mxu1  ;;  %v2116_v46 = vmax.f32 %v2087_v47, 0.0 }
 0x522   : > { %v2117_v53 = vmax.f32 %v2090_v50, 0.0 }
 0x524   : > { %v2125_v54 = vpack.c.bf16 %v2117_v53, %v2116_v46 }
 0x525   : > { %v2094_v55 = vpop.f32.mrb[76].mxu1 }
 0x526   : > { %v2095_v49 = vadd.f32 %v7672_v62, %v2094_v55  ;;  %v5271_v56 = vpop.f32.mrb[77].mxu1  ;;  %5296 = vmatmul.mubr.msk.bf16.gmra.mrb[100].mxu0 %vm2142_vm4, %v2125_v54 }
 0x527   : > { %v2097_v57 = vpop.f32.mrb[78].mxu1  ;;  %5299 = vmatprep.mubr.msk.bf16.mxu0 %vm6837_vm1, %v6836_v43 }
 0x528   : > { %v2098_v58 = vadd.f32 %v7672_v62, %v2097_v57  ;;  %v5272_v52 = vpop.f32.mrb[79].mxu1  ;;  %v2118_v60 = vmax.f32 %v2095_v49, 0.0 }
 0x529   : > { %v5756_v52 = vld [vmem:[#allocation23] sm:$0xff]  }
 0x52a   : > { %v2119_v61 = vmax.f32 %v2098_v58, 0.0 }
 0x52c   : > { %v2126_v63 = vpack.c.bf16 %v2119_v61, %v2118_v60  ;;  %v5757_v60 = vld [vmem:[#allocation23 + $0x8] sm:$0xff]   ;;  %v5758_v61 = vld [vmem:[#allocation23 + $0x10] sm:$0xff]  }
 0x52d   : > { %v2102_v0 = vpop.f32.mrb[80].mxu1 }
 0x52e   : > { %v2103_v2 = vadd.f32 %v7672_v62, %v2102_v0  ;;  %v5275_v3 = vpop.f32.mrb[81].mxu1  ;;  %5300 = vmatmul.mubr.msk.bf16.gmra.mrb[104].mxu0 %vm2142_vm4, %v2126_v63  ;;  %v5755_v62 = vld [vmem:[#allocation20] sm:$0x3f]   ;;  %v7771_v0 = vld [vmem:[#allocation19] ss:$0 sm:$0xff] }
 0x52f   : > { %v2105_v1 = vpop.f32.mrb[82].mxu1  ;;  %5303 = vmatprep.mubr.msk.bf16.mxu0 %vm6837_vm1, %v6836_v43  ;;  %v2492_v7 = vsel %vm2164_vm2, %v5755_v62, 0  ;;  %v5759_v63 = vld [vmem:[#allocation23 + $0x18] sm:$0xff]  }
 0x530   : > { %v2120_v59 = vmax.f32 %v2103_v2, 0.0  ;;  %v5276_v4 = vpop.f32.mrb[83].mxu1  ;;  %5352 = vmatpush3.bf16.msra.mxu0 %v2492_v7 }
 0x532   : > { %v2127_v5 = vpack.c.bf16 %v2120_v59, %v2120_v59 }
 0x536   : > { %5304 = vmatmul.mubr.msk.bf16.gmra.mrb[108].mxu0 %vm2142_vm4, %v2127_v5 }
 0x537   : > { %5353 = vmatprep.mubr.msk.bf16.mxu0 %vm6837_vm1, %v6836_v43 }
 0x5d9   : > { %v2202_v9 = vpop.f32.mrb[84].mxu0 }
 0x5da   : > { %v2203_v10 = vadd.f32 %v7711_v8, %v2202_v9  ;;  %v5281_v12 = vpop.f32.mrb[85].mxu0 }
 0x5db   : > { %v2205_v14 = vpop.f32.mrb[86].mxu0 }
 0x5dc   : > { %2257 = vst.msk [vmem:[%s7714_s30] sm:$0xff] %vm2256_vm5, %v2203_v10  ;;  %v2206_v13 = vadd.f32 %v7711_v8, %v2205_v14  ;;  %v5282_v16 = vpop.f32.mrb[87].mxu0 }
 0x5de   : > { %2258 = vst.msk [vmem:[%s7714_s30 + $0x8] sm:$0xff] %vm2256_vm5, %v2206_v13  ;;  %v2270_v17 = vpack.c.bf16 %v2206_v13, %v2203_v10 }
 0x5e0   : > { %5324 = vmatmul.mubr.bf16.vlgmr.msra.gmra.mrb[84].mxu1 %v2270_v17 }
 0x5e1   : > { %v2210_v18 = vpop.f32.mrb[88].mxu0  ;;  %5327 = vmatprep.mubr.msk.bf16.mxu1 %vm6837_vm1, %v6836_v43  ;;  %5382 = vmatpush3.bf16.msra.mxu1 %v5756_v52 }
 0x5e2   : > { %v2211_v19 = vadd.f32 %v7711_v8, %v2210_v18  ;;  %v5285_v20 = vpop.f32.mrb[89].mxu0  ;;  %5383 = vmatprep.subr.bf16.mxu1 %v6836_v43 }
 0x5e3   : > { %v2213_v11 = vpop.f32.mrb[90].mxu0 }
 0x5e4   : > { %2259 = vst.msk [vmem:[%s7714_s30 + $0x10] sm:$0xff] %vm2256_vm5, %v2211_v19  ;;  %v2214_v21 = vadd.f32 %v7711_v8, %v2213_v11  ;;  %v5286_v22 = vpop.f32.mrb[91].mxu0 }
 0x5e5   : > { %5384 = vmatpush3.bf16.msra.mxu1 %v5757_v60 }
 0x5e6   : > { %2260 = vst.msk [vmem:[%s7714_s30 + $0x18] sm:$0xff] %vm2256_vm5, %v2214_v21  ;;  %v2271_v23 = vpack.c.bf16 %v2214_v21, %v2211_v19  ;;  %5385 = vmatprep.subr.bf16.mxu1 %v6836_v43 }
 0x5e8   : > { %5328 = vmatmul.mubr.bf16.gmra.mrb[88].mxu1 %v2271_v23 }
 0x5e9   : > { %v2218_v15 = vpop.f32.mrb[92].mxu0  ;;  %5331 = vmatprep.mubr.msk.bf16.mxu1 %vm6837_vm1, %v6836_v43  ;;  %5386 = vmatpush3.bf16.msra.mxu1 %v5758_v61 }
 0x5ea   : > { %v2219_v24 = vadd.f32 %v7711_v8, %v2218_v15  ;;  %v5289_v25 = vpop.f32.mrb[93].mxu0  ;;  %5387 = vmatprep.subr.bf16.mxu1 %v6836_v43 }
 0x5eb   : > { %v2221_v27 = vpop.f32.mrb[94].mxu0 }
 0x5ec   : > { %2261 = vst.msk [vmem:[%s7714_s30 + $0x20] sm:$0xff] %vm2256_vm5, %v2219_v24  ;;  %v2222_v28 = vadd.f32 %v7711_v8, %v2221_v27  ;;  %v5290_v31 = vpop.f32.mrb[95].mxu0 }
 0x5ed   : > { %5388 = vmatpush3.bf16.msra.mxu1 %v5759_v63  ;;  %v5760_v63 = vld [vmem:[#allocation26] ss:$28 sps:$4 sm:$0xff]  }
 0x5ee   : > { %2262 = vst.msk [vmem:[%s7714_s30 + $0x28] sm:$0xff] %vm2256_vm5, %v2222_v28  ;;  %v2272_v26 = vpack.c.bf16 %v2222_v28, %v2219_v24 }
 0x5f0   : > { %5332 = vmatmul.mubr.bf16.gmra.mrb[92].mxu1 %v2272_v26 }
 0x5f1   : > { %v2226_v32 = vpop.f32.mrb[96].mxu0  ;;  %5335 = vmatprep.mubr.msk.bf16.mxu1 %vm6837_vm1, %v6836_v43 }
 0x5f2   : > { %v2227_v34 = vadd.f32 %v7711_v8, %v2226_v32  ;;  %v5293_v35 = vpop.f32.mrb[97].mxu0 }
 0x5f3   : > { %v2229_v29 = vpop.f32.mrb[98].mxu0 }
 0x5f4   : > { %2263 = vst.msk [vmem:[%s7714_s30 + $0x30] sm:$0xff] %vm2256_vm5, %v2227_v34  ;;  %v2230_v36 = vadd.f32 %v7711_v8, %v2229_v29  ;;  %v5294_v37 = vpop.f32.mrb[99].mxu0 }
 0x5f6   : > { %2264 = vst.msk [vmem:[%s7714_s30 + $0x38] sm:$0xff] %vm2256_vm5, %v2230_v36  ;;  %v2273_v30 = vpack.c.bf16 %v2230_v36, %v2227_v34 }
 0x5f8   : > { %5336 = vmatmul.mubr.bf16.gmra.mrb[96].mxu1 %v2273_v30 }
 0x5f9   : > { %v2234_v38 = vpop.f32.mrb[100].mxu0  ;;  %5339 = vmatprep.mubr.msk.bf16.mxu1 %vm6837_vm1, %v6836_v43 }
 0x5fa   : > { %v2235_v39 = vadd.f32 %v7711_v8, %v2234_v38  ;;  %v5297_v40 = vpop.f32.mrb[101].mxu0 }
 0x5fb   : > { %v2237_v33 = vpop.f32.mrb[102].mxu0 }
 0x5fc   : > { %2265 = vst.msk [vmem:[%s7714_s30 + $0x40] sm:$0xff] %vm2256_vm5, %v2235_v39  ;;  %v2238_v41 = vadd.f32 %v7711_v8, %v2237_v33  ;;  %v5298_v44 = vpop.f32.mrb[103].mxu0 }
 0x5fe   : > { %2266 = vst.msk [vmem:[%s7714_s30 + $0x48] sm:$0xff] %vm2256_vm5, %v2238_v41  ;;  %v2274_v45 = vpack.c.bf16 %v2238_v41, %v2235_v39 }
 0x600   : > { %5340 = vmatmul.mubr.bf16.gmra.mrb[100].mxu1 %v2274_v45 }
 0x601   : > { %v2242_v47 = vpop.f32.mrb[104].mxu0  ;;  %5343 = vmatprep.mubr.msk.bf16.mxu1 %vm6837_vm1, %v6836_v43 }
 0x602   : > { %v2243_v42 = vadd.f32 %v7711_v8, %v2242_v47  ;;  %v5301_v48 = vpop.f32.mrb[105].mxu0 }
 0x603   : > { %v2245_v50 = vpop.f32.mrb[106].mxu0 }
 0x604   : > { %2267 = vst.msk [vmem:[%s7714_s30 + $0x50] sm:$0xff] %vm2256_vm5, %v2243_v42  ;;  %v2246_v51 = vadd.f32 %v7711_v8, %v2245_v50  ;;  %v5302_v46 = vpop.f32.mrb[107].mxu0 }
 0x606   : > { %2268 = vst.msk [vmem:[%s7714_s30 + $0x58] sm:$0xff] %vm2256_vm5, %v2246_v51  ;;  %v2275_v53 = vpack.c.bf16 %v2246_v51, %v2243_v42 }
 0x608   : > { %5344 = vmatmul.mubr.bf16.gmra.mrb[104].mxu1 %v2275_v53 }
 0x609   : > { %v2250_v54 = vpop.f32.mrb[108].mxu0  ;;  %5347 = vmatprep.mubr.msk.bf16.mxu1 %vm6837_vm1, %v6836_v43 }
 0x60a   : > { %v2251_v55 = vadd.f32 %v7711_v8, %v2250_v54  ;;  %v5305_v49 = vpop.f32.mrb[109].mxu0 }
 0x60b   : > { %v2253_v56 = vpop.f32.mrb[110].mxu0 }
 0x60c   : > { %2269 = vst.msk [vmem:[%s7714_s30 + $0x60] sm:$0xff] %vm2256_vm5, %v2251_v55  ;;  %v5306_v57 = vpop.f32.mrb[111].mxu0  ;;  %v2276_v58 = vpack.c.bf16 %v2251_v55, %v2251_v55 }
 0x610   : > { %5348 = vmatmul.mubr.bf16.gmra.mrb[108].mxu1 %v2276_v58 }
 0x611   : > { %5389 = vmatprep.mubr.msk.bf16.mxu1 %vm6837_vm1, %v6836_v43 }
 0x6b3   : > { %v2382_v2 = vpop.f32.mrb[84].mxu1 }
 0x6b4   : > { %v2383_v3 = vadd.f32 %v7771_v0, %v2382_v2  ;;  %v5325_v1 = vpop.f32.mrb[85].mxu1  ;;  %v5762_v2 = vld [vmem:[#allocation26 + $0x4] ss:$28 sps:$4 sm:$0xff]  }
 0x6b5   : > { %v2385_v59 = vpop.f32.mrb[86].mxu1  ;;  %v5768_v1 = vld [vmem:[#allocation26 + $0x3c] ss:$28 sps:$4 sm:$0xff]   ;;  %3159 = vmatprep.subr.bf16.mxu0 %v5762_v2 }
 0x6b6   : > { %v2386_v4 = vadd.f32 %v7771_v0, %v2385_v59  ;;  %v5326_v5 = vpop.f32.mrb[87].mxu1  ;;  %v2436_v6 = vmax.f32 %v2383_v3, 0.0  ;;  %v5765_v3 = vld [vmem:[#allocation26 + $0xc] ss:$28 sps:$4 sm:$0xff]   ;;  %v5774_v59 = vld [vmem:[#allocation26 + $0x74] ss:$28 sps:$4 sm:$0xff]  }
 0x6b7   : > { %3260 = vmatprep.subr.bf16.mxu1 %v5765_v3  ;;  %v5780_v5 = vld [vmem:[#allocation26 + $0xac] ss:$28 sps:$4 sm:$0xff]  }
 0x6b8   : > { %v2437_v62 = vmax.f32 %v2386_v4, 0.0  ;;  %v5772_v4 = vld [vmem:[#allocation26 + $0x70] ss:$28 sps:$4 sm:$0xff]  }
 0x6ba   : > { %v2449_v7 = vpack.c.bf16 %v2437_v62, %v2436_v6  ;;  %v5778_v6 = vld [vmem:[#allocation26 + $0xa8] ss:$28 sps:$4 sm:$0xff]  }
 0x6bb   : > { %v2390_v8 = vpop.f32.mrb[88].mxu1  ;;  %v5786_v62 = vld [vmem:[#allocation26 + $0xe4] ss:$28 sps:$4 sm:$0xff]  }
 0x6bc   : > { %v2391_v9 = vadd.f32 %v7771_v0, %v2390_v8  ;;  %v5329_v10 = vpop.f32.mrb[89].mxu1  ;;  %5354 = vmatmul.mubr.msk.bf16.vlgmr.msra.gmra.mrb[112].mxu0 %vm2142_vm4, %v2449_v7  ;;  %v5784_v7 = vld [vmem:[#allocation26 + $0xe0] ss:$28 sps:$4 sm:$0xff]  }
 0x6bd   : > { %v2393_v12 = vpop.f32.mrb[90].mxu1  ;;  %5357 = vmatprep.mubr.msk.bf16.mxu0 %vm6837_vm1, %v6836_v43  ;;  %3160 = vmatpush1.bf16.msra.mxu0 %v5760_v63  ;;  %v5792_v8 = vld [vmem:[#allocation26 + $0x11c] ss:$28 sps:$4 sm:$0xff]   ;;  %v5798_v10 = vld [vmem:[#allocation26 + $0x154] ss:$28 sps:$4 sm:$0xff]  }
 0x6be   : > { %v2394_v14 = vadd.f32 %v7771_v0, %v2393_v12  ;;  %v5330_v13 = vpop.f32.mrb[91].mxu1  ;;  %v2438_v16 = vmax.f32 %v2391_v9, 0.0  ;;  %3161 = vmatprep.subr.bf16.mxu0 %v5768_v1  ;;  %v5790_v9 = vld [vmem:[#allocation26 + $0x118] ss:$28 sps:$4 sm:$0xff]   ;;  %v5796_v12 = vld [vmem:[#allocation26 + $0x150] ss:$28 sps:$4 sm:$0xff]  }
 0x6bf   : > { %v5799_v63 = vld [vmem:[#allocation26 + $0x158] ss:$28 sps:$4 sm:$0xff]  }
 0x6c0   : > { %v2439_v17 = vmax.f32 %v2394_v14, 0.0  ;;  %v7805_v14 = vld [vmem:[#allocation22] ss:$0 sm:$0xff] }
 0x6c2   : > { %v2450_v18 = vpack.c.bf16 %v2439_v17, %v2438_v16 }
 0x6c3   : > { %v2398_v19 = vpop.f32.mrb[92].mxu1 }
 0x6c4   : > { %v2399_v20 = vadd.f32 %v7771_v0, %v2398_v19  ;;  %v5333_v11 = vpop.f32.mrb[93].mxu1  ;;  %5358 = vmatmul.mubr.msk.bf16.gmra.mrb[116].mxu0 %vm2142_vm4, %v2450_v18 }
 0x6c5   : > { %v2401_v21 = vpop.f32.mrb[94].mxu1  ;;  %5361 = vmatprep.mubr.msk.bf16.mxu0 %vm6837_vm1, %v6836_v43 }
 0x6c6   : > { %v2402_v22 = vadd.f32 %v7771_v0, %v2401_v21  ;;  %v5334_v23 = vpop.f32.mrb[95].mxu1  ;;  %v2440_v15 = vmax.f32 %v2399_v20, 0.0 }
 0x6c8   : > { %v2441_v24 = vmax.f32 %v2402_v22, 0.0  ;;  %v5763_v22 = vld [vmem:[#allocation26 + $0x8] ss:$28 sps:$4 sm:$0xff]  }
 0x6ca   : > { %v2451_v25 = vpack.c.bf16 %v2441_v24, %v2440_v15  ;;  %v5771_v15 = vld [vmem:[#allocation26 + $0x44] ss:$28 sps:$4 sm:$0xff]  }
 0x6cb   : > { %v2406_v27 = vpop.f32.mrb[96].mxu1 }
 0x6cc   : > { %v2407_v28 = vadd.f32 %v7771_v0, %v2406_v27  ;;  %v5337_v31 = vpop.f32.mrb[97].mxu1  ;;  %5362 = vmatmul.mubr.msk.bf16.gmra.mrb[120].mxu0 %vm2142_vm4, %v2451_v25 }
 0x6cd   : > { %v2409_v26 = vpop.f32.mrb[98].mxu1  ;;  %5365 = vmatprep.mubr.msk.bf16.mxu0 %vm6837_vm1, %v6836_v43  ;;  %v5769_v31 = vld [vmem:[#allocation26 + $0x40] ss:$28 sps:$4 sm:$0xff]  }
 0x6ce   : > { %v2410_v32 = vadd.f32 %v7771_v0, %v2409_v26  ;;  %v5338_v34 = vpop.f32.mrb[99].mxu1  ;;  %v2442_v35 = vmax.f32 %v2407_v28, 0.0 }
 0x6cf   : > { %v5777_v34 = vld [vmem:[#allocation26 + $0x7c] ss:$28 sps:$4 sm:$0xff]  }
 0x6d0   : > { %v2443_v29 = vmax.f32 %v2410_v32, 0.0 }
 0x6d2   : > { %v2452_v36 = vpack.c.bf16 %v2443_v29, %v2442_v35 }
 0x6d3   : > { %v2414_v37 = vpop.f32.mrb[100].mxu1 }
 0x6d4   : > { %v2415_v30 = vadd.f32 %v7771_v0, %v2414_v37  ;;  %v5341_v38 = vpop.f32.mrb[101].mxu1  ;;  %5366 = vmatmul.mubr.msk.bf16.gmra.mrb[124].mxu0 %vm2142_vm4, %v2452_v36  ;;  %v5775_v36 = vld [vmem:[#allocation26 + $0x78] ss:$28 sps:$4 sm:$0xff]  }
 0x6d5   : > { %v2417_v39 = vpop.f32.mrb[102].mxu1  ;;  %5369 = vmatprep.mubr.msk.bf16.mxu0 %vm6837_vm1, %v6836_v43 }
 0x6d6   : > { %v2418_v40 = vadd.f32 %v7771_v0, %v2417_v39  ;;  %v5342_v33 = vpop.f32.mrb[103].mxu1  ;;  %v2444_v41 = vmax.f32 %v2415_v30, 0.0  ;;  %v5783_v30 = vld [vmem:[#allocation26 + $0xb4] ss:$28 sps:$4 sm:$0xff]  }
 0x6d8   : > { %v2445_v44 = vmax.f32 %v2418_v40, 0.0 }
 0x6da   : > { %v2453_v45 = vpack.c.bf16 %v2445_v44, %v2444_v41  ;;  %v5781_v41 = vld [vmem:[#allocation26 + $0xb0] ss:$28 sps:$4 sm:$0xff]  }
 0x6db   : > { %v2422_v47 = vpop.f32.mrb[104].mxu1 }
 0x6dc   : > { %v2423_v42 = vadd.f32 %v7771_v0, %v2422_v47  ;;  %v5345_v48 = vpop.f32.mrb[105].mxu1  ;;  %5370 = vmatmul.mubr.msk.bf16.gmra.mrb[128].mxu0 %vm2142_vm4, %v2453_v45  ;;  %v5789_v47 = vld [vmem:[#allocation26 + $0xec] ss:$28 sps:$4 sm:$0xff]  }
 0x6dd   : > { %v2425_v50 = vpop.f32.mrb[106].mxu1  ;;  %5373 = vmatprep.mubr.msk.bf16.mxu0 %vm6837_vm1, %v6836_v43 }
 0x6de   : > { %v2426_v51 = vadd.f32 %v7771_v0, %v2425_v50  ;;  %v5346_v46 = vpop.f32.mrb[107].mxu1  ;;  %v2446_v53 = vmax.f32 %v2423_v42, 0.0  ;;  %v5787_v50 = vld [vmem:[#allocation26 + $0xe8] ss:$28 sps:$4 sm:$0xff]  }
 0x6df   : > { %v5795_v46 = vld [vmem:[#allocation26 + $0x124] ss:$28 sps:$4 sm:$0xff]  }
 0x6e0   : > { %v2447_v54 = vmax.f32 %v2426_v51, 0.0 }
 0x6e2   : > { %v2454_v55 = vpack.c.bf16 %v2447_v54, %v2446_v53 }
 0x6e3   : > { %v2430_v49 = vpop.f32.mrb[108].mxu1 }
 0x6e4   : > { %v2431_v56 = vadd.f32 %v7771_v0, %v2430_v49  ;;  %v5349_v57 = vpop.f32.mrb[109].mxu1  ;;  %5374 = vmatmul.mubr.msk.bf16.gmra.mrb[132].mxu0 %vm2142_vm4, %v2454_v55  ;;  %v5766_v0 = vld [vmem:[#allocation26 + $0x38] ss:$28 sps:$4 sm:$0xff]  }
 0x6e5   : > { %v2433_v58 = vpop.f32.mrb[110].mxu1  ;;  %5377 = vmatprep.mubr.msk.bf16.mxu0 %vm6837_vm1, %v6836_v43  ;;  %3162 = vmatpush1.bf16.msra.mxu0 %v5766_v0 }
 0x6e6   : > { %v2448_v52 = vmax.f32 %v2431_v56, 0.0  ;;  %v5350_v60 = vpop.f32.mrb[111].mxu1  ;;  %3163 = vmatprep.subr.bf16.mxu0 %v5774_v59  ;;  %v5793_v56 = vld [vmem:[#allocation26 + $0x120] ss:$28 sps:$4 sm:$0xff]  }
 0x6e8   : > { %v2455_v61 = vpack.c.bf16 %v2448_v52, %v2448_v52  ;;  %v5801_v52 = vld [vmem:[#allocation26 + $0x15c] ss:$28 sps:$4 sm:$0xff]  }
 0x6e9   : > { %3164 = vmatpush1.bf16.msra.mxu0 %v5772_v4 }
 0x6ea   : > { %3165 = vmatprep.subr.bf16.mxu0 %v5780_v5 }
 0x6ec   : > { %5378 = vmatmul.mubr.msk.bf16.gmra.mrb[136].mxu0 %vm2142_vm4, %v2455_v61 }
 0x6ed   : > { %3166 = vmatpush1.bf16.msra.mxu0 %v5778_v6 }
 0x6ee   : > { %3167 = vmatprep.subr.bf16.mxu0 %v5786_v62 }
 0x6f1   : > { %3168 = vmatpush1.bf16.msra.mxu0 %v5784_v7 }
 0x6f2   : > { %3169 = vmatprep.subr.bf16.mxu0 %v5792_v8 }
 0x6f5   : > { %3170 = vmatpush1.bf16.msra.mxu0 %v5790_v9 }
 0x6f6   : > { %3171 = vmatprep.subr.bf16.mxu0 %v5798_v10 }
 0x6f9   : > { %3172 = vmatpush1.bf16.msra.mxu0 %v5796_v12 }
 0x78f   : > { %v2528_v13 = vpop.f32.mrb[112].mxu0 }
 0x790   : > { %v2529_v16 = vadd.f32 %v7805_v14, %v2528_v13  ;;  %v5355_v17 = vpop.f32.mrb[113].mxu0 }
 0x791   : > { %v2531_v18 = vpop.f32.mrb[114].mxu0 }
 0x792   : > { %v2532_v19 = vadd.f32 %v7805_v14, %v2531_v18  ;;  %v5356_v20 = vpop.f32.mrb[115].mxu0  ;;  %v2582_v11 = vmax.f32 %v2529_v16, 0.0 }
 0x794   : > { %v2583_v21 = vmax.f32 %v2532_v19, 0.0 }
 0x796   : > { %v2595_v23 = vpack.c.bf16 %v2583_v21, %v2582_v11 }
 0x797   : > { %v2536_v24 = vpop.f32.mrb[116].mxu0 }
 0x798   : > { %v2537_v25 = vadd.f32 %v7805_v14, %v2536_v24  ;;  %v5359_v27 = vpop.f32.mrb[117].mxu0  ;;  %5390 = vmatmul.mubr.msk.bf16.vlgmr.msra.gmra.mrb[112].mxu1 %vm1998_vm3, %v2595_v23 }
 0x799   : > { %v2539_v28 = vpop.f32.mrb[118].mxu0  ;;  %5393 = vmatprep.mubr.msk.bf16.mxu1 %vm6837_vm1, %v6836_v43  ;;  %3261 = vmatpush1.bf16.msra.mxu1 %v5763_v22  ;;  %v5807_v27 = vld [vmem:[#allocation26 + $0x194] ss:$28 sps:$4 sm:$0xff]  }
 0x79a   : > { %v2540_v26 = vadd.f32 %v7805_v14, %v2539_v28  ;;  %v5360_v32 = vpop.f32.mrb[119].mxu0  ;;  %3262 = vmatprep.subr.bf16.mxu1 %v5771_v15  ;;  %v2584_v35 = vmax.f32 %v2537_v25, 0.0  ;;  %v5804_v25 = vld [vmem:[#allocation26 + $0x18c] ss:$28 sps:$4 sm:$0xff]  }
 0x79b   : > { %v5802_v28 = vld [vmem:[#allocation26 + $0x188] ss:$28 sps:$4 sm:$0xff]   ;;  %3173 = vmatprep.subr.bf16.mxu0 %v5804_v25  ;;  %v7842_v32 = vld [vmem:[#allocation25] ss:$0 sm:$0xff] }
 0x79c   : > { %v2585_v29 = vmax.f32 %v2540_v26, 0.0  ;;  %3174 = vmatpush1.bf16.msra.mxu0 %v5802_v28  ;;  %v5810_v26 = vld [vmem:[#allocation26 + $0x14] ss:$28 sps:$4 sm:$0xff]  }
 0x79d   : > { %3263 = vmatpush1.bf16.msra.mxu1 %v5769_v31  ;;  %v5805_v31 = vld [vmem:[#allocation26 + $0x190] ss:$28 sps:$4 sm:$0xff]   ;;  %3361 = vmatprep.subr.bf16.mxu0 %v5810_v26 }
 0x79e   : > { %v2596_v37 = vpack.c.bf16 %v2585_v29, %v2584_v35  ;;  %3264 = vmatprep.subr.bf16.mxu1 %v5777_v34 }
 0x79f   : > { %v2544_v38 = vpop.f32.mrb[120].mxu0 }
 0x7a0   : > { %v2545_v39 = vadd.f32 %v7805_v14, %v2544_v38  ;;  %v5363_v40 = vpop.f32.mrb[121].mxu0  ;;  %5394 = vmatmul.mubr.msk.bf16.gmra.mrb[116].mxu1 %vm1998_vm3, %v2596_v37 }
 0x7a1   : > { %v2547_v33 = vpop.f32.mrb[122].mxu0  ;;  %5397 = vmatprep.mubr.msk.bf16.mxu1 %vm6837_vm1, %v6836_v43  ;;  %3265 = vmatpush1.bf16.msra.mxu1 %v5775_v36  ;;  %v5808_v40 = vld [vmem:[#allocation26 + $0x10] ss:$28 sps:$4 sm:$0xff]  }
 0x7a2   : > { %v2548_v44 = vadd.f32 %v7805_v14, %v2547_v33  ;;  %v5364_v45 = vpop.f32.mrb[123].mxu0  ;;  %3266 = vmatprep.subr.bf16.mxu1 %v5783_v30  ;;  %v2586_v42 = vmax.f32 %v2545_v39, 0.0  ;;  %v5811_v33 = vld [vmem:[#allocation26 + $0x18] ss:$28 sps:$4 sm:$0xff]  }
 0x7a3   : > { %v5814_v45 = vld [vmem:[#allocation26 + $0x4c] ss:$28 sps:$4 sm:$0xff]  }
 0x7a4   : > { %v2587_v48 = vmax.f32 %v2548_v44, 0.0 }
 0x7a5   : > { %3267 = vmatpush1.bf16.msra.mxu1 %v5781_v41 }
 0x7a6   : > { %v2597_v51 = vpack.c.bf16 %v2587_v48, %v2586_v42  ;;  %3268 = vmatprep.subr.bf16.mxu1 %v5789_v47 }
 0x7a7   : > { %v2552_v53 = vpop.f32.mrb[124].mxu0 }
 0x7a8   : > { %v2553_v54 = vadd.f32 %v7805_v14, %v2552_v53  ;;  %v5367_v55 = vpop.f32.mrb[125].mxu0  ;;  %5398 = vmatmul.mubr.msk.bf16.gmra.mrb[120].mxu1 %vm1998_vm3, %v2597_v51  ;;  %v5815_v51 = vld [vmem:[#allocation26 + $0x50] ss:$28 sps:$4 sm:$0xff]  }
 0x7a9   : > { %v2555_v49 = vpop.f32.mrb[126].mxu0  ;;  %5401 = vmatprep.mubr.msk.bf16.mxu1 %vm6837_vm1, %v6836_v43  ;;  %3269 = vmatpush1.bf16.msra.mxu1 %v5787_v50  ;;  %v5812_v50 = vld [vmem:[#allocation26 + $0x48] ss:$28 sps:$4 sm:$0xff]  }
 0x7aa   : > { %v2556_v57 = vadd.f32 %v7805_v14, %v2555_v49  ;;  %v5368_v58 = vpop.f32.mrb[127].mxu0  ;;  %3270 = vmatprep.subr.bf16.mxu1 %v5795_v46  ;;  %v2588_v60 = vmax.f32 %v2553_v54, 0.0  ;;  %v5818_v54 = vld [vmem:[#allocation26 + $0x84] ss:$28 sps:$4 sm:$0xff]  }
 0x7ab   : > { %v5819_v58 = vld [vmem:[#allocation26 + $0x88] ss:$28 sps:$4 sm:$0xff]  }
 0x7ac   : > { %v2589_v61 = vmax.f32 %v2556_v57, 0.0  ;;  %v5816_v57 = vld [vmem:[#allocation26 + $0x80] ss:$28 sps:$4 sm:$0xff]  }
 0x7ad   : > { %3271 = vmatpush1.bf16.msra.mxu1 %v5793_v56 }
 0x7ae   : > { %v2598_v2 = vpack.c.bf16 %v2589_v61, %v2588_v60  ;;  %3272 = vmatprep.subr.bf16.mxu1 %v5801_v52  ;;  %v5822_v60 = vld [vmem:[#allocation26 + $0xbc] ss:$28 sps:$4 sm:$0xff]  }
 0x7af   : > { %v2560_v3 = vpop.f32.mrb[128].mxu0 }
 0x7b0   : > { %v2561_v1 = vadd.f32 %v7805_v14, %v2560_v3  ;;  %v5371_v0 = vpop.f32.mrb[129].mxu0  ;;  %5402 = vmatmul.mubr.msk.bf16.gmra.mrb[124].mxu1 %vm1998_vm3, %v2598_v2 }
 0x7b1   : > { %v2563_v59 = vpop.f32.mrb[130].mxu0  ;;  %5405 = vmatprep.mubr.msk.bf16.mxu1 %vm6837_vm1, %v6836_v43  ;;  %3273 = vmatpush1.bf16.msra.mxu1 %v5799_v63  ;;  %v5820_v0 = vld [vmem:[#allocation26 + $0xb8] ss:$28 sps:$4 sm:$0xff]  }
 0x7b2   : > { %v2564_v4 = vadd.f32 %v7805_v14, %v2563_v59  ;;  %v5372_v5 = vpop.f32.mrb[131].mxu0  ;;  %v2590_v6 = vmax.f32 %v2561_v1, 0.0  ;;  %3274 = vmatprep.subr.bf16.mxu1 %v5807_v27  ;;  %v5823_v59 = vld [vmem:[#allocation26 + $0xc0] ss:$28 sps:$4 sm:$0xff]  }
 0x7b3   : > { %v5838_v27 = vld [vmem:[#allocation26 + $0x19c] ss:$28 sps:$4 sm:$0xff]  }
 0x7b4   : > { %v2591_v62 = vmax.f32 %v2564_v4, 0.0  ;;  %v5826_v4 = vld [vmem:[#allocation26 + $0xf4] ss:$28 sps:$4 sm:$0xff]  }
 0x7b5   : > { %3275 = vmatpush1.bf16.msra.mxu1 %v5805_v31 }
 0x7b6   : > { %v2599_v7 = vpack.c.bf16 %v2591_v62, %v2590_v6  ;;  %5417 = vmatprep.subr.bf16.mxu1 %v6836_v43 }
 0x7b7   : > { %v2568_v8 = vpop.f32.mrb[132].mxu0 }
 0x7b8   : > { %v2569_v9 = vadd.f32 %v7805_v14, %v2568_v8  ;;  %v5375_v10 = vpop.f32.mrb[133].mxu0  ;;  %5406 = vmatmul.mubr.msk.bf16.gmra.mrb[128].mxu1 %vm1998_vm3, %v2599_v7  ;;  %v5824_v7 = vld [vmem:[#allocation26 + $0xf0] ss:$28 sps:$4 sm:$0xff]   ;;  %v5827_v8 = vld [vmem:[#allocation26 + $0xf8] ss:$28 sps:$4 sm:$0xff]  }
 0x7b9   : > { %v2571_v12 = vpop.f32.mrb[134].mxu0  ;;  %5409 = vmatprep.mubr.msk.bf16.mxu1 %vm6837_vm1, %v6836_v43  ;;  %v5830_v10 = vld [vmem:[#allocation26 + $0x12c] ss:$28 sps:$4 sm:$0xff]  }
 0x7ba   : > { %v2572_v13 = vadd.f32 %v7805_v14, %v2571_v12  ;;  %v5376_v16 = vpop.f32.mrb[135].mxu0  ;;  %v2592_v17 = vmax.f32 %v2569_v9, 0.0 }
 0x7bc   : > { %v2593_v18 = vmax.f32 %v2572_v13, 0.0 }
 0x7be   : > { %v2600_v19 = vpack.c.bf16 %v2593_v18, %v2592_v17 }
 0x7bf   : > { %v2576_v20 = vpop.f32.mrb[136].mxu0 }
 0x7c0   : > { %v2577_v11 = vadd.f32 %v7805_v14, %v2576_v20  ;;  %v5379_v21 = vpop.f32.mrb[137].mxu0  ;;  %5410 = vmatmul.mubr.msk.bf16.gmra.mrb[132].mxu1 %vm1998_vm3, %v2600_v19  ;;  %v6838_v14 = vmov 0   ;;  %v5828_v19 = vld [vmem:[#allocation26 + $0x128] ss:$28 sps:$4 sm:$0xff]   ;;  %v5831_v20 = vld [vmem:[#allocation26 + $0x130] ss:$28 sps:$4 sm:$0xff]  }
 0x7c1   : > { %v2579_v22 = vpop.f32.mrb[138].mxu0  ;;  %5413 = vmatprep.mubr.msk.bf16.mxu1 %vm6837_vm1, %v6836_v43  ;;  %3191 = vmatprep.mubr.bf16.mxu0 %v6838_v14 }
 0x7c2   : > { %v2594_v23 = vmax.f32 %v2577_v11, 0.0  ;;  %v5380_v15 = vpop.f32.mrb[139].mxu0  ;;  %v5834_v11 = vld [vmem:[#allocation26 + $0x164] ss:$28 sps:$4 sm:$0xff]  }
 0x7c3   : > { %v5832_v15 = vld [vmem:[#allocation26 + $0x160] ss:$28 sps:$4 sm:$0xff]  }
 0x7c4   : > { %v2601_v24 = vpack.c.bf16 %v2594_v23, %v2594_v23 }
 0x7c8   : > { %5414 = vmatmul.mubr.msk.bf16.gmra.mrb[136].mxu1 %vm1998_vm3, %v2601_v24  ;;  %v5835_v24 = vld [vmem:[#allocation26 + $0x168] ss:$28 sps:$4 sm:$0xff]  }
 0x7c9   : > { %3292 = vmatprep.mubr.bf16.mxu1 %v6838_v14 }
 0x86b   : > { %v2696_v34 = vpop.f32.mrb[112].mxu1 }
 0x86c   : > { %v2697_v35 = vadd.f32 %v7842_v32, %v2696_v34  ;;  %v5391_v29 = vpop.f32.mrb[113].mxu1 }
 0x86d   : > { %v2699_v36 = vpop.f32.mrb[114].mxu1  ;;  %v5836_v29 = vld [vmem:[#allocation26 + $0x198] ss:$28 sps:$4 sm:$0xff]  }
 0x86e   : > { %v2700_v37 = vadd.f32 %v7842_v32, %v2699_v36  ;;  %v5392_v30 = vpop.f32.mrb[115].mxu1  ;;  %v2750_v38 = vmax.f32 %v2697_v35, 0.0  ;;  %v5839_v36 = vld [vmem:[#allocation26 + $0x1a0] ss:$28 sps:$4 sm:$0xff]  }
 0x870   : > { %v2751_v39 = vmax.f32 %v2700_v37, 0.0 }
 0x872   : > { %v7846_v41 = vpack.c.bf16 %v2751_v39, %v2750_v38 }
 0x873   : > { %v2704_v44 = vpop.f32.mrb[116].mxu1 }
 0x874   : > { %v2705_v47 = vadd.f32 %v7842_v32, %v2704_v44  ;;  %v5395_v42 = vpop.f32.mrb[117].mxu1  ;;  %3192 = vmatmul.mubr.bf16.vlgmr.msra.gmra.mrb[140].mxu0 %v7846_v41  ;;  %3293 = vmatmul.mubr.bf16.vlgmr.msra.gmra.mrb[140].mxu1 %v7846_v41 }
 0x875   : > { %v2707_v48 = vpop.f32.mrb[118].mxu1  ;;  %3362 = vmatpush1.bf16.msra.mxu0 %v5808_v40  ;;  %5418 = vmatpush3.bf16.msra.mxu1 %v5811_v33 }
 0x876   : > { %v2708_v46 = vadd.f32 %v7842_v32, %v2707_v48  ;;  %v5396_v53 = vpop.f32.mrb[119].mxu1  ;;  %3201 = vmatprep.mubr.bf16.mxu0 %v6838_v14  ;;  %3302 = vmatprep.mubr.bf16.mxu1 %v6838_v14  ;;  %v2752_v55 = vmax.f32 %v2705_v47, 0.0 }
 0x877   : > { %3363 = vmatprep.subr.bf16.mxu0 %v5814_v45  ;;  %5419 = vmatprep.subr.bf16.mxu1 %v6836_v43 }
 0x878   : > { %v2753_v49 = vmax.f32 %v2708_v46, 0.0 }
 0x879   : > { %3364 = vmatpush1.bf16.msra.mxu0 %v5812_v50  ;;  %5420 = vmatpush3.bf16.msra.mxu1 %v5815_v51 }
 0x87a   : > { %v7855_v56 = vpack.c.bf16 %v2753_v49, %v2752_v55  ;;  %3365 = vmatprep.subr.bf16.mxu0 %v5818_v54  ;;  %5421 = vmatprep.subr.bf16.mxu1 %v6836_v43 }
 0x87b   : > { %v2712_v52 = vpop.f32.mrb[120].mxu1 }
 0x87c   : > { %v2713_v61 = vadd.f32 %v7842_v32, %v2712_v52  ;;  %v5399_v63 = vpop.f32.mrb[121].mxu1  ;;  %3202 = vmatmul.mubr.bf16.gmra.mrb[144].mxu0 %v7855_v56  ;;  %3303 = vmatmul.mubr.bf16.gmra.mrb[144].mxu1 %v7855_v56  ;;  %v7925_v52 = vld [vmem:[#allocation28] sm:$0x7f] }
 0x87d   : > { %v2715_v2 = vpop.f32.mrb[122].mxu1  ;;  %3211 = vmatprep.mubr.bf16.mxu0 %v6838_v14  ;;  %3312 = vmatprep.mubr.bf16.mxu1 %v6838_v14 }
 0x87e   : > { %v2716_v3 = vadd.f32 %v7842_v32, %v2715_v2  ;;  %v5400_v1 = vpop.f32.mrb[123].mxu1  ;;  %3366 = vmatpush1.bf16.msra.mxu0 %v5816_v57  ;;  %5422 = vmatpush3.bf16.msra.mxu1 %v5819_v58  ;;  %v2754_v5 = vmax.f32 %v2713_v61, 0.0 }
 0x87f   : > { %3367 = vmatprep.subr.bf16.mxu0 %v5822_v60  ;;  %5423 = vmatprep.subr.bf16.mxu1 %v6836_v43 }
 0x880   : > { %v2755_v6 = vmax.f32 %v2716_v3, 0.0 }
 0x882   : > { %v7865_v62 = vpack.c.bf16 %v2755_v6, %v2754_v5  ;;  %3368 = vmatpush1.bf16.msra.mxu0 %v5820_v0  ;;  %5424 = vmatpush3.bf16.msra.mxu1 %v5823_v59 }
 0x883   : > { %v2720_v9 = vpop.f32.mrb[124].mxu1  ;;  %3369 = vmatprep.subr.bf16.mxu0 %v5826_v4  ;;  %5425 = vmatprep.subr.bf16.mxu1 %v6836_v43 }
 0x884   : > { %v2721_v12 = vadd.f32 %v7842_v32, %v2720_v9  ;;  %v5403_v13 = vpop.f32.mrb[125].mxu1  ;;  %3212 = vmatmul.mubr.bf16.gmra.mrb[148].mxu0 %v7865_v62  ;;  %3313 = vmatmul.mubr.bf16.gmra.mrb[148].mxu1 %v7865_v62 }
 0x885   : > { %v2723_v16 = vpop.f32.mrb[126].mxu1  ;;  %3221 = vmatprep.mubr.bf16.mxu0 %v6838_v14  ;;  %3322 = vmatprep.mubr.bf16.mxu1 %v6838_v14 }
 0x886   : > { %v2724_v17 = vadd.f32 %v7842_v32, %v2723_v16  ;;  %v5404_v18 = vpop.f32.mrb[127].mxu1  ;;  %3370 = vmatpush1.bf16.msra.mxu0 %v5824_v7  ;;  %5426 = vmatpush3.bf16.msra.mxu1 %v5827_v8  ;;  %v2756_v21 = vmax.f32 %v2721_v12, 0.0 }
 0x887   : > { %3371 = vmatprep.subr.bf16.mxu0 %v5830_v10  ;;  %5427 = vmatprep.subr.bf16.mxu1 %v6836_v43 }
 0x888   : > { %v2757_v22 = vmax.f32 %v2724_v17, 0.0 }
 0x88a   : > { %v7875_v23 = vpack.c.bf16 %v2757_v22, %v2756_v21  ;;  %3372 = vmatpush1.bf16.msra.mxu0 %v5828_v19  ;;  %5428 = vmatpush3.bf16.msra.mxu1 %v5831_v20 }
 0x88b   : > { %v2728_v25 = vpop.f32.mrb[128].mxu1  ;;  %3373 = vmatprep.subr.bf16.mxu0 %v5834_v11  ;;  %5429 = vmatprep.subr.bf16.mxu1 %v6836_v43 }
 0x88c   : > { %v2729_v28 = vadd.f32 %v7842_v32, %v2728_v25  ;;  %v5407_v31 = vpop.f32.mrb[129].mxu1  ;;  %3222 = vmatmul.mubr.bf16.gmra.mrb[152].mxu0 %v7875_v23  ;;  %3323 = vmatmul.mubr.bf16.gmra.mrb[152].mxu1 %v7875_v23 }
 0x88d   : > { %v2731_v26 = vpop.f32.mrb[130].mxu1  ;;  %3231 = vmatprep.mubr.bf16.mxu0 %v6838_v14  ;;  %3332 = vmatprep.mubr.bf16.mxu1 %v6838_v14 }
 0x88e   : > { %v2732_v34 = vadd.f32 %v7842_v32, %v2731_v26  ;;  %v5408_v35 = vpop.f32.mrb[131].mxu1  ;;  %3374 = vmatpush1.bf16.msra.mxu0 %v5832_v15  ;;  %5430 = vmatpush3.bf16.msra.mxu1 %v5835_v24  ;;  %v2758_v37 = vmax.f32 %v2729_v28, 0.0 }
 0x88f   : > { %3375 = vmatprep.subr.bf16.mxu0 %v5838_v27  ;;  %5431 = vmatprep.subr.bf16.mxu1 %v6836_v43 }
 0x890   : > { %v2759_v30 = vmax.f32 %v2732_v34, 0.0 }
 0x892   : > { %v2767_v38 = vpack.c.bf16 %v2759_v30, %v2758_v37  ;;  %3376 = vmatpush1.bf16.msra.mxu0 %v5836_v29  ;;  %5432 = vmatpush3.bf16.msra.mxu1 %v5839_v36 }
 0x893   : > { %v2736_v39 = vpop.f32.mrb[132].mxu1 }
 0x894   : > { %v2737_v40 = vadd.f32 %v7842_v32, %v2736_v39  ;;  %v5411_v33 = vpop.f32.mrb[133].mxu1  ;;  %3232 = vmatmul.mubr.bf16.gmra.mrb[156].mxu0 %v2767_v38  ;;  %3333 = vmatmul.mubr.bf16.gmra.mrb[156].mxu1 %v2767_v38 }
 0x895   : > { %v2739_v44 = vpop.f32.mrb[134].mxu1  ;;  %3241 = vmatprep.mubr.bf16.mxu0 %v6838_v14  ;;  %3342 = vmatprep.mubr.bf16.mxu1 %v6838_v14 }
 0x896   : > { %v2740_v45 = vadd.f32 %v7842_v32, %v2739_v44  ;;  %v5412_v47 = vpop.f32.mrb[135].mxu1  ;;  %v2760_v42 = vmax.f32 %v2737_v40, 0.0 }
 0x898   : > { %v2761_v48 = vmax.f32 %v2740_v45, 0.0 }
 0x89a   : > { %v2768_v50 = vpack.c.bf16 %v2761_v48, %v2760_v42 }
 0x89b   : > { %v2744_v51 = vpop.f32.mrb[136].mxu1 }
 0x89c   : > { %v2745_v46 = vadd.f32 %v7842_v32, %v2744_v51  ;;  %v5415_v53 = vpop.f32.mrb[137].mxu1  ;;  %3242 = vmatmul.mubr.bf16.gmra.mrb[160].mxu0 %v2768_v50  ;;  %3343 = vmatmul.mubr.bf16.gmra.mrb[160].mxu1 %v2768_v50  ;;  %v2836_v32 = vlaneseq }
 0x89d   : > { %v2747_v54 = vpop.f32.mrb[138].mxu1  ;;  %3251 = vmatprep.mubr.bf16.mxu0 %v6838_v14  ;;  %3352 = vmatprep.mubr.bf16.mxu1 %v6838_v14 }
 0x89e   : > { %v2762_v55 = vmax.f32 %v2745_v46, 0.0  ;;  %v5416_v49 = vpop.f32.mrb[139].mxu1 }
 0x8a0   : > { %v2769_v57 = vpack.c.bf16 %v2762_v55, %v2762_v55 }
 0x8a4   : > { %3252 = vmatmul.mubr.bf16.gmra.mrb[164].mxu0 %v2769_v57  ;;  %3353 = vmatmul.mubr.bf16.gmra.mrb[164].mxu1 %v2769_v57 }
 0x8a5   : > { %3393 = vmatprep.mubr.bf16.mxu0 %v6838_v14  ;;  %5433 = vmatprep.mubr.msk.bf16.mxu1 %vm6837_vm1, %v6836_v43 }
 0x8ac   : > { %3394 = vmatmul.mubr.bf16.vlgmr.msra.gmra.mrb[168].mxu0 %v7846_v41  ;;  %5434 = vmatmul.mubr.bf16.vlgmr.msra.gmra.mrb[168].mxu1 %v7846_v41  ;;  %v7921_v41 = vshrl.u32 %v2836_v32, 7 }
 0x8ad   : > { %3403 = vmatprep.mubr.bf16.mxu0 %v6838_v14  ;;  %5437 = vmatprep.mubr.msk.bf16.mxu1 %vm6837_vm1, %v6836_v43 }
 0x8ae   : > { %v2846_v58 = vsub.s32 2, %v7921_v41  ;;  %v2842_v60 = vsub.s32 1, %v7921_v41  ;;  %v2850_v61 = vsub.s32 3, %v7921_v41 }
 0x8b0   : > { %v7936_v63 = vrot.slane %v7925_v52, %v2842_v60  ;;  %v7939_v2 = vrot.slane %v7925_v52, %v2850_v61 }
 0x8b4   : > { %3404 = vmatmul.mubr.bf16.gmra.mrb[172].mxu0 %v7855_v56  ;;  %5438 = vmatmul.mubr.bf16.gmra.mrb[172].mxu1 %v7855_v56  ;;  %v2838_v56 = vsub.s32 0, %v7921_v41 }
 0x8b5   : > { %3413 = vmatprep.mubr.bf16.mxu0 %v6838_v14  ;;  %5441 = vmatprep.mubr.msk.bf16.mxu1 %vm6837_vm1, %v6836_v43 }
 0x8bc   : > { %3414 = vmatmul.mubr.bf16.gmra.mrb[176].mxu0 %v7865_v62  ;;  %5442 = vmatmul.mubr.bf16.gmra.mrb[176].mxu1 %v7865_v62 }
 0x8bd   : > { %3423 = vmatprep.mubr.bf16.mxu0 %v6838_v14  ;;  %5445 = vmatprep.mubr.msk.bf16.mxu1 %vm6837_vm1, %v6836_v43 }
 0x8c4   : > { %3424 = vmatmul.mubr.bf16.gmra.mrb[180].mxu0 %v7875_v23  ;;  %5446 = vmatmul.mubr.bf16.gmra.mrb[180].mxu1 %v7875_v23 }
 0x8c5   : > { %3433 = vmatprep.mubr.bf16.mxu0 %v6838_v14  ;;  %5449 = vmatprep.mubr.msk.bf16.mxu1 %vm6837_vm1, %v6836_v43 }
 0x8cc   : > { %3434 = vmatmul.mubr.bf16.gmra.mrb[184].mxu0 %v2767_v38  ;;  %5450 = vmatmul.mubr.bf16.gmra.mrb[184].mxu1 %v2767_v38 }
 0x8cd   : > { %3443 = vmatprep.mubr.bf16.mxu0 %v6838_v14  ;;  %5453 = vmatprep.mubr.msk.bf16.mxu1 %vm6837_vm1, %v6836_v43 }
 0x8d4   : > { %3444 = vmatmul.mubr.bf16.gmra.mrb[188].mxu0 %v2768_v50  ;;  %5454 = vmatmul.mubr.bf16.gmra.mrb[188].mxu1 %v2768_v50 }
 0x8d5   : > { %3453 = vmatprep.mubr.bf16.mxu0 %v6838_v14  ;;  %5457 = vmatprep.mubr.msk.bf16.mxu1 %vm6837_vm1, %v6836_v43  ;;  %v7930_v14 = vrot.slane %v7925_v52, %v2838_v56  ;;  %v7933_v43 = vrot.slane %v7925_v52, %v2846_v58 }
 0x8dc   : > { %3454 = vmatmul.mubr.bf16.gmra.mrb[192].mxu0 %v2769_v57  ;;  %5458 = vmatmul.mubr.bf16.gmra.mrb[192].mxu1 %v2769_v57 }
 0x947   : > { %v3193_v3 = vpop.f32.mrb[140].mxu0  ;;  %v3294_v1 = vpop.f32.mrb[140].mxu1 }
 0x948   : > { %v3194_v0 = vadd.f32 %v3193_v3, %v7930_v14  ;;  %v3295_v59 = vadd.f32 %v3294_v1, %v7933_v43  ;;  %v3195_v4 = vpop.f32.mrb[141].mxu0  ;;  %v3296_v5 = vpop.f32.mrb[141].mxu1 }
 0x949   : > { %v3196_v6 = vadd.f32 %v3195_v4, %v7936_v63  ;;  %v3297_v62 = vadd.f32 %v3296_v5, %v7939_v2  ;;  %v3197_v7 = vpop.f32.mrb[142].mxu0  ;;  %v3298_v8 = vpop.f32.mrb[142].mxu1 }
 0x94a   : > { %v4798_v9 = vclamps-f32 %v3194_v0, 30.0  ;;  %v4800_v10 = vclamps-f32 %v3295_v59, 30.0  ;;  %v3198_v12 = vadd.f32 %v3197_v7, %v7930_v14  ;;  %v3299_v13 = vadd.f32 %v3298_v8, %v7933_v43  ;;  %v3199_v16 = vpop.f32.mrb[143].mxu0  ;;  %v3300_v17 = vpop.f32.mrb[143].mxu1 }
 0x94b   : > { %v4799_v18 = vclamps-f32 %v3196_v6, 30.0  ;;  %v4801_v19 = vclamps-f32 %v3297_v62, 30.0  ;;  %v3200_v20 = vadd.f32 %v3199_v16, %v7936_v63  ;;  %v3301_v11 = vadd.f32 %v3300_v17, %v7939_v2 }
 0x94c   : > { %v3732_v21 = vsub.f32 0.0, %v4798_v9  ;;  %v3734_v22 = vsub.f32 0.0, %v4800_v10  ;;  %v4805_v23 = vclamps-f32 %v3198_v12, 30.0  ;;  %v4807_v15 = vclamps-f32 %v3299_v13, 30.0 }
 0x94d   : > { %v3733_v24 = vsub.f32 0.0, %v4799_v18  ;;  %v3735_v25 = vsub.f32 0.0, %v4801_v19  ;;  %v4806_v27 = vclamps-f32 %v3200_v20, 30.0  ;;  %v4808_v28 = vclamps-f32 %v3301_v11, 30.0 }
 0x94e   : > { %v3823_v31 = vmul.f32 1.442695, %v3732_v21  ;;  %v3827_v26 = vmul.f32 1.442695, %v3734_v22  ;;  %v3739_v34 = vsub.f32 0.0, %v4805_v23  ;;  %v3741_v35 = vsub.f32 0.0, %v4807_v15 }
 0x94f   : > { %v3825_v29 = vmul.f32 1.442695, %v3733_v24  ;;  %v3829_v36 = vmul.f32 1.442695, %v3735_v25  ;;  %v3740_v37 = vsub.f32 0.0, %v4806_v27  ;;  %v3742_v30 = vsub.f32 0.0, %v4808_v28 }
 0x950   : > { %5840 = vpow2.f32 %v3823_v31  ;;  %v3837_v38 = vmul.f32 1.442695, %v3739_v34  ;;  %v3841_v39 = vmul.f32 1.442695, %v3741_v35  ;;  %v3203_v40 = vpop.f32.mrb[144].mxu0  ;;  %v3304_v33 = vpop.f32.mrb[144].mxu1 }
 0x951   : > { %5842 = vpow2.f32 %v3827_v26  ;;  %v3839_v44 = vmul.f32 1.442695, %v3740_v37  ;;  %v3843_v45 = vmul.f32 1.442695, %v3742_v30  ;;  %v3204_v47 = vadd.f32 %v3203_v40, %v7930_v14  ;;  %v3205_v42 = vpop.f32.mrb[145].mxu0  ;;  %v3306_v48 = vpop.f32.mrb[145].mxu1 }
 0x952   : > { %5844 = vpow2.f32 %v3825_v29  ;;  %v3305_v50 = vadd.f32 %v3304_v33, %v7933_v43  ;;  %v3206_v51 = vadd.f32 %v3205_v42, %v7936_v63  ;;  %v3307_v46 = vadd.f32 %v3306_v48, %v7939_v2  ;;  %v3207_v53 = vpop.f32.mrb[146].mxu0  ;;  %v3308_v54 = vpop.f32.mrb[146].mxu1 }
 0x953   : > { %5846 = vpow2.f32 %v3829_v36  ;;  %v4812_v55 = vclamps-f32 %v3204_v47, 30.0  ;;  %v3208_v49 = vadd.f32 %v3207_v53, %v7930_v14  ;;  %v3309_v57 = vadd.f32 %v3308_v54, %v7933_v43  ;;  %v3209_v32 = vpop.f32.mrb[147].mxu0  ;;  %v3310_v56 = vpop.f32.mrb[147].mxu1 }
 0x954   : > { %5848 = vpow2.f32 %v3837_v38  ;;  %v4814_v58 = vclamps-f32 %v3305_v50, 30.0  ;;  %v4813_v60 = vclamps-f32 %v3206_v51, 30.0  ;;  %v4815_v61 = vclamps-f32 %v3307_v46, 30.0 }
 0x955   : > { %5850 = vpow2.f32 %v3841_v39  ;;  %v3746_v3 = vsub.f32 0.0, %v4812_v55  ;;  %v4819_v1 = vclamps-f32 %v3208_v49, 30.0  ;;  %v4821_v6 = vclamps-f32 %v3309_v57, 30.0 }
 0x956   : > { %5852 = vpow2.f32 %v3839_v44  ;;  %v3748_v0 = vsub.f32 0.0, %v4814_v58  ;;  %v3747_v59 = vsub.f32 0.0, %v4813_v60  ;;  %v3749_v4 = vsub.f32 0.0, %v4815_v61 }
 0x957   : > { %5854 = vpow2.f32 %v3843_v45  ;;  %v3851_v5 = vmul.f32 1.442695, %v3746_v3  ;;  %v3213_v62 = vpop.f32.mrb[148].mxu0  ;;  %v3314_v7 = vpop.f32.mrb[148].mxu1  ;;  %v3210_v12 = vadd.f32 %v3209_v32, %v7936_v63  ;;  %v3311_v13 = vadd.f32 %v3310_v56, %v7939_v2 }
 0x958   : > { %v3855_v8 = vmul.f32 1.442695, %v3748_v0  ;;  %v3853_v9 = vmul.f32 1.442695, %v3747_v59  ;;  %v3857_v10 = vmul.f32 1.442695, %v3749_v4  ;;  %v3214_v15 = vadd.f32 %v3213_v62, %v7930_v14 }
 0x959   : > { %5856 = vpow2.f32 %v3851_v5  ;;  %v3215_v16 = vpop.f32.mrb[149].mxu0  ;;  %v3316_v17 = vpop.f32.mrb[149].mxu1  ;;  %v3753_v19 = vsub.f32 0.0, %v4819_v1  ;;  %v4820_v23 = vclamps-f32 %v3210_v12, 30.0  ;;  %v3755_v31 = vsub.f32 0.0, %v4821_v6 }
 0x95a   : > { %v5841_v18 = vpop.eup %5840  ;;  %5858 = vpow2.f32 %v3855_v8  ;;  %v3217_v20 = vpop.f32.mrb[150].mxu0  ;;  %v4822_v26 = vclamps-f32 %v3311_v13, 30.0  ;;  %v3315_v29 = vadd.f32 %v3314_v7, %v7933_v43  ;;  %v3216_v38 = vadd.f32 %v3215_v16, %v7936_v63 }
 0x95b   : > { %v3318_v11 = vpop.f32.mrb[150].mxu1  ;;  %v5843_v21 = vpop.eup %5842  ;;  %v4005_v22 = vadd.f32 1.0, %v5841_v18  ;;  %5860 = vpow2.f32 %v3853_v9  ;;  %v3865_v30 = vmul.f32 1.442695, %v3753_v19  ;;  %v3754_v33 = vsub.f32 0.0, %v4820_v23 }
 0x95c   : > { %v3219_v24 = vpop.f32.mrb[151].mxu0  ;;  %v7958_v25 = vpop.f32.mrb[151].mxu1  ;;  %v4007_v28 = vadd.f32 1.0, %v5843_v21  ;;  %5862 = vpow2.f32 %v3857_v10  ;;  %v4826_v44 = vclamps-f32 %v3214_v15, 30.0  ;;  %v3869_v50 = vmul.f32 1.442695, %v3755_v31 }
 0x95d   : > { %v5845_v27 = vpop.eup %5844  ;;  %5864 = vrcp.f32 %v4005_v22  ;;  %v3756_v51 = vsub.f32 0.0, %v4822_v26  ;;  %v4828_v49 = vclamps-f32 %v3315_v29, 30.0  ;;  %v3317_v57 = vadd.f32 %v3316_v17, %v7939_v2 }
 0x95e   : > { %v5847_v34 = vpop.eup %5846  ;;  %v4006_v35 = vadd.f32 1.0, %v5845_v27  ;;  %5866 = vrcp.f32 %v4007_v28  ;;  %v4827_v60 = vclamps-f32 %v3216_v38, 30.0  ;;  %v3218_v61 = vadd.f32 %v3217_v20, %v7930_v14 }
 0x95f   : > { %v5849_v36 = vpop.eup %5848  ;;  %v4008_v37 = vadd.f32 1.0, %v5847_v34  ;;  %v7962_v45 = vpop.f32.mrb[152].mxu0  ;;  %v3867_v59 = vmul.f32 1.442695, %v3754_v33  ;;  %v3760_v4 = vsub.f32 0.0, %v4826_v44  ;;  %v3319_v5 = vadd.f32 %v3318_v11, %v7933_v43 }
 0x960   : > { %v5851_v39 = vpop.eup %5850  ;;  %5868 = vrcp.f32 %v4006_v35  ;;  %v4012_v40 = vadd.f32 1.0, %v5849_v36  ;;  %v7964_v47 = vpop.f32.mrb[152].mxu1  ;;  %v4829_v7 = vclamps-f32 %v3317_v57, 30.0  ;;  %v3220_v8 = vadd.f32 %v3219_v24, %v7936_v63 }
 0x961   : > { %v5853_v42 = vpop.eup %5852  ;;  %5870 = vrcp.f32 %v4008_v37  ;;  %v4014_v48 = vadd.f32 1.0, %v5851_v39  ;;  %v7966_v46 = vpop.f32.mrb[153].mxu0  ;;  %v3762_v12 = vsub.f32 0.0, %v4828_v49  ;;  %v4833_v13 = vclamps-f32 %v3218_v61, 30.0 }
 0x962   : > { %v7968_v53 = vpop.f32.mrb[153].mxu1  ;;  %v5855_v54 = vpop.eup %5854  ;;  %5872 = vrcp.f32 %v4012_v40  ;;  %v4013_v55 = vadd.f32 1.0, %v5853_v42  ;;  %v3871_v18 = vmul.f32 1.442695, %v3756_v51  ;;  %v3761_v19 = vsub.f32 0.0, %v4827_v60 }
 0x963   : > { %v7971_v32 = vpop.f32.mrb[154].mxu0  ;;  %v7973_v56 = vpop.f32.mrb[154].mxu1  ;;  %5874 = vrcp.f32 %v4014_v48  ;;  %v4015_v58 = vadd.f32 1.0, %v5855_v54  ;;  %v3879_v21 = vmul.f32 1.442695, %v3760_v4  ;;  %v4835_v22 = vclamps-f32 %v3319_v5, 30.0 }
 0x964   : > { %v7976_v3 = vpop.f32.mrb[155].mxu0  ;;  %v7978_v1 = vpop.f32.mrb[155].mxu1  ;;  %5876 = vrcp.f32 %v4013_v55  ;;  %v3763_v27 = vsub.f32 0.0, %v4829_v7  ;;  %v4834_v28 = vclamps-f32 %v3220_v8, 30.0  ;;  %v3321_v31 = vadd.f32 %v7958_v25, %v7939_v2 }
 0x965   : > { %v5857_v0 = vpop.eup %5856  ;;  %5878 = vrcp.f32 %v4015_v58  ;;  %v3883_v29 = vmul.f32 1.442695, %v3762_v12  ;;  %v3767_v36 = vsub.f32 0.0, %v4833_v13  ;;  %v3224_v37 = vadd.f32 %v7962_v45, %v7930_v14 }
 0x966   : > { %v5859_v6 = vpop.eup %5858  ;;  %v4019_v62 = vadd.f32 1.0, %v5857_v0  ;;  %5880 = vpow2.f32 %v3865_v30  ;;  %v3881_v25 = vmul.f32 1.442695, %v3761_v19  ;;  %v4836_v40 = vclamps-f32 %v3321_v31, 30.0 }
 0x967   : > { %v5861_v9 = vpop.eup %5860  ;;  %v4021_v10 = vadd.f32 1.0, %v5859_v6  ;;  %v7982_v23 = vpop.f32.mrb[156].mxu0  ;;  %v3769_v45 = vsub.f32 0.0, %v4835_v22  ;;  %v4840_v48 = vclamps-f32 %v3224_v37, 30.0  ;;  %v3325_v51 = vadd.f32 %v7964_v47, %v7933_v43 }
 0x968   : > { %v5863_v16 = vpop.eup %5862  ;;  %5882 = vrcp.f32 %v4019_v62  ;;  %v4020_v17 = vadd.f32 1.0, %v5861_v9  ;;  %v7984_v15 = vpop.f32.mrb[156].mxu1  ;;  %v3768_v55 = vsub.f32 0.0, %v4834_v28  ;;  %v3893_v57 = vmul.f32 1.442695, %v3767_v36 }
 0x969   : > { %v5865_v20 = vpop.eup %5864  ;;  %5884 = vrcp.f32 %v4021_v10  ;;  %v4022_v11 = vadd.f32 1.0, %v5863_v16  ;;  %v7993_v26 = vpop.f32.mrb[157].mxu0  ;;  %v3770_v58 = vsub.f32 0.0, %v4836_v40  ;;  %v3774_v61 = vsub.f32 0.0, %v4840_v48 }
 0x96a   : > { %v5867_v24 = vpop.eup %5866  ;;  %4187 = vst [vmem:[%s7988_s3] sm:$0xff] %v5865_v20  ;;  %5886 = vrcp.f32 %v4020_v17  ;;  %v7995_v34 = vpop.f32.mrb[157].mxu1  ;;  %v3226_v0 = vadd.f32 %v7966_v46, %v7936_v63  ;;  %v4842_v4 = vclamps-f32 %v3325_v51, 30.0  ;;  %v3895_v7 = vmul.f32 1.442695, %v3768_v55 }
 0x96b   : > { %v5869_v35 = vpop.eup %5868  ;;  %4189 = vst [vmem:[%s7988_s3 + $0x10] sm:$0xff] %v5867_v24  ;;  %5888 = vrcp.f32 %v4022_v11  ;;  %v8000_v30 = vpop.f32.mrb[158].mxu0  ;;  %v3327_v8 = vadd.f32 %v7968_v53, %v7939_v2  ;;  %v3899_v12 = vmul.f32 1.442695, %v3770_v58  ;;  %v3228_v22 = vadd.f32 %v7971_v32, %v7930_v14 }
 0x96c   : > { %v8002_v38 = vpop.f32.mrb[158].mxu1  ;;  %v5871_v39 = vpop.eup %5870  ;;  %4188 = vst [vmem:[%s7988_s3 + $0x8] sm:$0xff] %v5869_v35  ;;  %5890 = vpow2.f32 %v3869_v50  ;;  %v3885_v50 = vmul.f32 1.442695, %v3763_v27  ;;  %v4841_v19 = vclamps-f32 %v3226_v0, 30.0  ;;  %v3234_v58 = vadd.f32 %v7982_v23, %v7930_v14 }
 0x96d   : > { %v8005_v33 = vpop.f32.mrb[159].mxu0  ;;  %v8007_v44 = vpop.f32.mrb[159].mxu1  ;;  %4190 = vst [vmem:[%s7988_s3 + $0x18] sm:$0xff] %v5871_v39  ;;  %5892 = vpow2.f32 %v3867_v59  ;;  %v3897_v59 = vmul.f32 1.442695, %v3769_v45  ;;  %v4843_v28 = vclamps-f32 %v3327_v8, 30.0  ;;  %v3329_v39 = vadd.f32 %v7973_v56, %v7933_v43 }
 0x96e   : > { %v5873_v42 = vpop.eup %5872  ;;  %5894 = vpow2.f32 %v3871_v18  ;;  %v3907_v18 = vmul.f32 1.442695, %v3774_v61  ;;  %v3775_v37 = vsub.f32 0.0, %v4841_v19  ;;  %v3331_v56 = vadd.f32 %v7978_v1, %v7939_v2 }
 0x96f   : > { %v5875_v54 = vpop.eup %5874  ;;  %4194 = vst [vmem:[%s7988_s3 + $0x38] sm:$0xff] %v5873_v42  ;;  %5896 = vpow2.f32 %v3879_v21  ;;  %v8018_v5 = vpop.f32.mrb[160].mxu0  ;;  %v3776_v21 = vsub.f32 0.0, %v4842_v4  ;;  %v4847_v42 = vclamps-f32 %v3228_v22, 30.0  ;;  %v3335_v23 = vadd.f32 %v7984_v15, %v7933_v43 }
 0x970   : > { %v5877_v49 = vpop.eup %5876  ;;  %4196 = vst [vmem:[%s7988_s3 + $0x48] sm:$0xff] %v5875_v54  ;;  %5898 = vpow2.f32 %v3883_v29  ;;  %v8022_v9 = vpop.f32.mrb[160].mxu1  ;;  %v3777_v54 = vsub.f32 0.0, %v4843_v28  ;;  %v4854_v22 = vclamps-f32 %v3234_v58, 30.0  ;;  %v3337_v15 = vadd.f32 %v7995_v34, %v7939_v2 }
 0x971   : > { %v5879_v60 = vpop.eup %5878  ;;  %4195 = vst [vmem:[%s7988_s3 + $0x40] sm:$0xff] %v5877_v49  ;;  %5900 = vpow2.f32 %v3881_v25  ;;  %v8024_v10 = vpop.f32.mrb[161].mxu0  ;;  %v3911_v32 = vmul.f32 1.442695, %v3776_v21  ;;  %v3781_v1 = vsub.f32 0.0, %v4847_v42  ;;  %v4850_v21 = vclamps-f32 %v3331_v56, 30.0 }
 0x972   : > { %v5881_v47 = vpop.eup %5880  ;;  %4197 = vst [vmem:[%s7988_s3 + $0x50] sm:$0xff] %v5879_v60  ;;  %5902 = vpow2.f32 %v3885_v50  ;;  %v8027_v13 = vpop.f32.mrb[161].mxu1  ;;  %v3230_v50 = vadd.f32 %v7976_v3, %v7936_v63  ;;  %v4849_v3 = vclamps-f32 %v3329_v39, 30.0  ;;  %v3238_v39 = vadd.f32 %v8000_v30, %v7930_v14 }
 0x973   : > { %v5883_v6 = vpop.eup %5882  ;;  %v4026_v62 = vadd.f32 1.0, %v5881_v47  ;;  %5904 = vpow2.f32 %v3893_v57  ;;  %v8029_v16 = vpop.f32.mrb[162].mxu0  ;;  %v3921_v58 = vmul.f32 1.442695, %v3781_v1 }
 0x974   : > { %v5885_v46 = vpop.eup %5884  ;;  %4201 = vst [vmem:[%s7988_s3 + $0x70] sm:$0xff] %v5883_v6  ;;  %v8032_v53 = vpop.f32.mrb[162].mxu1  ;;  %v4848_v19 = vclamps-f32 %v3230_v50, 30.0  ;;  %v3784_v50 = vsub.f32 0.0, %v4850_v21 }
 0x975   : > { %v5887_v17 = vpop.eup %5886  ;;  %4203 = vst [vmem:[%s7988_s3 + $0x80] sm:$0xff] %v5885_v46  ;;  %5906 = vrcp.f32 %v4026_v62  ;;  %v8034_v20 = vpop.f32.mrb[163].mxu0 }
 0x976   : > { %v5889_v11 = vpop.eup %5888  ;;  %4202 = vst [vmem:[%s7988_s3 + $0x78] sm:$0xff] %v5887_v17  ;;  %5908 = vpow2.f32 %v3897_v59  ;;  %v8039_v24 = vpop.f32.mrb[163].mxu1  ;;  %v8058_v59 = vmul.f32 1.442695, %v3775_v37  ;;  %v4856_v37 = vclamps-f32 %v3335_v23, 30.0 }
 0x977   : > { %v5891_v27 = vpop.eup %5890  ;;  %4204 = vst [vmem:[%s7988_s3 + $0x88] sm:$0xff] %v5889_v11  ;;  %5910 = vpow2.f32 %v3895_v7  ;;  %v8044_v45 = vpop.f32.mrb[164].mxu0 }
 0x978   : > { %v5893_v31 = vpop.eup %5892  ;;  %v4028_v35 = vadd.f32 1.0, %v5891_v27  ;;  %5912 = vpow2.f32 %v3899_v12  ;;  %v8048_v55 = vpop.f32.mrb[164].mxu1  ;;  %v3236_v27 = vadd.f32 %v7993_v26, %v7936_v63 }
 0x979   : > { %v5895_v29 = vpop.eup %5894  ;;  %v4027_v36 = vadd.f32 1.0, %v5893_v31  ;;  %5914 = vpow2.f32 %v3907_v18  ;;  %v8054_v60 = vpop.f32.mrb[165].mxu0  ;;  %v3913_v18 = vmul.f32 1.442695, %v3777_v54 }
 0x97a   : > { %v5897_v25 = vpop.eup %5896  ;;  %5916 = vrcp.f32 %v4028_v35  ;;  %v4029_v40 = vadd.f32 1.0, %v5895_v29  ;;  %v8056_v61 = vpop.f32.mrb[165].mxu1  ;;  %v3783_v35 = vsub.f32 0.0, %v4849_v3  ;;  %v4855_v30 = vclamps-f32 %v3236_v27, 30.0 }
 0x97b   : > { %v5899_v48 = vpop.eup %5898  ;;  %5918 = vrcp.f32 %v4027_v36  ;;  %v4033_v51 = vadd.f32 1.0, %v5897_v25  ;;  %v3257_v4 = vpop.f32.mrb[166].mxu0 }
 0x97c   : > { %v5901_v49 = vpop.eup %5900  ;;  %5920 = vrcp.f32 %v4029_v40  ;;  %v4035_v57 = vadd.f32 1.0, %v5899_v48  ;;  %v3358_v6 = vpop.f32.mrb[166].mxu1  ;;  %v3782_v48 = vsub.f32 0.0, %v4848_v19  ;;  %v3789_v19 = vsub.f32 0.0, %v4855_v30 }
 0x97d   : > { %v5903_v0 = vpop.eup %5902  ;;  %5922 = vrcp.f32 %v4033_v51  ;;  %v4034_v47 = vadd.f32 1.0, %v5901_v49  ;;  %v3258_v8 = vpop.f32.mrb[167].mxu0  ;;  %v3339_v51 = vadd.f32 %v8002_v38, %v7933_v43  ;;  %v3925_v6 = vmul.f32 1.442695, %v3783_v35 }
 0x97e   : > { %v5905_v62 = vpop.eup %5904  ;;  %5924 = vrcp.f32 %v4035_v57  ;;  %v4036_v7 = vadd.f32 1.0, %v5903_v0  ;;  %v3359_v46 = vpop.f32.mrb[167].mxu1  ;;  %v3788_v0 = vsub.f32 0.0, %v4854_v22  ;;  %v3923_v1 = vmul.f32 1.442695, %v3782_v48 }
 0x97f   : > { %v5907_v12 = vpop.eup %5906  ;;  %5926 = vrcp.f32 %v4034_v47  ;;  %v4040_v17 = vadd.f32 1.0, %v5905_v62  ;;  %v8069_v25 = vpop.f32.mrb[168].mxu0  ;;  %v4857_v47 = vclamps-f32 %v3337_v15, 30.0  ;;  %v3790_v62 = vsub.f32 0.0, %v4856_v37 }
 0x980   : > { %v5909_v11 = vpop.eup %5908  ;;  %4208 = vst [vmem:[%s7988_s3 + $0xa8] sm:$0xff] %v5907_v12  ;;  %5928 = vrcp.f32 %v4036_v7  ;;  %v8071_v40 = vpop.f32.mrb[168].mxu1  ;;  %v4861_v7 = vclamps-f32 %v3238_v39, 30.0  ;;  %v4863_v46 = vclamps-f32 %v3339_v51, 30.0  ;;  %v3935_v22 = vmul.f32 1.442695, %v3788_v0 }
 0x981   : > { %v5911_v28 = vpop.eup %5910  ;;  %5930 = vrcp.f32 %v4040_v17  ;;  %v4042_v31 = vadd.f32 1.0, %v5909_v11  ;;  %v8075_v34 = vpop.f32.mrb[169].mxu0  ;;  %v3927_v17 = vmul.f32 1.442695, %v3784_v50  ;;  %v3240_v11 = vadd.f32 %v8005_v33, %v7936_v63 }
 0x982   : > { %v5913_v29 = vpop.eup %5912  ;;  %v4041_v36 = vadd.f32 1.0, %v5911_v28  ;;  %5932 = vpow2.f32 %v3911_v32  ;;  %v5435_v49 = vpop.f32.mrb[169].mxu1  ;;  %v3791_v27 = vsub.f32 0.0, %v4857_v47 }
 0x983   : > { %v5915_v26 = vpop.eup %5914  ;;  %5934 = vrcp.f32 %v4042_v31  ;;  %v4043_v42 = vadd.f32 1.0, %v5913_v29  ;;  %v8077_v57 = vpop.f32.mrb[170].mxu0  ;;  %v3795_v31 = vsub.f32 0.0, %v4861_v7  ;;  %v3797_v29 = vsub.f32 0.0, %v4863_v46 }
 0x984   : > { %v5917_v54 = vpop.eup %5916  ;;  %5936 = vrcp.f32 %v4041_v36  ;;  %v4047_v32 = vadd.f32 1.0, %v5915_v26  ;;  %v8080_v38 = vpop.f32.mrb[170].mxu1  ;;  %v3937_v36 = vmul.f32 1.442695, %v3789_v19  ;;  %v4862_v37 = vclamps-f32 %v3240_v11, 30.0 }
 0x985   : > { %v5919_v56 = vpop.eup %5918  ;;  %4210 = vst [vmem:[%s7988_s3 + $0xb8] sm:$0xff] %v5917_v54  ;;  %5938 = vrcp.f32 %v4043_v42  ;;  %v8082_v3 = vpop.f32.mrb[171].mxu0  ;;  %v3941_v51 = vmul.f32 1.442695, %v3791_v27  ;;  %v3341_v54 = vadd.f32 %v8007_v44, %v7939_v2  ;;  %v3949_v49 = vmul.f32 1.442695, %v3795_v31 }
 0x986   : > { %v5921_v4 = vpop.eup %5920  ;;  %4209 = vst [vmem:[%s7988_s3 + $0xb0] sm:$0xff] %v5919_v56  ;;  %5940 = vrcp.f32 %v4047_v32  ;;  %v5436_v23 = vpop.f32.mrb[171].mxu1  ;;  %v3244_v56 = vadd.f32 %v8018_v5, %v7930_v14  ;;  %v3953_v44 = vmul.f32 1.442695, %v3797_v29  ;;  %v3796_v7 = vsub.f32 0.0, %v4862_v37 }
 0x987   : > { %v5923_v8 = vpop.eup %5922  ;;  %4211 = vst [vmem:[%s7988_s3 + $0xc0] sm:$0xff] %v5921_v4  ;;  %5942 = vpow2.f32 %v8058_v59  ;;  %v3939_v59 = vmul.f32 1.442695, %v3790_v62  ;;  %v8092_v35 = vpop.f32.mrb[172].mxu0  ;;  %v3345_v4 = vadd.f32 %v8022_v9, %v7933_v43  ;;  %v3246_v23 = vadd.f32 %v8024_v10, %v7936_v63 }
 0x988   : > { %v5925_v12 = vpop.eup %5924  ;;  %4215 = vst [vmem:[%s7988_s3 + $0xe0] sm:$0xff] %v5923_v8  ;;  %5944 = vpow2.f32 %v3913_v18  ;;  %v8094_v18 = vpop.f32.mrb[172].mxu1  ;;  %v4864_v8 = vclamps-f32 %v3341_v54, 30.0  ;;  %v3951_v31 = vmul.f32 1.442695, %v3796_v7 }
 0x989   : > { %v5927_v21 = vpop.eup %5926  ;;  %4217 = vst [vmem:[%s7988_s3 + $0xf0] sm:$0xff] %v5925_v12  ;;  %5946 = vpow2.f32 %v3921_v58  ;;  %v8098_v39 = vpop.f32.mrb[173].mxu0  ;;  %v4868_v12 = vclamps-f32 %v3244_v56, 30.0  ;;  %v3248_v56 = vadd.f32 %v8029_v16, %v7930_v14 }
 0x98a   : > { %v5929_v28 = vpop.eup %5928  ;;  %4216 = vst [vmem:[%s7988_s3 + $0xe8] sm:$0xff] %v5927_v21  ;;  %5948 = vpow2.f32 %v3925_v6  ;;  %v5439_v26 = vpop.f32.mrb[173].mxu1  ;;  %v2854_v6 = vsub.s32 4, %v7921_v41 }
 0x98b   : > { %v5931_v15 = vpop.eup %5930  ;;  %4218 = vst [vmem:[%s7988_s3 + $0xf8] sm:$0xff] %v5929_v28  ;;  %5950 = vpow2.f32 %v3923_v1  ;;  %v8102_v32 = vpop.f32.mrb[174].mxu0  ;;  %v3798_v26 = vsub.f32 0.0, %v4864_v8 }
 0x98c   : > { %v5933_v33 = vpop.eup %5932  ;;  %4222 = vst [vmem:[%s7988_s3 + $0x118] sm:$0xff] %v5931_v15  ;;  %5952 = vpow2.f32 %v3927_v17  ;;  %v8104_v50 = vpop.f32.mrb[174].mxu1  ;;  %v2862_v17 = vsub.s32 6, %v7921_v41  ;;  %v8125_v10 = vrot.slane %v7925_v52, %v2854_v6  ;;  %v4869_v15 = vclamps-f32 %v3246_v23, 30.0 }
 0x98d   : > { %v5935_v42 = vpop.eup %5934  ;;  %v4049_v48 = vadd.f32 1.0, %v5933_v33  ;;  %5954 = vpow2.f32 %v3935_v22  ;;  %v8109_v58 = vpop.f32.mrb[175].mxu0  ;;  %v4870_v22 = vclamps-f32 %v3345_v4, 30.0  ;;  %v3250_v23 = vadd.f32 %v8034_v20, %v7936_v63 }
 0x98e   : > { %v5937_v30 = vpop.eup %5936  ;;  %4224 = vst [vmem:[%s7988_s3 + $0x128] sm:$0xff] %v5935_v42  ;;  %5956 = vpow2.f32 %v3939_v59  ;;  %v5440_v0 = vpop.f32.mrb[175].mxu1  ;;  %v3347_v42 = vadd.f32 %v8027_v13, %v7939_v2  ;;  %v3349_v13 = vadd.f32 %v8032_v53, %v7933_v43  ;;  %v3803_v7 = vsub.f32 0.0, %v4869_v15 }
 0x98f   : > { %v5939_v47 = vpop.eup %5938  ;;  %4223 = vst [vmem:[%s7988_s3 + $0x120] sm:$0xff] %v5937_v30  ;;  %5958 = vrcp.f32 %v4049_v48  ;;  %v8120_v9 = vpop.f32.mrb[176].mxu0  ;;  %v3804_v4 = vsub.f32 0.0, %v4870_v22  ;;  %v3955_v16 = vmul.f32 1.442695, %v3798_v26  ;;  %v3351_v53 = vadd.f32 %v8039_v24, %v7939_v2 }
 0x990   : > { %v5941_v62 = vpop.eup %5940  ;;  %4225 = vst [vmem:[%s7988_s3 + $0x130] sm:$0xff] %v5939_v47  ;;  %5960 = vpow2.f32 %v3937_v36  ;;  %v8122_v19 = vpop.f32.mrb[176].mxu1  ;;  %v3254_v15 = vadd.f32 %v8044_v45, %v7930_v14  ;;  %v3355_v24 = vadd.f32 %v8048_v55, %v7933_v43  ;;  %v3256_v14 = vadd.f32 %v8054_v60, %v7936_v63 }
 0x991   : > { %v5943_v5 = vpop.eup %5942  ;;  %4229 = vst [vmem:[%s7988_s3 + $0x150] sm:$0xff] %v5941_v62  ;;  %5962 = vpow2.f32 %v3941_v51  ;;  %v8127_v27 = vpop.f32.mrb[177].mxu0  ;;  %v4878_v55 = vclamps-f32 %v3351_v53, 30.0  ;;  %v3965_v63 = vmul.f32 1.442695, %v3803_v7  ;;  %v8170_v53 = vrot.slane %v7925_v52, %v2862_v17 }
 0x992   : > { %v5945_v1 = vpop.eup %5944  ;;  %v4048_v46 = vadd.f32 1.0, %v5943_v5  ;;  %5964 = vpow2.f32 %v3949_v49  ;;  %v5443_v29 = vpop.f32.mrb[177].mxu1  ;;  %v3802_v49 = vsub.f32 0.0, %v4868_v12  ;;  %v3357_v7 = vadd.f32 %v8056_v61, %v7939_v2 }
 0x993   : > { %v5947_v11 = vpop.eup %5946  ;;  %v4050_v21 = vadd.f32 1.0, %v5945_v1  ;;  %5966 = vpow2.f32 %v3953_v44  ;;  %v8129_v33 = vpop.f32.mrb[178].mxu0  ;;  %v4871_v1 = vclamps-f32 %v3347_v42, 30.0  ;;  %v4876_v42 = vclamps-f32 %v3250_v23, 30.0 }
 0x994   : > { %v5949_v28 = vpop.eup %5948  ;;  %5968 = vrcp.f32 %v4048_v46  ;;  %v4054_v59 = vadd.f32 1.0, %v5947_v11  ;;  %v8133_v48 = vpop.f32.mrb[178].mxu1  ;;  %v3963_v12 = vmul.f32 1.442695, %v3802_v49  ;;  %v4875_v11 = vclamps-f32 %v3248_v56, 30.0 }
 0x995   : > { %v5951_v36 = vpop.eup %5950  ;;  %5970 = vrcp.f32 %v4050_v21  ;;  %v4056_v37 = vadd.f32 1.0, %v5949_v28  ;;  %v8135_v51 = vpop.f32.mrb[179].mxu0  ;;  %v4882_v23 = vclamps-f32 %v3254_v15, 30.0  ;;  %v3810_v60 = vsub.f32 0.0, %v4876_v42 }
 0x996   : > { %v5953_v54 = vpop.eup %5952  ;;  %5972 = vrcp.f32 %v4054_v59  ;;  %v4055_v30 = vadd.f32 1.0, %v5951_v36  ;;  %v5444_v0 = vpop.f32.mrb[179].mxu1  ;;  %v4877_v59 = vclamps-f32 %v3349_v13, 30.0  ;;  %v3809_v43 = vsub.f32 0.0, %v4875_v11 }
 0x997   : > { %v5955_v47 = vpop.eup %5954  ;;  %5974 = vrcp.f32 %v4056_v37  ;;  %v4057_v44 = vadd.f32 1.0, %v5953_v54  ;;  %v8146_v21 = vpop.f32.mrb[180].mxu0  ;;  %v3805_v0 = vsub.f32 0.0, %v4871_v1  ;;  %v4883_v11 = vclamps-f32 %v3256_v14, 30.0 }
 0x998   : > { %v5957_v6 = vpop.eup %5956  ;;  %5976 = vrcp.f32 %v4055_v30  ;;  %v4061_v62 = vadd.f32 1.0, %v5955_v47  ;;  %v8148_v22 = vpop.f32.mrb[180].mxu1  ;;  %v3816_v52 = vsub.f32 0.0, %v4882_v23  ;;  %v2858_v17 = vsub.s32 5, %v7921_v41 }
 0x999   : > { %v5959_v5 = vpop.eup %5958  ;;  %5978 = vrcp.f32 %v4057_v44  ;;  %v4063_v8 = vadd.f32 1.0, %v5957_v6  ;;  %v8152_v29 = vpop.f32.mrb[181].mxu0  ;;  %v3967_v6 = vmul.f32 1.442695, %v3804_v4  ;;  %v3979_v2 = vmul.f32 1.442695, %v3810_v60 }
 0x99a   : > { %v5961_v46 = vpop.eup %5960  ;;  %4231 = vst [vmem:[%s7988_s3 + $0x160] sm:$0xff] %v5959_v5  ;;  %5980 = vrcp.f32 %v4061_v62  ;;  %v5447_v36 = vpop.f32.mrb[181].mxu1  ;;  %v3811_v62 = vsub.f32 0.0, %v4877_v59  ;;  %v3396_v41 = vadd.f32 %v8069_v25, %v8125_v10 }
 0x99b   : > { %v5963_v28 = vpop.eup %5962  ;;  %5982 = vrcp.f32 %v4063_v8  ;;  %v4062_v20 = vadd.f32 1.0, %v5961_v46  ;;  %v8156_v54 = vpop.f32.mrb[182].mxu0  ;;  %v4884_v8 = vclamps-f32 %v3355_v24, 30.0  ;;  %v3969_v46 = vmul.f32 1.442695, %v3805_v0 }
 0x99c   : > { %v5965_v37 = vpop.eup %5964  ;;  %v4064_v26 = vadd.f32 1.0, %v5963_v28  ;;  %5984 = vpow2.f32 %v3951_v31  ;;  %v8158_v30 = vpop.f32.mrb[182].mxu1  ;;  %v3977_v28 = vmul.f32 1.442695, %v3809_v43  ;;  %v3981_v36 = vmul.f32 1.442695, %v3811_v62 }
 0x99d   : > { %v5967_v49 = vpop.eup %5966  ;;  %5986 = vrcp.f32 %v4062_v20  ;;  %v4068_v56 = vadd.f32 1.0, %v5965_v37  ;;  %v8162_v45 = vpop.f32.mrb[183].mxu0  ;;  %v3812_v20 = vsub.f32 0.0, %v4878_v55  ;;  %v3818_v61 = vsub.f32 0.0, %v4884_v8  ;;  %v6204_v62 = vld [vmem:[#allocation28] sm:$0x7f] }
 0x99e   : > { %v5448_v31 = vpop.f32.mrb[183].mxu1  ;;  %v5969_v47 = vpop.eup %5968  ;;  %5988 = vrcp.f32 %v4064_v26  ;;  %v4070_v44 = vadd.f32 1.0, %v5967_v49  ;;  %v3497_v43 = vadd.f32 %v8071_v40, %v8170_v53  ;;  %v8196_v25 = vrot.slane %v6204_v62, %v2858_v17 }
 0x99f   : > { %v5971_v13 = vpop.eup %5970  ;;  %4230 = vst [vmem:[%s7988_s3 + $0x158] sm:$0xff] %v5969_v47  ;;  %5990 = vrcp.f32 %v4068_v56  ;;  %v8175_v59 = vpop.f32.mrb[184].mxu0  ;;  %v3817_v56 = vsub.f32 0.0, %v4883_v11  ;;  %v3983_v47 = vmul.f32 1.442695, %v3812_v20  ;;  %v4802_v8 = vclamps-f32 %v3396_v41, 30.0 }
 0x9a0   : > { %v5973_v5 = vpop.eup %5972  ;;  %4232 = vst [vmem:[%s7988_s3 + $0x168] sm:$0xff] %v5971_v13  ;;  %5992 = vrcp.f32 %v4070_v44  ;;  %v8177_v15 = vpop.f32.mrb[184].mxu1  ;;  %v4885_v44 = vclamps-f32 %v3357_v7, 30.0  ;;  %v3398_v20 = vadd.f32 %v8075_v34, %v8196_v25  ;;  %v3400_v17 = vadd.f32 %v8077_v57, %v8125_v10 }
 0x9a1   : > { %v5975_v1 = vpop.eup %5974  ;;  %4236 = vst [vmem:[%s7988_s3 + $0x188] sm:$0xff] %v5973_v5  ;;  %5994 = vpow2.f32 %v3955_v16  ;;  %v8181_v37 = vpop.f32.mrb[185].mxu0  ;;  %v3995_v5 = vmul.f32 1.442695, %v3818_v61  ;;  %v3993_v60 = vmul.f32 1.442695, %v3817_v56 }
 0x9a2   : > { %v5977_v4 = vpop.eup %5976  ;;  %4238 = vst [vmem:[%s7988_s3 + $0x198] sm:$0xff] %v5975_v1  ;;  %5996 = vpow2.f32 %v3963_v12  ;;  %v5451_v12 = vpop.f32.mrb[185].mxu1  ;;  %v3819_v40 = vsub.f32 0.0, %v4885_v44  ;;  %v4803_v57 = vclamps-f32 %v3398_v20, 30.0  ;;  %v4809_v62 = vclamps-f32 %v3400_v17, 30.0 }
 0x9a3   : > { %v5979_v16 = vpop.eup %5978  ;;  %4237 = vst [vmem:[%s7988_s3 + $0x190] sm:$0xff] %v5977_v4  ;;  %5998 = vpow2.f32 %v3967_v6  ;;  %v8184_v42 = vpop.f32.mrb[186].mxu0  ;;  %v3991_v6 = vmul.f32 1.442695, %v3816_v52 }
 0x9a4   : > { %v5981_v26 = vpop.eup %5980  ;;  %4239 = vst [vmem:[%s7988_s3 + $0x1a0] sm:$0xff] %v5979_v16  ;;  %6000 = vpow2.f32 %v3965_v63  ;;  %v8186_v24 = vpop.f32.mrb[186].mxu1 }
 0x9a5   : > { %v5983_v49 = vpop.eup %5982  ;;  %4243 = vst [vmem:[%s7988_s3 + $0x1c0] sm:$0xff] %v5981_v26  ;;  %6002 = vpow2.f32 %v3969_v46  ;;  %v8191_v0 = vpop.f32.mrb[187].mxu0  ;;  %v4804_v46 = vclamps-f32 %v3497_v43, 30.0 }
 0x9a6   : > { %v5452_v14 = vpop.f32.mrb[187].mxu1  ;;  %v5985_v31 = vpop.eup %5984  ;;  %4245 = vst [vmem:[%s7988_s3 + $0x1d0] sm:$0xff] %v5983_v49  ;;  %6004 = vpow2.f32 %v3977_v28  ;;  %v3736_v49 = vsub.f32 0.0, %v4802_v8  ;;  %v3406_v8 = vadd.f32 %v8092_v35, %v8125_v10 }
 0x9a7   : > { %v5987_v55 = vpop.eup %5986  ;;  %v4069_v13 = vadd.f32 1.0, %v5985_v31  ;;  %6006 = vpow2.f32 %v3981_v36  ;;  %v8201_v11 = vpop.f32.mrb[188].mxu0  ;;  %v3997_v31 = vmul.f32 1.442695, %v3819_v40 }
 0x9a8   : > { %v5989_v23 = vpop.eup %5988  ;;  %4244 = vst [vmem:[%s7988_s3 + $0x1c8] sm:$0xff] %v5987_v55  ;;  %6008 = vpow2.f32 %v3979_v2  ;;  %v8203_v4 = vpop.f32.mrb[188].mxu1  ;;  %v3500_v55 = vadd.f32 %v8080_v38, %v8170_v53  ;;  %v3505_v38 = vadd.f32 %v8094_v18, %v8170_v53  ;;  %v3408_v18 = vadd.f32 %v8098_v39, %v8196_v25 }
 0x9a9   : > { %v5991_v63 = vpop.eup %5990  ;;  %4246 = vst [vmem:[%s7988_s3 + $0x1d8] sm:$0xff] %v5989_v23  ;;  %6010 = vrcp.f32 %v4069_v13  ;;  %v8208_v7 = vpop.f32.mrb[189].mxu0  ;;  %v3402_v23 = vadd.f32 %v8082_v3, %v8196_v25 }
 0x9aa   : > { %v5993_v1 = vpop.eup %5992  ;;  %4250 = vst [vmem:[%s7988_s3 + $0x1f8] sm:$0xff] %v5991_v63  ;;  %6012 = vpow2.f32 %v3983_v47  ;;  %v5455_v16 = vpop.f32.mrb[189].mxu1  ;;  %v3738_v47 = vsub.f32 0.0, %v4804_v46 }
 0x9ab   : > { %v5995_v28 = vpop.eup %5994  ;;  %4252 = vst [vmem:[%s7988_s3 + $0x208] sm:$0xff] %v5993_v1  ;;  %6014 = vpow2.f32 %v3991_v6  ;;  %v8212_v12 = vpop.f32.mrb[190].mxu0 }
 0x9ac   : > { %v5997_v36 = vpop.eup %5996  ;;  %v4071_v52 = vadd.f32 1.0, %v5995_v28  ;;  %6016 = vpow2.f32 %v3995_v5  ;;  %v8214_v26 = vpop.f32.mrb[190].mxu1  ;;  %v3835_v46 = vmul.f32 1.442695, %v3738_v47 }
 0x9ad   : > { %v5999_v2 = vpop.eup %5998  ;;  %v4075_v61 = vadd.f32 1.0, %v5997_v36  ;;  %6018 = vpow2.f32 %v3993_v60  ;;  %v8216_v56 = vpop.f32.mrb[191].mxu0  ;;  %v3831_v60 = vmul.f32 1.442695, %v3736_v49  ;;  %v3737_v36 = vsub.f32 0.0, %v4803_v57 }
 0x9ae   : > { %v5456_v34 = vpop.f32.mrb[191].mxu1  ;;  %v6001_v41 = vpop.eup %6000  ;;  %6020 = vrcp.f32 %v4071_v52  ;;  %v4077_v14 = vadd.f32 1.0, %v5999_v2  ;;  %v4811_v52 = vclamps-f32 %v3500_v55, 30.0  ;;  %v4810_v49 = vclamps-f32 %v3402_v23, 30.0 }
 0x9af   : > { %v6003_v44 = vpop.eup %6002  ;;  %6022 = vrcp.f32 %v4075_v61  ;;  %v4076_v43 = vadd.f32 1.0, %v6001_v41  ;;  %v8226_v28 = vpop.f32.mrb[192].mxu0  ;;  %v3743_v61 = vsub.f32 0.0, %v4809_v62  ;;  %v4818_v62 = vclamps-f32 %v3505_v38, 30.0 }
 0x9b0   : > { %v6005_v13 = vpop.eup %6004  ;;  %6024 = vrcp.f32 %v4077_v14  ;;  %v4078_v6 = vadd.f32 1.0, %v6003_v44  ;;  %v8228_v20 = vpop.f32.mrb[192].mxu1  ;;  %v4816_v44 = vclamps-f32 %v3406_v8, 30.0  ;;  %v3508_v23 = vadd.f32 %v8104_v50, %v8170_v53 }
 0x9b1   : > { %v6007_v5 = vpop.eup %6006  ;;  %6026 = vrcp.f32 %v4076_v43  ;;  %v4082_v63 = vadd.f32 1.0, %v6005_v13  ;;  %v8230_v17 = vpop.f32.mrb[193].mxu0  ;;  %v3410_v43 = vadd.f32 %v8102_v32, %v8125_v10  ;;  %v3412_v8 = vadd.f32 %v8109_v58, %v8196_v25 }
 0x9b2   : > { %v6009_v1 = vpop.eup %6008  ;;  %6028 = vrcp.f32 %v4078_v6  ;;  %v4084_v40 = vadd.f32 1.0, %v6007_v5  ;;  %v5459_v35 = vpop.f32.mrb[193].mxu1  ;;  %v3750_v50 = vsub.f32 0.0, %v4816_v44  ;;  %v4825_v58 = vclamps-f32 %v3508_v23, 30.0 }
 0x9b3   : > { %v6011_v3 = vpop.eup %6010  ;;  %6030 = vrcp.f32 %v4082_v63  ;;  %v4083_v16 = vadd.f32 1.0, %v6009_v1  ;;  %v3459_v34 = vpop.f32.mrb[194].mxu0  ;;  %v3745_v63 = vsub.f32 0.0, %v4811_v52  ;;  %v4823_v38 = vclamps-f32 %v3410_v43, 30.0 }
 0x9b4   : > { %v6013_v2 = vpop.eup %6012  ;;  %4251 = vst [vmem:[%s7988_s3 + $0x200] sm:$0xff] %v6011_v3  ;;  %6032 = vrcp.f32 %v4084_v40  ;;  %v3547_v41 = vpop.f32.mrb[194].mxu1  ;;  %v3744_v40 = vsub.f32 0.0, %v4810_v49  ;;  %v4817_v3 = vclamps-f32 %v3408_v18, 30.0  ;;  %v3845_v52 = vmul.f32 1.442695, %v3743_v61 }
 0x9b5   : > { %v6015_v14 = vpop.eup %6014  ;;  %6034 = vrcp.f32 %v4083_v16  ;;  %v4085_v47 = vadd.f32 1.0, %v6013_v2  ;;  %v3460_v57 = vpop.f32.mrb[195].mxu0  ;;  %v3752_v2 = vsub.f32 0.0, %v4818_v62  ;;  %v3849_v49 = vmul.f32 1.442695, %v3745_v63 }
 0x9b6   : > { %v5460_v55 = vpop.f32.mrb[195].mxu1  ;;  %v6017_v13 = vpop.eup %6016  ;;  %v4089_v6 = vadd.f32 1.0, %v6015_v14  ;;  %6036 = vpow2.f32 %v3997_v31  ;;  %v3833_v31 = vmul.f32 1.442695, %v3737_v36  ;;  %v4824_v18 = vclamps-f32 %v3412_v8, 30.0 }
 0x9b7   : > { %v6019_v39 = vpop.eup %6018  ;;  %6038 = vrcp.f32 %v4085_v47  ;;  %v4091_v5 = vadd.f32 1.0, %v6017_v13  ;;  %v3847_v36 = vmul.f32 1.442695, %v3744_v40  ;;  %v3751_v14 = vsub.f32 0.0, %v4817_v3 }
 0x9b8   : > { %v6021_v1 = vpop.eup %6020  ;;  %6040 = vrcp.f32 %v4089_v6  ;;  %v4090_v32 = vadd.f32 1.0, %v6019_v39  ;;  %v3416_v47 = vadd.f32 %v8120_v9, %v8125_v10  ;;  %v3859_v61 = vmul.f32 1.442695, %v3750_v50 }
 0x9b9   : > { %v6023_v16 = vpop.eup %6022  ;;  %4253 = vst [vmem:[%s7988_s3 + $0x210] sm:$0xff] %v6021_v1  ;;  %6042 = vrcp.f32 %v4091_v5  ;;  %v3757_v43 = vsub.f32 0.0, %v4823_v38  ;;  %v3759_v55 = vsub.f32 0.0, %v4825_v58  ;;  %v3513_v6 = vadd.f32 %v8122_v19, %v8170_v53 }
 0x9ba   : > { %v6025_v35 = vpop.eup %6024  ;;  %4257 = vst [vmem:[%s7988_s3 + $0x230] sm:$0xff] %v6023_v16  ;;  %6044 = vrcp.f32 %v4090_v32  ;;  %v3861_v62 = vmul.f32 1.442695, %v3751_v14  ;;  %v4830_v23 = vclamps-f32 %v3416_v47, 30.0  ;;  %v3418_v39 = vadd.f32 %v8127_v27, %v8196_v25 }
 0x9bb   : > { %v6027_v34 = vpop.eup %6026  ;;  %4259 = vst [vmem:[%s7988_s3 + $0x240] sm:$0xff] %v6025_v35  ;;  %6046 = vpow2.f32 %v3831_v60  ;;  %v3863_v60 = vmul.f32 1.442695, %v3752_v2  ;;  %v3873_v8 = vmul.f32 1.442695, %v3757_v43  ;;  %v3420_v19 = vadd.f32 %v8129_v33, %v8125_v10 }
 0x9bc   : > { %v6029_v41 = vpop.eup %6028  ;;  %4258 = vst [vmem:[%s7988_s3 + $0x238] sm:$0xff] %v6027_v34  ;;  %6048 = vpow2.f32 %v3835_v46  ;;  %v3758_v46 = vsub.f32 0.0, %v4824_v18  ;;  %v3877_v32 = vmul.f32 1.442695, %v3759_v55  ;;  %v3516_v40 = vadd.f32 %v8133_v48, %v8170_v53 }
 0x9bd   : > { %v6031_v44 = vpop.eup %6030  ;;  %4260 = vst [vmem:[%s7988_s3 + $0x248] sm:$0xff] %v6029_v41  ;;  %6050 = vpow2.f32 %v3833_v31  ;;  %v4832_v16 = vclamps-f32 %v3513_v6, 30.0  ;;  %v3764_v50 = vsub.f32 0.0, %v4830_v23  ;;  %v4831_v38 = vclamps-f32 %v3418_v39, 30.0 }
 0x9be   : > { %v6033_v57 = vpop.eup %6032  ;;  %4264 = vst [vmem:[%s7988_s3 + $0x268] sm:$0xff] %v6031_v44  ;;  %6052 = vpow2.f32 %v3845_v52  ;;  %v3875_v27 = vmul.f32 1.442695, %v3758_v46  ;;  %v3422_v52 = vadd.f32 %v8135_v51, %v8196_v25  ;;  %v4837_v48 = vclamps-f32 %v3420_v19, 30.0 }
 0x9bf   : > { %v6035_v13 = vpop.eup %6034  ;;  %4266 = vst [vmem:[%s7988_s3 + $0x278] sm:$0xff] %v6033_v57  ;;  %6054 = vpow2.f32 %v3849_v49  ;;  %v4839_v58 = vclamps-f32 %v3516_v40, 30.0  ;;  %v3766_v18 = vsub.f32 0.0, %v4832_v16  ;;  %v3887_v14 = vmul.f32 1.442695, %v3764_v50 }
 0x9c0   : > { %v6037_v9 = vpop.eup %6036  ;;  %4265 = vst [vmem:[%s7988_s3 + $0x270] sm:$0xff] %v6035_v13  ;;  %6056 = vpow2.f32 %v3847_v36  ;;  %v3765_v47 = vsub.f32 0.0, %v4831_v38  ;;  %v4838_v43 = vclamps-f32 %v3422_v52, 30.0  ;;  %v3426_v51 = vadd.f32 %v8146_v21, %v8125_v10 }
 0x9c1   : > { %v6039_v5 = vpop.eup %6038  ;;  %v4092_v63 = vadd.f32 1.0, %v6037_v9  ;;  %6058 = vpow2.f32 %v3859_v61  ;;  %v3771_v55 = vsub.f32 0.0, %v4837_v48  ;;  %v3773_v13 = vsub.f32 0.0, %v4839_v58 }
 0x9c2   : > { %v6041_v1 = vpop.eup %6040  ;;  %4267 = vst [vmem:[%s7988_s3 + $0x280] sm:$0xff] %v6039_v5  ;;  %6060 = vpow2.f32 %v3863_v60  ;;  %v3891_v9 = vmul.f32 1.442695, %v3766_v18  ;;  %v3889_v5 = vmul.f32 1.442695, %v3765_v47  ;;  %v3428_v21 = vadd.f32 %v8152_v29, %v8196_v25 }
 0x9c3   : > { %v6043_v3 = vpop.eup %6042  ;;  %4271 = vst [vmem:[%s7988_s3 + $0x2a0] sm:$0xff] %v6041_v1  ;;  %6062 = vrcp.f32 %v4092_v63  ;;  %v3772_v1 = vsub.f32 0.0, %v4838_v43  ;;  %v3901_v40 = vmul.f32 1.442695, %v3771_v55  ;;  %v3524_v29 = vadd.f32 %v8158_v30, %v8170_v53 }
 0x9c4   : > { %v6045_v31 = vpop.eup %6044  ;;  %4273 = vst [vmem:[%s7988_s3 + $0x2b0] sm:$0xff] %v6043_v3  ;;  %6064 = vpow2.f32 %v3861_v62  ;;  %v3521_v62 = vadd.f32 %v8148_v22, %v8170_v53  ;;  %v3905_v3 = vmul.f32 1.442695, %v3773_v13  ;;  %v3430_v22 = vadd.f32 %v8156_v54, %v8125_v10 }
 0x9c5   : > { %v6047_v35 = vpop.eup %6046  ;;  %4272 = vst [vmem:[%s7988_s3 + $0x2a8] sm:$0xff] %v6045_v31  ;;  %6066 = vpow2.f32 %v3873_v8  ;;  %v3432_v52 = vadd.f32 %v8162_v45, %v8196_v25  ;;  %v3436_v48 = vadd.f32 %v8175_v59, %v8125_v10 }
 0x9c6   : > { %v6049_v33 = vpop.eup %6048  ;;  %v4009_v2 = vadd.f32 1.0, %v6047_v35  ;;  %6068 = vpow2.f32 %v3877_v32  ;;  %v4844_v32 = vclamps-f32 %v3426_v51, 30.0  ;;  %v4846_v31 = vclamps-f32 %v3521_v62, 30.0 }
 0x9c7   : > { %v6051_v34 = vpop.eup %6050  ;;  %v4011_v49 = vadd.f32 1.0, %v6049_v33  ;;  %6070 = vpow2.f32 %v3875_v27  ;;  %v4845_v35 = vclamps-f32 %v3428_v21, 30.0  ;;  %v4851_v30 = vclamps-f32 %v3430_v22, 30.0 }
 0x9c8   : > { %v6053_v41 = vpop.eup %6052  ;;  %6072 = vrcp.f32 %v4009_v2  ;;  %v4010_v36 = vadd.f32 1.0, %v6051_v34  ;;  %v3778_v54 = vsub.f32 0.0, %v4844_v32  ;;  %v3780_v45 = vsub.f32 0.0, %v4846_v31 }
 0x9c9   : > { %v6055_v44 = vpop.eup %6054  ;;  %6074 = vrcp.f32 %v4011_v49  ;;  %v4016_v61 = vadd.f32 1.0, %v6053_v41  ;;  %v8282_v49 = vadd.f32 %v8226_v28, %v8125_v10  ;;  %v4853_v41 = vclamps-f32 %v3524_v29, 30.0 }
 0x9ca   : > { %v6057_v57 = vpop.eup %6056  ;;  %6076 = vrcp.f32 %v4010_v36  ;;  %v4018_v60 = vadd.f32 1.0, %v6055_v44  ;;  %v8287_v36 = vadd.f32 %v8228_v20, %v8170_v53  ;;  %v4852_v47 = vclamps-f32 %v3432_v52, 30.0 }
 0x9cb   : > { %v6059_v46 = vpop.eup %6058  ;;  %6078 = vrcp.f32 %v4016_v61  ;;  %v4017_v6 = vadd.f32 1.0, %v6057_v57  ;;  %v8293_v28 = vadd.f32 %v8230_v17, %v8196_v25  ;;  %v3903_v61 = vmul.f32 1.442695, %v3772_v1 }
 0x9cc   : > { %v6061_v23 = vpop.eup %6060  ;;  %6080 = vrcp.f32 %v4018_v60  ;;  %v4023_v39 = vadd.f32 1.0, %v6059_v46  ;;  %v4858_v43 = vclamps-f32 %v3436_v48, 30.0  ;;  %v3915_v20 = vmul.f32 1.442695, %v3778_v54 }
 0x9cd   : > { %v6063_v63 = vpop.eup %6062  ;;  %6082 = vrcp.f32 %v4017_v6  ;;  %v4025_v8 = vadd.f32 1.0, %v6061_v23  ;;  %v3785_v57 = vsub.f32 0.0, %v4851_v30  ;;  %v3919_v55 = vmul.f32 1.442695, %v3780_v45 }
 0x9ce   : > { %v6065_v19 = vpop.eup %6064  ;;  %4274 = vst [vmem:[%s7988_s3 + $0x2b8] sm:$0xff] %v6063_v63  ;;  %6084 = vrcp.f32 %v4023_v39  ;;  %v3787_v17 = vsub.f32 0.0, %v4853_v41  ;;  %v3786_v6 = vsub.f32 0.0, %v4852_v47  ;;  %v3792_v62 = vsub.f32 0.0, %v4858_v43 }
 0x9cf   : > { %v6067_v27 = vpop.eup %6066  ;;  %6086 = vrcp.f32 %v4025_v8  ;;  %v4024_v16 = vadd.f32 1.0, %v6065_v19  ;;  %v3929_v39 = vmul.f32 1.442695, %v3785_v57  ;;  %v3438_v1 = vadd.f32 %v8181_v37, %v8196_v25 }
 0x9d0   : > { %v6069_v50 = vpop.eup %6068  ;;  %v4030_v38 = vadd.f32 1.0, %v6067_v27  ;;  %6088 = vpow2.f32 %v3887_v14  ;;  %v3779_v14 = vsub.f32 0.0, %v4845_v35  ;;  %v3933_v8 = vmul.f32 1.442695, %v3787_v17 }
 0x9d1   : > { %v6071_v33 = vpop.eup %6070  ;;  %6090 = vrcp.f32 %v4024_v16  ;;  %v4032_v2 = vadd.f32 1.0, %v6069_v50  ;;  %v3931_v19 = vmul.f32 1.442695, %v3786_v6  ;;  %v3532_v37 = vadd.f32 %v8186_v24, %v8170_v53 }
 0x9d2   : > { %v6073_v58 = vpop.eup %6072  ;;  %6092 = vrcp.f32 %v4030_v38  ;;  %v4031_v34 = vadd.f32 1.0, %v6071_v33  ;;  %v3917_v46 = vmul.f32 1.442695, %v3779_v14  ;;  %v4859_v31 = vclamps-f32 %v3438_v1, 30.0 }
 0x9d3   : > { %v6075_v18 = vpop.eup %6074  ;;  %4191 = vst [vmem:[%s7988_s3 + $0x20] sm:$0xff] %v6073_v58  ;;  %6094 = vrcp.f32 %v4032_v2  ;;  %v3442_v38 = vadd.f32 %v8191_v0, %v8196_v25  ;;  %v4867_v48 = vclamps-f32 %v3532_v37, 30.0  ;;  %v3446_v30 = vadd.f32 %v8201_v11, %v8125_v10 }
 0x9d4   : > { %v6077_v59 = vpop.eup %6076  ;;  %4193 = vst.msk [vmem:[%s7988_s3 + $0x30] sm:$0xff] %vm1386_vm0, %v6075_v18  ;;  %6096 = vrcp.f32 %v4031_v34  ;;  %v3793_v34 = vsub.f32 0.0, %v4859_v31  ;;  %v3537_v41 = vadd.f32 %v8203_v4, %v8170_v53  ;;  %v3450_v11 = vadd.f32 %v8212_v12, %v8125_v10 }
 0x9d5   : > { %v6079_v44 = vpop.eup %6078  ;;  %4192 = vst [vmem:[%s7988_s3 + $0x28] sm:$0xff] %v6077_v59  ;;  %6098 = vpow2.f32 %v3891_v9  ;;  %v4866_v0 = vclamps-f32 %v3442_v38, 30.0  ;;  %v4872_v4 = vclamps-f32 %v3446_v30, 30.0  ;;  %v4888_v31 = vclamps-f32 %v8287_v36, 30.0 }
 0x9d6   : > { %v6081_v51 = vpop.eup %6080  ;;  %4198 = vst [vmem:[%s7988_s3 + $0x58] sm:$0xff] %v6079_v44  ;;  %6100 = vpow2.f32 %v3889_v5  ;;  %v3529_v5 = vadd.f32 %v8177_v15, %v8170_v53  ;;  %v3440_v15 = vadd.f32 %v8184_v42, %v8125_v10  ;;  %v3448_v44 = vadd.f32 %v8208_v7, %v8196_v25 }
 0x9d7   : > { %v6083_v60 = vpop.eup %6082  ;;  %4200 = vst.msk [vmem:[%s7988_s3 + $0x68] sm:$0xff] %vm1386_vm0, %v6081_v51  ;;  %6102 = vpow2.f32 %v3901_v40  ;;  %v3945_v17 = vmul.f32 1.442695, %v3793_v34  ;;  %v3540_v7 = vadd.f32 %v8214_v26, %v8170_v53  ;;  %v3452_v10 = vadd.f32 %v8216_v56, %v8196_v25 }
 0x9d8   : > { %v6085_v13 = vpop.eup %6084  ;;  %4199 = vst [vmem:[%s7988_s3 + $0x60] sm:$0xff] %v6083_v60  ;;  %6104 = vpow2.f32 %v3905_v3  ;;  %v3943_v3 = vmul.f32 1.442695, %v3792_v62  ;;  %v4860_v27 = vclamps-f32 %v3529_v5, 30.0  ;;  %v4865_v52 = vclamps-f32 %v3440_v15, 30.0 }
 0x9d9   : > { %v6087_v9 = vpop.eup %6086  ;;  %4205 = vst [vmem:[%s7988_s3 + $0x90] sm:$0xff] %v6085_v13  ;;  %6106 = vpow2.f32 %v3903_v61  ;;  %v3801_v60 = vsub.f32 0.0, %v4867_v48  ;;  %v4874_v13 = vclamps-f32 %v3537_v41, 30.0 }
 0x9da   : > { %v6089_v23 = vpop.eup %6088  ;;  %4207 = vst.msk [vmem:[%s7988_s3 + $0xa0] sm:$0xff] %vm1386_vm0, %v6087_v9  ;;  %6108 = vpow2.f32 %v3915_v20  ;;  %v3794_v54 = vsub.f32 0.0, %v4860_v27  ;;  %v3799_v47 = vsub.f32 0.0, %v4865_v52  ;;  %v4873_v9 = vclamps-f32 %v3448_v44, 30.0 }
 0x9db   : > { %v6091_v21 = vpop.eup %6090  ;;  %v4037_v63 = vadd.f32 1.0, %v6089_v23  ;;  %6110 = vpow2.f32 %v3919_v55  ;;  %v3800_v23 = vsub.f32 0.0, %v4866_v0  ;;  %v3808_v1 = vsub.f32 0.0, %v4874_v13 }
 0x9dc   : > { %v6093_v32 = vpop.eup %6092  ;;  %4206 = vst [vmem:[%s7988_s3 + $0x98] sm:$0xff] %v6091_v21  ;;  %6112 = vpow2.f32 %v3917_v46  ;;  %v3947_v51 = vmul.f32 1.442695, %v3794_v54  ;;  %v3961_v25 = vmul.f32 1.442695, %v3801_v60  ;;  %v3807_v56 = vsub.f32 0.0, %v4873_v9 }
 0x9dd   : > { %v6095_v40 = vpop.eup %6094  ;;  %4212 = vst [vmem:[%s7988_s3 + $0xc8] sm:$0xff] %v6093_v32  ;;  %6114 = vrcp.f32 %v4037_v63  ;;  %v3957_v63 = vmul.f32 1.442695, %v3799_v47  ;;  %v4881_v32 = vclamps-f32 %v3540_v7, 30.0  ;;  %v3959_v15 = vmul.f32 1.442695, %v3800_v23 }
 0x9de   : > { %v6097_v22 = vpop.eup %6096  ;;  %4214 = vst.msk [vmem:[%s7988_s3 + $0xd8] sm:$0xff] %vm1386_vm0, %v6095_v40  ;;  %6116 = vpow2.f32 %v3929_v39  ;;  %v4879_v39 = vclamps-f32 %v3450_v11, 30.0  ;;  %v4880_v40 = vclamps-f32 %v3452_v10, 30.0  ;;  %v4886_v27 = vclamps-f32 %v8282_v49, 30.0 }
 0x9df   : > { %v6099_v16 = vpop.eup %6098  ;;  %4213 = vst [vmem:[%s7988_s3 + $0xd0] sm:$0xff] %v6097_v22  ;;  %6118 = vpow2.f32 %v3933_v8  ;;  %v3806_v8 = vsub.f32 0.0, %v4872_v4  ;;  %v3815_v38 = vsub.f32 0.0, %v4881_v32  ;;  %v3822_v54 = vsub.f32 0.0, %v4888_v31 }
 0x9e0   : > { %v6101_v29 = vpop.eup %6100  ;;  %v4039_v50 = vadd.f32 1.0, %v6099_v16  ;;  %6120 = vpow2.f32 %v3931_v19  ;;  %v3813_v22 = vsub.f32 0.0, %v4879_v39  ;;  %v3814_v49 = vsub.f32 0.0, %v4880_v40 }
 0x9e1   : > { %v6103_v35 = vpop.eup %6102  ;;  %v4038_v42 = vadd.f32 1.0, %v6101_v29  ;;  %6122 = vpow2.f32 %v3943_v3  ;;  %v3971_v16 = vmul.f32 1.442695, %v3806_v8  ;;  %v4003_v41 = vmul.f32 1.442695, %v3822_v54 }
 0x9e2   : > { %v6105_v33 = vpop.eup %6104  ;;  %6124 = vrcp.f32 %v4039_v50  ;;  %v4044_v2 = vadd.f32 1.0, %v6103_v35  ;;  %v3975_v50 = vmul.f32 1.442695, %v3808_v1  ;;  %v3987_v30 = vmul.f32 1.442695, %v3814_v49 }
 0x9e3   : > { %v6107_v24 = vpop.eup %6106  ;;  %6126 = vrcp.f32 %v4038_v42  ;;  %v4046_v58 = vadd.f32 1.0, %v6105_v33  ;;  %v3973_v42 = vmul.f32 1.442695, %v3807_v56  ;;  %v3985_v33 = vmul.f32 1.442695, %v3813_v22 }
 0x9e4   : > { %v6109_v18 = vpop.eup %6108  ;;  %6128 = vrcp.f32 %v4044_v2  ;;  %v4045_v45 = vadd.f32 1.0, %v6107_v24  ;;  %v3820_v2 = vsub.f32 0.0, %v4886_v27  ;;  %v3989_v24 = vmul.f32 1.442695, %v3815_v38 }
 0x9e5   : > { %v6111_v59 = vpop.eup %6110  ;;  %6130 = vrcp.f32 %v4046_v58  ;;  %v4051_v14 = vadd.f32 1.0, %v6109_v18 }
 0x9e6   : > { %v6113_v61 = vpop.eup %6112  ;;  %6132 = vrcp.f32 %v4045_v45  ;;  %v4053_v43 = vadd.f32 1.0, %v6111_v59  ;;  %v3999_v45 = vmul.f32 1.442695, %v3820_v2 }
 0x9e7   : > { %v6115_v20 = vpop.eup %6114  ;;  %6134 = vrcp.f32 %v4051_v14  ;;  %v4052_v57 = vadd.f32 1.0, %v6113_v61  ;;  %v4887_v14 = vclamps-f32 %v8293_v28, 30.0 }
 0x9e8   : > { %v6117_v55 = vpop.eup %6116  ;;  %4219 = vst [vmem:[%s7988_s3 + $0x100] sm:$0xff] %v6115_v20  ;;  %6136 = vrcp.f32 %v4053_v43 }
 0x9e9   : > { %v6119_v46 = vpop.eup %6118  ;;  %6138 = vrcp.f32 %v4052_v57  ;;  %v4058_v6 = vadd.f32 1.0, %v6117_v55  ;;  %v3821_v57 = vsub.f32 0.0, %v4887_v14 }
 0x9ea   : > { %v6121_v12 = vpop.eup %6120  ;;  %v4060_v62 = vadd.f32 1.0, %v6119_v46  ;;  %6140 = vpow2.f32 %v3947_v51 }
 0x9eb   : > { %v6123_v5 = vpop.eup %6122  ;;  %6142 = vrcp.f32 %v4058_v6  ;;  %v4059_v21 = vadd.f32 1.0, %v6121_v12  ;;  %v4001_v6 = vmul.f32 1.442695, %v3821_v57 }
 0x9ec   : > { %v6125_v53 = vpop.eup %6124  ;;  %6144 = vrcp.f32 %v4060_v62  ;;  %v4065_v26 = vadd.f32 1.0, %v6123_v5 }
 0x9ed   : > { %v6127_v19 = vpop.eup %6126  ;;  %4221 = vst.msk [vmem:[%s7988_s3 + $0x110] sm:$0xff] %vm1386_vm0, %v6125_v53  ;;  %6146 = vrcp.f32 %v4059_v21 }
 0x9ee   : > { %v6129_v3 = vpop.eup %6128  ;;  %4220 = vst [vmem:[%s7988_s3 + $0x108] sm:$0xff] %v6127_v19  ;;  %6148 = vrcp.f32 %v4065_v26 }
 0x9ef   : > { %v6131_v37 = vpop.eup %6130  ;;  %4226 = vst [vmem:[%s7988_s3 + $0x138] sm:$0xff] %v6129_v3  ;;  %6150 = vpow2.f32 %v3945_v17 }
 0x9f0   : > { %v6133_v29 = vpop.eup %6132  ;;  %4228 = vst.msk [vmem:[%s7988_s3 + $0x148] sm:$0xff] %vm1386_vm0, %v6131_v37  ;;  %6152 = vpow2.f32 %v3957_v63 }
 0x9f1   : > { %v6135_v35 = vpop.eup %6134  ;;  %4227 = vst [vmem:[%s7988_s3 + $0x140] sm:$0xff] %v6133_v29  ;;  %6154 = vpow2.f32 %v3961_v25 }
 0x9f2   : > { %v6137_v52 = vpop.eup %6136  ;;  %4233 = vst [vmem:[%s7988_s3 + $0x170] sm:$0xff] %v6135_v35  ;;  %6156 = vpow2.f32 %v3959_v15 }
 0x9f3   : > { %v6139_v36 = vpop.eup %6138  ;;  %4235 = vst.msk [vmem:[%s7988_s3 + $0x180] sm:$0xff] %vm1386_vm0, %v6137_v52  ;;  %6158 = vpow2.f32 %v3971_v16 }
 0x9f4   : > { %v6141_v48 = vpop.eup %6140  ;;  %4234 = vst [vmem:[%s7988_s3 + $0x178] sm:$0xff] %v6139_v36  ;;  %6160 = vpow2.f32 %v3975_v50 }
 0x9f5   : > { %v6143_v58 = vpop.eup %6142  ;;  %v4067_v34 = vadd.f32 1.0, %v6141_v48  ;;  %6162 = vpow2.f32 %v3973_v42 }
 0x9f6   : > { %v6145_v18 = vpop.eup %6144  ;;  %4240 = vst [vmem:[%s7988_s3 + $0x1a8] sm:$0xff] %v6143_v58  ;;  %6164 = vpow2.f32 %v3985_v33 }
 0x9f7   : > { %v6147_v0 = vpop.eup %6146  ;;  %4242 = vst.msk [vmem:[%s7988_s3 + $0x1b8] sm:$0xff] %vm1386_vm0, %v6145_v18  ;;  %6166 = vrcp.f32 %v4067_v34 }
 0x9f8   : > { %v6149_v59 = vpop.eup %6148  ;;  %4241 = vst [vmem:[%s7988_s3 + $0x1b0] sm:$0xff] %v6147_v0  ;;  %6168 = vpow2.f32 %v3989_v24 }
 0x9f9   : > { %v6151_v47 = vpop.eup %6150  ;;  %4247 = vst [vmem:[%s7988_s3 + $0x1e0] sm:$0xff] %v6149_v59  ;;  %6170 = vpow2.f32 %v3987_v30 }
 0x9fa   : > { %v6153_v44 = vpop.eup %6152  ;;  %v4066_v61 = vadd.f32 1.0, %v6151_v47  ;;  %6172 = vpow2.f32 %v3999_v45 }
 0x9fb   : > { %v6155_v43 = vpop.eup %6154  ;;  %v4072_v51 = vadd.f32 1.0, %v6153_v44  ;;  %6174 = vpow2.f32 %v4003_v41 }
 0x9fc   : > { %v6157_v11 = vpop.eup %6156  ;;  %6176 = vrcp.f32 %v4066_v61  ;;  %v4074_v20 = vadd.f32 1.0, %v6155_v43 }
 0x9fd   : > { %v6159_v60 = vpop.eup %6158  ;;  %6178 = vrcp.f32 %v4072_v51  ;;  %v4073_v4 = vadd.f32 1.0, %v6157_v11 }
 0x9fe   : > { %v6161_v55 = vpop.eup %6160  ;;  %6180 = vrcp.f32 %v4074_v20  ;;  %v4079_v28 = vadd.f32 1.0, %v6159_v60 }
 0x9ff   : > { %v6163_v17 = vpop.eup %6162  ;;  %6182 = vrcp.f32 %v4073_v4  ;;  %v4081_v13 = vadd.f32 1.0, %v6161_v55 }
 0xa00   : > { %v6165_v7 = vpop.eup %6164  ;;  %6184 = vrcp.f32 %v4079_v28  ;;  %v4080_v46 = vadd.f32 1.0, %v6163_v17 }
 0xa01   : > { %v6167_v9 = vpop.eup %6166  ;;  %6186 = vrcp.f32 %v4081_v13  ;;  %v4086_v10 = vadd.f32 1.0, %v6165_v7 }
 0xa02   : > { %v6169_v12 = vpop.eup %6168  ;;  %4249 = vst.msk [vmem:[%s7988_s3 + $0x1f0] sm:$0xff] %vm1386_vm0, %v6167_v9  ;;  %6188 = vrcp.f32 %v4080_v46 }
 0xa03   : > { %v6171_v62 = vpop.eup %6170  ;;  %6190 = vrcp.f32 %v4086_v10  ;;  %v4088_v23 = vadd.f32 1.0, %v6169_v12 }
 0xa04   : > { %v6173_v39 = vpop.eup %6172  ;;  %v4087_v5 = vadd.f32 1.0, %v6171_v62  ;;  %6192 = vpow2.f32 %v4001_v6 }
 0xa05   : > { %v6175_v21 = vpop.eup %6174  ;;  %6194 = vrcp.f32 %v4088_v23  ;;  %v4093_v63 = vadd.f32 1.0, %v6173_v39 }
 0xa06   : > { %v6177_v8 = vpop.eup %6176  ;;  %6196 = vrcp.f32 %v4087_v5  ;;  %v4095_v53 = vadd.f32 1.0, %v6175_v21 }
 0xa07   : > { %v6179_v26 = vpop.eup %6178  ;;  %4248 = vst [vmem:[%s7988_s3 + $0x1e8] sm:$0xff] %v6177_v8  ;;  %6198 = vrcp.f32 %v4093_v63 }
 0xa08   : > { %v6181_v1 = vpop.eup %6180  ;;  %4254 = vst [vmem:[%s7988_s3 + $0x218] sm:$0xff] %v6179_v26  ;;  %6200 = vrcp.f32 %v4095_v53 }
 0xa09   : > { %v6183_v32 = vpop.eup %6182  ;;  %4256 = vst.msk [vmem:[%s7988_s3 + $0x228] sm:$0xff] %vm1386_vm0, %v6181_v1 }
 0xa0a   : > { %v6185_v19 = vpop.eup %6184  ;;  %4255 = vst [vmem:[%s7988_s3 + $0x220] sm:$0xff] %v6183_v32 }
 0xa0b   : > { %v6187_v25 = vpop.eup %6186  ;;  %4261 = vst [vmem:[%s7988_s3 + $0x250] sm:$0xff] %v6185_v19 }
 0xa0c   : > { %v6189_v56 = vpop.eup %6188  ;;  %4263 = vst.msk [vmem:[%s7988_s3 + $0x260] sm:$0xff] %vm1386_vm0, %v6187_v25 }
 0xa0d   : > { %v6191_v40 = vpop.eup %6190  ;;  %4262 = vst [vmem:[%s7988_s3 + $0x258] sm:$0xff] %v6189_v56 }
 0xa0e   : > { %v6193_v3 = vpop.eup %6192  ;;  %4268 = vst [vmem:[%s7988_s3 + $0x288] sm:$0xff] %v6191_v40 }
 0xa0f   : > { %v6195_v15 = vpop.eup %6194  ;;  %v4094_v22 = vadd.f32 1.0, %v6193_v3 }
 0xa10   : > { %v6197_v27 = vpop.eup %6196  ;;  %4270 = vst.msk [vmem:[%s7988_s3 + $0x298] sm:$0xff] %vm1386_vm0, %v6195_v15 }
 0xa11   : > { %v6199_v37 = vpop.eup %6198  ;;  %4269 = vst [vmem:[%s7988_s3 + $0x290] sm:$0xff] %v6197_v27  ;;  %6202 = vrcp.f32 %v4094_v22 }
 0xa12   : > { %v6201_v16 = vpop.eup %6200  ;;  %4275 = vst [vmem:[%s7988_s3 + $0x2c0] sm:$0xff] %v6199_v37 }
 0xa13   : > { %4277 = vst.msk [vmem:[%s7988_s3 + $0x2d0] sm:$0xff] %vm1386_vm0, %v6201_v16 }
 0xa16   : > { %4290 = sbr.rel (!%p8582_p10) target bundleno = 2618 (0xa3a), region = 160 }
 0xa1b   : > { %v6203_v31 = vpop.eup %6202 }
 0xa1c   : > { %4276 = vst [vmem:[%s7988_s3 + $0x2c8] sm:$0xff] %v6203_v31 }
 0xa1d   : > { %s8600_s17 = smov (!%p4293_p1, %s4292_s17), 13 }
 0xa1e   : > { %s8374_s29 = sshll.u32 %s8600_s17, 7 }
 0xa1f   : > { %s4297_s26 = ssub.s32 1664, %s8374_s29 }
 0xa20   : > { %4298 = vsyncadd %s4279_s18, %s4297_s26  ;;  %p4890_p3 = scmp.ne.s32.totalorder %s8374_s29, 0  ;;  %s4901_s20 = smul.u32 1664, %s8583_s25 }
 0xa21   : > { %s4303_s28 = sshll.u32 %s7714_s30, 4  ;;  %s8584_s19 = sld [smem:[#allocation60_spill]]  ;;  %s8387_s28 = int_to_ptr.vmem [resolvable:$true] %s4303_s28 }
 0xa22   : > { %s6681_s22 = scalar_lea.vmem %s8387_s28, %s8374_s29  ;;  %s6839_s1 = smov [#allocation29]  }
 0xa23   : > { %p6682_p5 = scmp.ne.s32.totalorder %s8387_s28, %s6681_s22  ;;  %s6685_s17 = sshll.u32 %s6839_s1, 4  ;;  %s6686_s17 = int_to_ptr.vmem [resolvable:$false] %s6685_s17 }
 0xa24   : > { %s6687_s25 = scalar_lea.vmem %s6686_s17, 3328  ;;  %p6688_p13 = scmp.lt.s32.totalorder %s8387_s28, %s6686_s17 }
 0xa25   : > { %p6683_p6 = pnand %p6682_p5, %p4890_p3  ;;  %p6689_p0 = scmp.lt.s32.totalorder %s6687_s25, %s6681_s22 }
 0xa27   : > { %s8385_s27 = scalar_lea.hbm %s8584_s19, %s4901_s20  ;;  %p6684_p11 = pneg %p6683_p6 }
 0xa28   : > { %p6690_p12 = por %p6689_p0, %p6688_p13 }
 0xa2a   : > { %p6691_p7 = pnand %p6690_p12, %p6684_p11 }
 0xa2c   : > { %6694 = shalt.err (!%p6691_p7)
}
 0xa2d   : > { %s6695_s30 = scalar_lea.hbm %s8385_s27, %s8374_s29  ;;  %s6699_s2 = scalar_lea.hbm %s8584_s19, 3200 }
 0xa2e   : > { %p6696_p2 = scmp.ne.s32.totalorder %s8385_s27, %s6695_s30  ;;  %p6700_p10 = scmp.lt.u32.totalorder %s8385_s27, %s8584_s19 }
 0xa2f   : > { %p6701_p1 = scmp.lt.u32.totalorder %s6699_s2, %s6695_s30  ;;  %p6703_p6 = scmp.lt.u32.totalorder %s6695_s30, %s8385_s27 }
 0xa30   : > { %p6697_p8 = pnand %p6696_p2, %p4890_p3 }
 0xa31   : > { %p6702_p5 = por %p6701_p1, %p6700_p10 }
 0xa32   : > { %p6698_p9 = pneg %p6697_p8 }
 0xa33   : > { %p6704_p11 = por %p6703_p6, %p6702_p5 }
 0xa35   : > { %p6705_p13 = pnand %p6704_p11, %p6698_p9 }
 0xa37   : > { %6708 = shalt.err (!%p6705_p13)
}
 0xa38   : > { %s6840_s1 = smov 128   ;;  %s6841_s17 = smov 8  }
 0xa39   : > { %4309 = dma.vmem_to_hbm [thread:$0]  (%p4890_p3), %s8387_s28, %s8374_s29, %s8385_s27, %s4279_s18, %s6840_s1, %s6840_s1, %s6841_s17  }
 0xa3a PF: > { %s8585_s25 = sld [smem:[#allocation52_spill]] }
 0xa40   : > { %p8586_p0 = scmp.ne.s32.totalorder %s8585_s25, 0 }
 0xa41   : > { %s8587_s26 = sld [smem:[#allocation47_spill]] (%p8586_p0) }
 0xa42   : > { %4312 = sbr.rel (!%p8586_p0) target bundleno = 2666 (0xa6a), region = 164 }
 0xa47   : > { %s4313_s30 = smul.u32 (%p8586_p0), 13, %s8587_s26 }
 0xa49   : > { %s4314_s20 = ssub.s32 25, %s4313_s30 }
 0xa4a   : > { %p4315_p12 = scmp.lt.s32.totalorder %s4314_s20, 13 }
 0xa4c   : > { %s8602_s20 = smov (!%p4315_p12, %s4314_s20), 13 }
 0xa4d   : > { %s8418_s2 = smul.u32 896, %s8602_s20 }
 0xa4f   : > { %s4320_s0 = ssub.s32 11648, %s8418_s2 }
 0xa50   : > { %4321 = vsyncadd %s4284_s23, %s4320_s0  ;;  %p4896_p3 = scmp.ne.s32.totalorder %s8418_s2, 0  ;;  %s5622_s18 = smul.u32 11648, %s8587_s26 }
 0xa51   : > { %s4327_s29 = sshll.u32 %s7988_s3, 4  ;;  %s8588_s22 = sld [smem:[#allocation61_spill]]  ;;  %s8431_s29 = int_to_ptr.vmem [resolvable:$true] %s4327_s29 }
 0xa52   : > { %s6709_s17 = scalar_lea.vmem %s8431_s29, %s8418_s2  ;;  %s6842_s25 = smov [#allocation30]  }
 0xa53   : > { %p6710_p7 = scmp.ne.s32.totalorder %s8431_s29, %s6709_s17  ;;  %s6713_s30 = sshll.u32 %s6842_s25, 4  ;;  %s6714_s30 = int_to_ptr.vmem [resolvable:$false] %s6713_s30 }
 0xa54   : > { %s6715_s26 = scalar_lea.vmem %s6714_s30, 23296  ;;  %p6716_p9 = scmp.lt.s32.totalorder %s8431_s29, %s6714_s30 }
 0xa55   : > { %p6711_p2 = pnand %p6710_p7, %p4896_p3  ;;  %p6717_p10 = scmp.lt.s32.totalorder %s6715_s26, %s6709_s17 }
 0xa57   : > { %s8429_s1 = scalar_lea.hbm %s8588_s22, %s5622_s18  ;;  %p6712_p8 = pneg %p6711_p2 }
 0xa58   : > { %p6718_p1 = por %p6717_p10, %p6716_p9 }
 0xa5a   : > { %p6719_p5 = pnand %p6718_p1, %p6712_p8 }
 0xa5c   : > { %6722 = shalt.err (!%p6719_p5)
}
 0xa5d   : > { %s6723_s3 = scalar_lea.hbm %s8429_s1, %s8418_s2  ;;  %s6727_s18 = scalar_lea.hbm %s8588_s22, 22400 }
 0xa5e   : > { %p6724_p6 = scmp.ne.s32.totalorder %s8429_s1, %s6723_s3  ;;  %p6728_p0 = scmp.lt.u32.totalorder %s8429_s1, %s8588_s22 }
 0xa5f   : > { %p6729_p12 = scmp.lt.u32.totalorder %s6727_s18, %s6723_s3  ;;  %p6731_p2 = scmp.lt.u32.totalorder %s6723_s3, %s8429_s1 }
 0xa60   : > { %p6725_p11 = pnand %p6724_p6, %p4896_p3 }
 0xa61   : > { %p6730_p7 = por %p6729_p12, %p6728_p0 }
 0xa62   : > { %p6726_p13 = pneg %p6725_p11 }
 0xa63   : > { %p6732_p8 = por %p6731_p2, %p6730_p7 }
 0xa65   : > { %p6733_p9 = pnand %p6732_p8, %p6726_p13 }
 0xa67   : > { %6736 = shalt.err (!%p6733_p9)
}
 0xa68   : > { %s6843_s17 = smov 896   ;;  %s6844_s25 = smov 56  }
 0xa69   : > { %4333 = dma.vmem_to_hbm [thread:$0]  (%p4896_p3), %s8431_s29, %s8418_s2, %s8429_s1, %s4284_s23, %s6843_s17, %s6843_s17, %s6844_s25  }
 0xa6a PF: > { %s8589_s30 = sld [smem:[#allocation43_spill]]  ;;  %s8590_s26 = sld [smem:[#allocation53_spill]] }
 0xa70   : > { %s4342_s0 = sand.u32 1, %s8589_s30   ;;  %p8592_p10 = scmp.ne.s32.totalorder %s8590_s26, 0 }
 0xa71   : > { %s4343_s3 = scalar_lea.sflag [#allocation4], %s4342_s0 }
 0xa72   : > { %p5583_p1 = pnand %p4602_p4, %p8592_p10 }
 0xa74   : > { %6790 = dma.done.wait (!%p5583_p1), %s4343_s3, 1664  }
 0xa75   : > { %6792 = vsyncadd (!%p5583_p1), %s4343_s3, 4294965632  ;;  %s4352_s18 = scalar_lea.sflag [#allocation31], %s4342_s0 }
 0xa76   : > { %6794 = dma.done.wait (!%p5583_p1), %s4352_s18, 11648  }
 0xa77   : > { %6796 = vsyncadd (!%p5583_p1), %s4352_s18, 4294955648  ;;  %s8593_s30 = sld [smem:[#allocation48_spill]]  ;;  %s8594_s27 = sld [smem:[#allocation44_spill]] }
 0xa78   : > { %s8595_s28 = sld [smem:[#allocation45_spill]]  ;;  %s8596_s29 = sld [smem:[#allocation49_spill]] }
 0xa7d   : > { %p43_p3 = scmp.ge.s32.totalorder %s8593_s30, 4  }
 0xa7f   :  { %45 = sbr.rel (!%p43_p3) target bundleno = 23 (0x17), region = 214 }
 0xa86   :  { %4357 = vsyncpa [#allocation3], 1 }
 0xa87   :  { %4359 = vsyncpa [#allocation3 + $0x1], 1 }
 0xa88   :  { %4360 = vsyncpa [#allocation6], 1 }
 0xa89   :  { %4361 = vsyncpa [#allocation9], 1 }
 0xa8a   :  { %4362 = vsyncpa [#allocation12], 1 }
 0xa8b   :  { %4363 = vsyncpa [#allocation15], 1 }
 0xa8c   :  { %4364 = vsyncpa [#allocation18], 1 }
 0xa8d   :  { %4365 = vsyncpa [#allocation21], 1 }
 0xa8e   :  { %4366 = vsyncpa [#allocation24], 1 }
 0xa8f   :  { %4367 = vsyncpa [#allocation27], 1 }
 0xa90   :  { %4368 = vsyncpa [#allocation4], 1 }
 0xa91   :  { %4370 = vsyncpa [#allocation4 + $0x1], 1 }
 0xa92   :  { %4371 = vsyncpa [#allocation31], 1 }
 0xa93   :  { %4373 = vsyncpa [#allocation31 + $0x1], 1 }

</bundles_post_ra>
